<compile_context>
chip_gen: v5e
topology: v5e:2x2
jax: 0.10.0
libtpu: 0.0.40
codegen_flags: <defaults>
</compile_context>

<pallas_src>
import functools

import jax
import jax.numpy as jnp
import numpy as np
from jax.experimental import pallas as pl
from jax.experimental.pallas import tpu as pltpu
from jax.scipy.linalg import block_diag


# ----------------------------------------------------------------------------- helpers
def _erf(x):
    # Abramowitz & Stegun 7.1.26 rational polynomial (|err| < 1.5e-7); only elementwise
    # ops that are guaranteed to lower on Mosaic (exp, mul, add, where).
    a1, a2, a3, a4, a5 = 0.254829592, -0.284496736, 1.421413741, -1.453152027, 1.061405429
    p = 0.3275911
    s = jnp.where(x < 0.0, -1.0, 1.0)
    ax = jnp.abs(x)
    t = 1.0 / (1.0 + p * ax)
    poly = ((((a5 * t + a4) * t + a3) * t + a2) * t + a1) * t
    return s * (1.0 - poly * jnp.exp(-ax * ax))


def _gelu_exact(x):
    # nn.GELU() default (erf-based)
    return 0.5 * x * (1.0 + _erf(x * 0.7071067811865476))


# ----------------------------------------------------------------------------- kernel
def attention_pool_kernel(tok0_ref, tok1_ref,
                          wkv0_ref, bkv0_ref, wkv1_ref, bkv1_ref,
                          wproj_ref, bproj_ref, amean_ref, gamma_ref, beta_ref,
                          wfc1_ref, bfc1_ref, wfc2_ref, bfc2_ref,
                          out_ref, *, eps, approx_recip):
    S0, NBp, CL = tok0_ref.shape          # CL = PACK*C lanes (128 for C=32)
    S1 = tok1_ref.shape[0]
    mm_dtype = wproj_ref.dtype            # bf16 fast path or f32 exact path

    # ---- fused per-modality [scores | values] projection: one MXU matmul each --------
    t0 = tok0_ref[...].reshape(S0 * NBp, CL)          # leading-dim collapse, tile-aligned
    t1 = tok1_ref[...].reshape(S1 * NBp, CL)
    kv0 = jnp.dot(t0, wkv0_ref[...], preferred_element_type=jnp.float32) + bkv0_ref[...]
    kv1 = jnp.dot(t1, wkv1_ref[...], preferred_element_type=jnp.float32) + bkv1_ref[...]

    # lane-tile-aligned (128-boundary) split into scores / values, then split the token
    # axis back out as the *leading* axis so all softmax reductions are cheap VPU ops.
    s0 = kv0[:, :CL].reshape(S0, NBp, CL)   # scores: q (and scale) folded into the weight,
    v0 = kv0[:, CL:].reshape(S0, NBp, CL)   #         replicated across each head's D lanes
    s1 = kv1[:, :CL].reshape(S1, NBp, CL)
    v1 = kv1[:, CL:].reshape(S1, NBp, CL)

    # ---- softmax over the token axis (leading axis); per lane == per (row, head) -----
    m = jnp.maximum(jnp.max(s0, axis=0), jnp.max(s1, axis=0))       # (NBp, CL)
    p0 = jnp.exp(s0 - m[None])
    p1 = jnp.exp(s1 - m[None])
    num = jnp.sum(p0 * v0, axis=0) + jnp.sum(p1 * v1, axis=0)       # (NBp, CL)
    den = jnp.sum(p0, axis=0) + jnp.sum(p1, axis=0)
    x = num * pl.reciprocal(den, approx=approx_recip)               # attention output

    # ---- output projection (proj_drop has p=0 -> identity) ---------------------------
    x = jnp.dot(x.astype(mm_dtype), wproj_ref[...],
                preferred_element_type=jnp.float32) + bproj_ref[...]   # (NBp, PACK*O)

    # ---- x = x + Mlp(LayerNorm(x)); LN stats per 32-lane group via a block-diagonal
    #      averaging matmul (kept in f32 so statistics stay exact on both paths).
    mu = jnp.dot(x, amean_ref[...], preferred_element_type=jnp.float32)
    xc = x - mu
    var = jnp.dot(xc * xc, amean_ref[...], preferred_element_type=jnp.float32)
    y = xc * jax.lax.rsqrt(var + eps) * gamma_ref[...] + beta_ref[...]

    h = jnp.dot(y.astype(mm_dtype), wfc1_ref[...],
                preferred_element_type=jnp.float32) + bfc1_ref[...]
    h = _gelu_exact(h)
    h = jnp.dot(h.astype(mm_dtype), wfc2_ref[...],
                preferred_element_type=jnp.float32) + bfc2_ref[...]

    out_ref[...] = x + h                          # (NBp, 128): unmasked lane-dense store


# ----------------------------------------------------------------------------- wrapper
def multi_kv_attention_pool(tok0, tok1, params, *, num_heads, latent_len=1,
                            block_rows=256, use_bf16=True):
    # TODO(synk): latent_len > 1 needs a per-head (L x S) attention path; this kernel
    # specializes to the module default latent_len = 1 (qk_norm=False, pos_embed='',
    # drop=0.0 as per the module defaults).
    assert latent_len == 1, "fast kernel is specialized to latent_len == 1"
    B, T, S0, C = tok0.shape
    S1 = tok1.shape[2]
    N = B * T
    H = num_heads
    D = C // H
    O = params['wproj'].shape[1]
    scale = float(D) ** -0.5

    # pack PACK consecutive batch*time rows along the 128-lane axis
    PACK = 128 // C if (C <= 128 and 128 % C == 0) else 1
    assert N % PACK == 0, "B*T must be a multiple of the lane-packing factor"
    NB = min(block_rows, N)
    assert N % NB == 0 and NB % (8 * PACK) == 0, \
        "block_rows must divide B*T and be a multiple of 8*PACK"
    NBp = NB // PACK
    cdt = jnp.bfloat16 if use_bf16 else jnp.float32   # matmul-operand dtype

    def bd(w):                      # block-diagonal with PACK copies (per lane-group)
        return block_diag(*([w] * PACK))

    def tile(b):                    # (1, F) -> (1, PACK*F)
        return jnp.tile(b, (1, PACK))

    # ---- hoisted + folded latent-query projection, weight preprocessing (f32) -------
    with jax.default_matmul_precision("highest"):
        q = (params['latent'].reshape(latent_len, C) @ params['wq']
             + params['bq']).reshape(C)                              # grid-invariant
        head = jnp.arange(C) // D
        qfull = (head[:, None] == head[None, :]).astype(jnp.float32) * (q[:, None] * scale)

        wkv_c, bkv_c = [], []
        for mod in range(2):
            wkv, bkv = params[f'wkv{mod}'], params[f'bkv{mod}']
            wk, wv = wkv[:, :C], wkv[:, C:]
            bk, bv = bkv[:, :C], bkv[:, C:]
            # fused [scores | values] weights: result[:, :128]=scores, [:, 128:]=values
            wkv_c.append(jnp.concatenate([bd(wk @ qfull), bd(wv)], axis=1).astype(cdt))
            bkv_c.append(jnp.concatenate([tile(bk @ qfull), tile(bv)], axis=1))

    wproj_bd = bd(params['wproj']).astype(cdt)
    bproj_t = tile(params['bproj'])
    amean = bd(jnp.full((O, O), 1.0 / O, jnp.float32))               # LN group-mean matrix
    gamma_t, beta_t = tile(params['gamma']), tile(params['beta'])
    wfc1_bd = bd(params['wfc1']).astype(cdt)
    bfc1_t = tile(params['bfc1'])
    wfc2_bd = bd(params['wfc2']).astype(cdt)
    bfc2_t = tile(params['bfc2'])

    # token layout: (S_i, N/PACK, PACK*C); lane group g of packed row m = batch-row PACK*m+g
    def pack(tok, S):
        t = tok.reshape(N, S, C).transpose(1, 0, 2).reshape(S, N // PACK, PACK * C)
        return t.astype(cdt)

    t0p, t1p = pack(tok0, S0), pack(tok1, S1)

    weights = [wkv_c[0], bkv_c[0], wkv_c[1], bkv_c[1],
               wproj_bd, bproj_t, amean, gamma_t, beta_t,
               wfc1_bd, bfc1_t, wfc2_bd, bfc2_t]

    kernel = functools.partial(attention_pool_kernel, eps=1e-6, approx_recip=use_bf16)
    tok_spec = lambda S: pl.BlockSpec((S, NBp, PACK * C), lambda i: (0, i, 0))
    full_spec = lambda a: pl.BlockSpec(a.shape, lambda i: (0,) * a.ndim)

    out = pl.pallas_call(
        kernel,
        grid=(N // NB,),
        in_specs=[tok_spec(S0), tok_spec(S1)] + [full_spec(w) for w in weights],
        out_specs=pl.BlockSpec((NBp, PACK * O), lambda i: (i, 0)),
        out_shape=jax.ShapeDtypeStruct((N // PACK, PACK * O), jnp.float32),
        compiler_params=pltpu.CompilerParams(dimension_semantics=("parallel",)),
    )(t0p, t1p, *weights)

    # (N/PACK, PACK*O) -> (B, T, 1, O) is a free row-major reshape (exact un-packing).
    return out.reshape(B, T, latent_len, O)


# ----------------------------------------------------------------------------- reference (pure JAX, mirrors the PyTorch forward)
def reference_forward(tok0, tok1, params, *, num_heads, latent_len):
    B, T, S0, C = tok0.shape
    S1 = tok1.shape[2]
    N = B * T
    H, L = num_heads, latent_len
    D = C // H
    O = params['wproj'].shape[1]

    with jax.default_matmul_precision("highest"):
        t0 = tok0.reshape(N, S0, C)
        t1 = tok1.reshape(N, S1, C)
        kv0 = (t0 @ params['wkv0'] + params['bkv0']).reshape(N, S0, 2, H, D)
        kv1 = (t1 @ params['wkv1'] + params['bkv1']).reshape(N, S1, 2, H, D)
        kv = jnp.concatenate([kv0, kv1], axis=1).transpose(2, 0, 3, 1, 4)   # (2,N,H,S,D)
        k, v = kv[0], kv[1]

        q = (params['latent'] @ params['wq'] + params['bq']).reshape(1, L, H, D)
        q = jnp.broadcast_to(q, (N, L, H, D)).transpose(0, 2, 1, 3)         # (N,H,L,D)

        scale = D ** -0.5
        attn = jax.nn.softmax((q * scale) @ jnp.swapaxes(k, -1, -2), axis=-1)
        x = (attn @ v).transpose(0, 2, 1, 3).reshape(N, L, C)
        x = x @ params['wproj'] + params['bproj']

        mu = x.mean(-1, keepdims=True)
        var = ((x - mu) ** 2).mean(-1, keepdims=True)
        y = (x - mu) / jnp.sqrt(var + 1e-6) * params['gamma'] + params['beta']
        h = _gelu_exact(y @ params['wfc1'] + params['bfc1']) @ params['wfc2'] + params['bfc2']
        x = x + h
    return x.reshape(B, T, L, O)


# ----------------------------------------------------------------------------- params
def init_params(key, C, O, H, L, hidden):
    ks = jax.random.split(key, 13)

    def w(k, fi, fo):
        return jax.random.normal(k, (fi, fo), jnp.float32) / jnp.sqrt(fi)

    def b(k, fo):
        return jax.random.normal(k, (1, fo), jnp.float32) * 0.02

    return dict(
        wkv0=w(ks[0], C, 2 * C), bkv0=b(ks[1], 2 * C),
        wkv1=w(ks[2], C, 2 * C), bkv1=b(ks[3], 2 * C),
        wq=w(ks[4], C, C), bq=b(ks[5], C),
        latent=jax.random.normal(ks[6], (L, C), jnp.float32) * (C ** -0.5),
        wproj=w(ks[7], C, O), bproj=b(ks[8], O),
        gamma=jnp.ones((1, O), jnp.float32), beta=jnp.zeros((1, O), jnp.float32),
        wfc1=w(ks[9], O, hidden), bfc1=b(ks[10], hidden),
        wfc2=w(ks[11], hidden, O), bfc2=b(ks[12], O),
    )


# ----------------------------------------------------------------------------- main
if __name__ == "__main__":
    # module config: in_features = embed_dim = out_features = 32, num_heads = 4,
    # latent_len = 1, num_modalities = 2, mlp_ratio = 4.0, qkv_bias = True,
    # qk_norm = False, pos_embed = '', drop = 0.0
    B, T = 2, 256                 # N = B*T = 512 rows -> 2 parallel grid steps at NB=256
    C, O, H, L = 32, 32, 4, 1
    hidden = int(O * 4.0)
    S0, S1 = 3, 5                 # tokens per modality

    key = jax.random.PRNGKey(0)
    k_in0, k_in1, k_p = jax.random.split(key, 3)
    tok0 = jax.random.normal(k_in0, (B, T, S0, C), jnp.float32)
    tok1 = jax.random.normal(k_in1, (B, T, S1, C), jnp.float32)
    params = init_params(k_p, C, O, H, L, hidden)

    ref = reference_forward(tok0, tok1, params, num_heads=H, latent_len=L)

    # exact path: f32 MXU operands, exact reciprocal -> tight parity with the module math
    out_f32 = multi_kv_attention_pool(tok0, tok1, params, num_heads=H, latent_len=L,
                                      block_rows=256, use_bf16=False)
    out_f32 = jax.block_until_ready(out_f32)
    assert out_f32.shape == (B, T, L, O)
    np.testing.assert_allclose(np.asarray(out_f32), np.asarray(ref), rtol=1e-4, atol=1e-4)

    # fast path: bf16 MXU operands (f32 accumulate), EUP approx reciprocal
    out_bf16 = multi_kv_attention_pool(tok0, tok1, params, num_heads=H, latent_len=L,
                                       block_rows=256, use_bf16=True)
    out_bf16 = jax.block_until_ready(out_bf16)
    assert out_bf16.shape == (B, T, L, O)
    rel_l2 = float(jnp.linalg.norm(out_bf16 - ref) / jnp.linalg.norm(ref))
    assert rel_l2 < 5e-2, f"bf16 fast path relative L2 error too large: {rel_l2}"

    print("KERNEL_OK")
</pallas_src>

<mosaic_0001>
module attributes {stable_mosaic.version = 11 : i64} {
  func.func @attention_pool_kernel(%arg0: i32, %arg1: memref<3x64x128xf32, #tpu.memory_space<vmem>>, %arg2: memref<5x64x128xf32, #tpu.memory_space<vmem>>, %arg3: memref<128x256xf32, #tpu.memory_space<vmem>>, %arg4: memref<1x256xf32, #tpu.memory_space<vmem>>, %arg5: memref<128x256xf32, #tpu.memory_space<vmem>>, %arg6: memref<1x256xf32, #tpu.memory_space<vmem>>, %arg7: memref<128x128xf32, #tpu.memory_space<vmem>>, %arg8: memref<1x128xf32, #tpu.memory_space<vmem>>, %arg9: memref<128x128xf32, #tpu.memory_space<vmem>>, %arg10: memref<1x128xf32, #tpu.memory_space<vmem>>, %arg11: memref<1x128xf32, #tpu.memory_space<vmem>>, %arg12: memref<128x512xf32, #tpu.memory_space<vmem>>, %arg13: memref<1x512xf32, #tpu.memory_space<vmem>>, %arg14: memref<512x128xf32, #tpu.memory_space<vmem>>, %arg15: memref<1x128xf32, #tpu.memory_space<vmem>>, %arg16: memref<64x128xf32, #tpu.memory_space<vmem>>) attributes {dimension_semantics = [#tpu.dimension_semantics<parallel>], iteration_bounds = array<i64: 2>, scalar_prefetch = 0 : i64, scratch_operands = 0 : i64, tpu.core_type = #tpu.core_type<tc>, window_params = [{transform_indices = @transform_0, window_bounds = array<i64: 3, 64, 128>}, {transform_indices = @transform_1, window_bounds = array<i64: 5, 64, 128>}, {pipeline_mode = #tpu.pipeline_mode<synchronous>, transform_indices = @transform_2, window_bounds = array<i64: 128, 256>}, {pipeline_mode = #tpu.pipeline_mode<synchronous>, transform_indices = @transform_3, window_bounds = array<i64: 1, 256>}, {pipeline_mode = #tpu.pipeline_mode<synchronous>, transform_indices = @transform_4, window_bounds = array<i64: 128, 256>}, {pipeline_mode = #tpu.pipeline_mode<synchronous>, transform_indices = @transform_5, window_bounds = array<i64: 1, 256>}, {pipeline_mode = #tpu.pipeline_mode<synchronous>, transform_indices = @transform_6, window_bounds = array<i64: 128, 128>}, {pipeline_mode = #tpu.pipeline_mode<synchronous>, transform_indices = @transform_7, window_bounds = array<i64: 1, 128>}, {pipeline_mode = #tpu.pipeline_mode<synchronous>, transform_indices = @transform_8, window_bounds = array<i64: 128, 128>}, {pipeline_mode = #tpu.pipeline_mode<synchronous>, transform_indices = @transform_9, window_bounds = array<i64: 1, 128>}, {pipeline_mode = #tpu.pipeline_mode<synchronous>, transform_indices = @transform_10, window_bounds = array<i64: 1, 128>}, {pipeline_mode = #tpu.pipeline_mode<synchronous>, transform_indices = @transform_11, window_bounds = array<i64: 128, 512>}, {pipeline_mode = #tpu.pipeline_mode<synchronous>, transform_indices = @transform_12, window_bounds = array<i64: 1, 512>}, {pipeline_mode = #tpu.pipeline_mode<synchronous>, transform_indices = @transform_13, window_bounds = array<i64: 512, 128>}, {pipeline_mode = #tpu.pipeline_mode<synchronous>, transform_indices = @transform_14, window_bounds = array<i64: 1, 128>}, {transform_indices = @transform_15, window_bounds = array<i64: 64, 128>}]} {
    %c0 = arith.constant 0 : index
    %c0_0 = arith.constant 0 : index
    %c0_1 = arith.constant 0 : index
    %0 = vector.load %arg1[%c0, %c0_0, %c0_1] : memref<3x64x128xf32, #tpu.memory_space<vmem>>, vector<3x64x128xf32>
    %1 = vector.shape_cast %0 : vector<3x64x128xf32> to vector<192x128xf32>
    %c0_2 = arith.constant 0 : index
    %c0_3 = arith.constant 0 : index
    %c0_4 = arith.constant 0 : index
    %2 = vector.load %arg2[%c0_2, %c0_3, %c0_4] : memref<5x64x128xf32, #tpu.memory_space<vmem>>, vector<5x64x128xf32>
    %3 = vector.shape_cast %2 : vector<5x64x128xf32> to vector<320x128xf32>
    %c0_5 = arith.constant 0 : index
    %c0_6 = arith.constant 0 : index
    %4 = vector.load %arg3[%c0_5, %c0_6] : memref<128x256xf32, #tpu.memory_space<vmem>>, vector<128x256xf32>
    %cst = arith.constant dense<0.000000e+00> : vector<192x256xf32>
    %5 = tpu.matmul %1, %4, %cst {dimension_numbers = #tpu.dot_dimension_numbers<[1], [0], [0], [1], [0, 0, 1, 1], [], []>} : vector<192x128xf32>, vector<128x256xf32>, vector<192x256xf32> -> vector<192x256xf32>
    %c0_7 = arith.constant 0 : index
    %c0_8 = arith.constant 0 : index
    %6 = vector.load %arg4[%c0_7, %c0_8] : memref<1x256xf32, #tpu.memory_space<vmem>>, vector<1x256xf32>
    %7 = vector.broadcast %6 : vector<1x256xf32> to vector<192x256xf32>
    %8 = arith.addf %5, %7 : vector<192x256xf32>
    %c0_9 = arith.constant 0 : index
    %c0_10 = arith.constant 0 : index
    %9 = vector.load %arg5[%c0_9, %c0_10] : memref<128x256xf32, #tpu.memory_space<vmem>>, vector<128x256xf32>
    %cst_11 = arith.constant dense<0.000000e+00> : vector<320x256xf32>
    %10 = tpu.matmul %3, %9, %cst_11 {dimension_numbers = #tpu.dot_dimension_numbers<[1], [0], [0], [1], [0, 0, 1, 1], [], []>} : vector<320x128xf32>, vector<128x256xf32>, vector<320x256xf32> -> vector<320x256xf32>
    %c0_12 = arith.constant 0 : index
    %c0_13 = arith.constant 0 : index
    %11 = vector.load %arg6[%c0_12, %c0_13] : memref<1x256xf32, #tpu.memory_space<vmem>>, vector<1x256xf32>
    %12 = vector.broadcast %11 : vector<1x256xf32> to vector<320x256xf32>
    %13 = arith.addf %10, %12 : vector<320x256xf32>
    %14 = vector.extract_strided_slice %8 {offsets = [0, 0], sizes = [192, 128], strides = [1, 1]} : vector<192x256xf32> to vector<192x128xf32>
    %15 = vector.shape_cast %14 : vector<192x128xf32> to vector<3x64x128xf32>
    %16 = vector.extract_strided_slice %8 {offsets = [0, 128], sizes = [192, 128], strides = [1, 1]} : vector<192x256xf32> to vector<192x128xf32>
    %17 = vector.shape_cast %16 : vector<192x128xf32> to vector<3x64x128xf32>
    %18 = vector.extract_strided_slice %13 {offsets = [0, 0], sizes = [320, 128], strides = [1, 1]} : vector<320x256xf32> to vector<320x128xf32>
    %19 = vector.shape_cast %18 : vector<320x128xf32> to vector<5x64x128xf32>
    %20 = vector.extract_strided_slice %13 {offsets = [0, 128], sizes = [320, 128], strides = [1, 1]} : vector<320x256xf32> to vector<320x128xf32>
    %21 = vector.shape_cast %20 : vector<320x128xf32> to vector<5x64x128xf32>
    %cst_14 = arith.constant dense<0xFF800000> : vector<64x128xf32>
    %22 = vector.multi_reduction <maximumf>, %15, %cst_14 [0] : vector<3x64x128xf32> to vector<64x128xf32>
    %cst_15 = arith.constant dense<0xFF800000> : vector<64x128xf32>
    %23 = vector.multi_reduction <maximumf>, %19, %cst_15 [0] : vector<5x64x128xf32> to vector<64x128xf32>
    %24 = arith.maximumf %22, %23 : vector<64x128xf32>
    %25 = vector.shape_cast %24 : vector<64x128xf32> to vector<1x64x128xf32>
    %26 = vector.broadcast %25 : vector<1x64x128xf32> to vector<3x64x128xf32>
    %27 = arith.subf %15, %26 : vector<3x64x128xf32>
    %28 = math.exp %27 : vector<3x64x128xf32>
    %29 = vector.shape_cast %24 : vector<64x128xf32> to vector<1x64x128xf32>
    %30 = vector.broadcast %29 : vector<1x64x128xf32> to vector<5x64x128xf32>
    %31 = arith.subf %19, %30 : vector<5x64x128xf32>
    %32 = math.exp %31 : vector<5x64x128xf32>
    %33 = arith.mulf %28, %17 : vector<3x64x128xf32>
    %cst_16 = arith.constant dense<0.000000e+00> : vector<64x128xf32>
    %34 = vector.multi_reduction <add>, %33, %cst_16 [0] : vector<3x64x128xf32> to vector<64x128xf32>
    %35 = arith.mulf %32, %21 : vector<5x64x128xf32>
    %cst_17 = arith.constant dense<0.000000e+00> : vector<64x128xf32>
    %36 = vector.multi_reduction <add>, %35, %cst_17 [0] : vector<5x64x128xf32> to vector<64x128xf32>
    %37 = arith.addf %34, %36 : vector<64x128xf32>
    %cst_18 = arith.constant dense<0.000000e+00> : vector<64x128xf32>
    %38 = vector.multi_reduction <add>, %28, %cst_18 [0] : vector<3x64x128xf32> to vector<64x128xf32>
    %cst_19 = arith.constant dense<0.000000e+00> : vector<64x128xf32>
    %39 = vector.multi_reduction <add>, %32, %cst_19 [0] : vector<5x64x128xf32> to vector<64x128xf32>
    %40 = arith.addf %38, %39 : vector<64x128xf32>
    %41 = tpu.reciprocal %40 : vector<64x128xf32> -> vector<64x128xf32>
    %42 = arith.mulf %37, %41 : vector<64x128xf32>
    %c0_20 = arith.constant 0 : index
    %c0_21 = arith.constant 0 : index
    %43 = vector.load %arg7[%c0_20, %c0_21] : memref<128x128xf32, #tpu.memory_space<vmem>>, vector<128x128xf32>
    %cst_22 = arith.constant dense<0.000000e+00> : vector<64x128xf32>
    %44 = tpu.matmul %42, %43, %cst_22 {dimension_numbers = #tpu.dot_dimension_numbers<[1], [0], [0], [1], [0, 0, 1, 1], [], []>} : vector<64x128xf32>, vector<128x128xf32>, vector<64x128xf32> -> vector<64x128xf32>
    %c0_23 = arith.constant 0 : index
    %c0_24 = arith.constant 0 : index
    %45 = vector.load %arg8[%c0_23, %c0_24] : memref<1x128xf32, #tpu.memory_space<vmem>>, vector<1x128xf32>
    %46 = vector.broadcast %45 : vector<1x128xf32> to vector<64x128xf32>
    %47 = arith.addf %44, %46 : vector<64x128xf32>
    %c0_25 = arith.constant 0 : index
    %c0_26 = arith.constant 0 : index
    %48 = vector.load %arg9[%c0_25, %c0_26] : memref<128x128xf32, #tpu.memory_space<vmem>>, vector<128x128xf32>
    %cst_27 = arith.constant dense<0.000000e+00> : vector<64x128xf32>
    %49 = tpu.matmul %47, %48, %cst_27 {dimension_numbers = #tpu.dot_dimension_numbers<[1], [0], [0], [1], [0, 0, 1, 1], [], []>} : vector<64x128xf32>, vector<128x128xf32>, vector<64x128xf32> -> vector<64x128xf32>
    %50 = arith.subf %47, %49 : vector<64x128xf32>
    %51 = arith.mulf %50, %50 : vector<64x128xf32>
    %c0_28 = arith.constant 0 : index
    %c0_29 = arith.constant 0 : index
    %52 = vector.load %arg9[%c0_28, %c0_29] : memref<128x128xf32, #tpu.memory_space<vmem>>, vector<128x128xf32>
    %cst_30 = arith.constant dense<0.000000e+00> : vector<64x128xf32>
    %53 = tpu.matmul %51, %52, %cst_30 {dimension_numbers = #tpu.dot_dimension_numbers<[1], [0], [0], [1], [0, 0, 1, 1], [], []>} : vector<64x128xf32>, vector<128x128xf32>, vector<64x128xf32> -> vector<64x128xf32>
    %cst_31 = arith.constant 9.99999997E-7 : f32
    %54 = vector.broadcast %cst_31 : f32 to vector<64x128xf32>
    %55 = arith.addf %53, %54 : vector<64x128xf32>
    %56 = math.rsqrt %55 : vector<64x128xf32>
    %57 = arith.mulf %50, %56 : vector<64x128xf32>
    %c0_32 = arith.constant 0 : index
    %c0_33 = arith.constant 0 : index
    %58 = vector.load %arg10[%c0_32, %c0_33] : memref<1x128xf32, #tpu.memory_space<vmem>>, vector<1x128xf32>
    %59 = vector.broadcast %58 : vector<1x128xf32> to vector<64x128xf32>
    %60 = arith.mulf %57, %59 : vector<64x128xf32>
    %c0_34 = arith.constant 0 : index
    %c0_35 = arith.constant 0 : index
    %61 = vector.load %arg11[%c0_34, %c0_35] : memref<1x128xf32, #tpu.memory_space<vmem>>, vector<1x128xf32>
    %62 = vector.broadcast %61 : vector<1x128xf32> to vector<64x128xf32>
    %63 = arith.addf %60, %62 : vector<64x128xf32>
    %c0_36 = arith.constant 0 : index
    %c0_37 = arith.constant 0 : index
    %64 = vector.load %arg12[%c0_36, %c0_37] : memref<128x512xf32, #tpu.memory_space<vmem>>, vector<128x512xf32>
    %cst_38 = arith.constant dense<0.000000e+00> : vector<64x512xf32>
    %65 = tpu.matmul %63, %64, %cst_38 {dimension_numbers = #tpu.dot_dimension_numbers<[1], [0], [0], [1], [0, 0, 1, 1], [], []>} : vector<64x128xf32>, vector<128x512xf32>, vector<64x512xf32> -> vector<64x512xf32>
    %c0_39 = arith.constant 0 : index
    %c0_40 = arith.constant 0 : index
    %66 = vector.load %arg13[%c0_39, %c0_40] : memref<1x512xf32, #tpu.memory_space<vmem>>, vector<1x512xf32>
    %67 = vector.broadcast %66 : vector<1x512xf32> to vector<64x512xf32>
    %68 = arith.addf %65, %67 : vector<64x512xf32>
    %cst_41 = arith.constant 5.000000e-01 : f32
    %69 = vector.broadcast %cst_41 : f32 to vector<64x512xf32>
    %70 = arith.mulf %69, %68 : vector<64x512xf32>
    %cst_42 = arith.constant 0.707106769 : f32
    %71 = vector.broadcast %cst_42 : f32 to vector<64x512xf32>
    %72 = arith.mulf %68, %71 : vector<64x512xf32>
    %cst_43 = arith.constant 0.000000e+00 : f32
    %73 = vector.broadcast %cst_43 : f32 to vector<64x512xf32>
    %74 = arith.cmpf olt, %72, %73 : vector<64x512xf32>
    %cst_44 = arith.constant -1.000000e+00 : f32
    %cst_45 = arith.constant 1.000000e+00 : f32
    %75 = vector.broadcast %cst_44 : f32 to vector<64x512xf32>
    %76 = vector.broadcast %cst_45 : f32 to vector<64x512xf32>
    %77 = arith.select %74, %75, %76 : vector<64x512xi1>, vector<64x512xf32>
    %78 = math.absf %72 : vector<64x512xf32>
    %cst_46 = arith.constant 0.327591091 : f32
    %79 = vector.broadcast %cst_46 : f32 to vector<64x512xf32>
    %80 = arith.mulf %79, %78 : vector<64x512xf32>
    %cst_47 = arith.constant 1.000000e+00 : f32
    %81 = vector.broadcast %cst_47 : f32 to vector<64x512xf32>
    %82 = arith.addf %81, %80 : vector<64x512xf32>
    %cst_48 = arith.constant 1.000000e+00 : f32
    %83 = vector.broadcast %cst_48 : f32 to vector<64x512xf32>
    %84 = arith.divf %83, %82 : vector<64x512xf32>
    %cst_49 = arith.constant 1.06140542 : f32
    %85 = vector.broadcast %cst_49 : f32 to vector<64x512xf32>
    %86 = arith.mulf %85, %84 : vector<64x512xf32>
    %cst_50 = arith.constant -1.45315206 : f32
    %87 = vector.broadcast %cst_50 : f32 to vector<64x512xf32>
    %88 = arith.addf %86, %87 : vector<64x512xf32>
    %89 = arith.mulf %88, %84 : vector<64x512xf32>
    %cst_51 = arith.constant 1.42141378 : f32
    %90 = vector.broadcast %cst_51 : f32 to vector<64x512xf32>
    %91 = arith.addf %89, %90 : vector<64x512xf32>
    %92 = arith.mulf %91, %84 : vector<64x512xf32>
    %cst_52 = arith.constant -0.284496725 : f32
    %93 = vector.broadcast %cst_52 : f32 to vector<64x512xf32>
    %94 = arith.addf %92, %93 : vector<64x512xf32>
    %95 = arith.mulf %94, %84 : vector<64x512xf32>
    %cst_53 = arith.constant 0.254829586 : f32
    %96 = vector.broadcast %cst_53 : f32 to vector<64x512xf32>
    %97 = arith.addf %95, %96 : vector<64x512xf32>
    %98 = arith.mulf %97, %84 : vector<64x512xf32>
    %cst_54 = arith.constant 0.000000e+00 : f32
    %99 = vector.broadcast %cst_54 : f32 to vector<64x512xf32>
    %100 = arith.subf %99, %78 : vector<64x512xf32>
    %101 = arith.mulf %100, %78 : vector<64x512xf32>
    %102 = math.exp %101 : vector<64x512xf32>
    %103 = arith.mulf %98, %102 : vector<64x512xf32>
    %cst_55 = arith.constant 1.000000e+00 : f32
    %104 = vector.broadcast %cst_55 : f32 to vector<64x512xf32>
    %105 = arith.subf %104, %103 : vector<64x512xf32>
    %106 = arith.mulf %77, %105 : vector<64x512xf32>
    %cst_56 = arith.constant 1.000000e+00 : f32
    %107 = vector.broadcast %cst_56 : f32 to vector<64x512xf32>
    %108 = arith.addf %107, %106 : vector<64x512xf32>
    %109 = arith.mulf %70, %108 : vector<64x512xf32>
    %c0_57 = arith.constant 0 : index
    %c0_58 = arith.constant 0 : index
    %110 = vector.load %arg14[%c0_57, %c0_58] : memref<512x128xf32, #tpu.memory_space<vmem>>, vector<512x128xf32>
    %cst_59 = arith.constant dense<0.000000e+00> : vector<64x128xf32>
    %111 = tpu.matmul %109, %110, %cst_59 {dimension_numbers = #tpu.dot_dimension_numbers<[1], [0], [0], [1], [0, 0, 1, 1], [], []>} : vector<64x512xf32>, vector<512x128xf32>, vector<64x128xf32> -> vector<64x128xf32>
    %c0_60 = arith.constant 0 : index
    %c0_61 = arith.constant 0 : index
    %112 = vector.load %arg15[%c0_60, %c0_61] : memref<1x128xf32, #tpu.memory_space<vmem>>, vector<1x128xf32>
    %113 = vector.broadcast %112 : vector<1x128xf32> to vector<64x128xf32>
    %114 = arith.addf %111, %113 : vector<64x128xf32>
    %115 = arith.addf %47, %114 : vector<64x128xf32>
    %c0_62 = arith.constant 0 : index
    %c0_63 = arith.constant 0 : index
    %116 = vector.load %arg16[%c0_62, %c0_63] : memref<64x128xf32, #tpu.memory_space<vmem>>, vector<64x128xf32>
    tpu.vector_store %arg16[%c0_62, %c0_63], %115 {strides = array<i32>} : memref<64x128xf32, #tpu.memory_space<vmem>>, vector<64x128xf32>,
    return
  }
  func.func @transform_0(%arg0: i32) -> (i32, i32, i32) {
    %c0_i32 = arith.constant 0 : i32
    %c0_i32_0 = arith.constant 0 : i32
    %c0_i32_1 = arith.constant 0 : i32
    return %c0_i32, %arg0, %c0_i32_0 : i32, i32, i32
  }
  func.func @transform_1(%arg0: i32) -> (i32, i32, i32) {
    %c0_i32 = arith.constant 0 : i32
    %c0_i32_0 = arith.constant 0 : i32
    %c0_i32_1 = arith.constant 0 : i32
    return %c0_i32, %arg0, %c0_i32_0 : i32, i32, i32
  }
  func.func @transform_2(%arg0: i32) -> (i32, i32) {
    %c0_i32 = arith.constant 0 : i32
    %c0_i32_0 = arith.constant 0 : i32
    %c0_i32_1 = arith.constant 0 : i32
    return %c0_i32, %c0_i32_0 : i32, i32
  }
  func.func @transform_3(%arg0: i32) -> (i32, i32) {
    %c0_i32 = arith.constant 0 : i32
    %c0_i32_0 = arith.constant 0 : i32
    %c0_i32_1 = arith.constant 0 : i32
    return %c0_i32, %c0_i32_0 : i32, i32
  }
  func.func @transform_4(%arg0: i32) -> (i32, i32) {
    %c0_i32 = arith.constant 0 : i32
    %c0_i32_0 = arith.constant 0 : i32
    %c0_i32_1 = arith.constant 0 : i32
    return %c0_i32, %c0_i32_0 : i32, i32
  }
  func.func @transform_5(%arg0: i32) -> (i32, i32) {
    %c0_i32 = arith.constant 0 : i32
    %c0_i32_0 = arith.constant 0 : i32
    %c0_i32_1 = arith.constant 0 : i32
    return %c0_i32, %c0_i32_0 : i32, i32
  }
  func.func @transform_6(%arg0: i32) -> (i32, i32) {
    %c0_i32 = arith.constant 0 : i32
    %c0_i32_0 = arith.constant 0 : i32
    %c0_i32_1 = arith.constant 0 : i32
    return %c0_i32, %c0_i32_0 : i32, i32
  }
  func.func @transform_7(%arg0: i32) -> (i32, i32) {
    %c0_i32 = arith.constant 0 : i32
    %c0_i32_0 = arith.constant 0 : i32
    %c0_i32_1 = arith.constant 0 : i32
    return %c0_i32, %c0_i32_0 : i32, i32
  }
  func.func @transform_8(%arg0: i32) -> (i32, i32) {
    %c0_i32 = arith.constant 0 : i32
    %c0_i32_0 = arith.constant 0 : i32
    %c0_i32_1 = arith.constant 0 : i32
    return %c0_i32, %c0_i32_0 : i32, i32
  }
  func.func @transform_9(%arg0: i32) -> (i32, i32) {
    %c0_i32 = arith.constant 0 : i32
    %c0_i32_0 = arith.constant 0 : i32
    %c0_i32_1 = arith.constant 0 : i32
    return %c0_i32, %c0_i32_0 : i32, i32
  }
  func.func @transform_10(%arg0: i32) -> (i32, i32) {
    %c0_i32 = arith.constant 0 : i32
    %c0_i32_0 = arith.constant 0 : i32
    %c0_i32_1 = arith.constant 0 : i32
    return %c0_i32, %c0_i32_0 : i32, i32
  }
  func.func @transform_11(%arg0: i32) -> (i32, i32) {
    %c0_i32 = arith.constant 0 : i32
    %c0_i32_0 = arith.constant 0 : i32
    %c0_i32_1 = arith.constant 0 : i32
    return %c0_i32, %c0_i32_0 : i32, i32
  }
  func.func @transform_12(%arg0: i32) -> (i32, i32) {
    %c0_i32 = arith.constant 0 : i32
    %c0_i32_0 = arith.constant 0 : i32
    %c0_i32_1 = arith.constant 0 : i32
    return %c0_i32, %c0_i32_0 : i32, i32
  }
  func.func @transform_13(%arg0: i32) -> (i32, i32) {
    %c0_i32 = arith.constant 0 : i32
    %c0_i32_0 = arith.constant 0 : i32
    %c0_i32_1 = arith.constant 0 : i32
    return %c0_i32, %c0_i32_0 : i32, i32
  }
  func.func @transform_14(%arg0: i32) -> (i32, i32) {
    %c0_i32 = arith.constant 0 : i32
    %c0_i32_0 = arith.constant 0 : i32
    %c0_i32_1 = arith.constant 0 : i32
    return %c0_i32, %c0_i32_0 : i32, i32
  }
  func.func @transform_15(%arg0: i32) -> (i32, i32) {
    %c0_i32 = arith.constant 0 : i32
    %c0_i32_0 = arith.constant 0 : i32
    return %arg0, %c0_i32 : i32, i32
  }
}

</mosaic_0001>

<bundles_post_ra>
// kernel: tpu_custom_call.1
= control target key start
LH: loop header
LB: loop body
LE: loop exit
PB: predicated region body
PF: predicated region fallthrough
CT: control target
= control target key end

     0   :  { %s8479_s0 = inlined_call_operand.hbm [shape: f32[3,128,128], index: 0, kind: input, shape index: {}]   ;;  %s8480_s1 = inlined_call_operand.hbm [shape: f32[5,128,128], index: 1, kind: input, shape index: {}]   ;;  %s8481_s2 = inlined_call_operand.hbm [shape: f32[128,256], index: 2, kind: input, shape index: {}]   ;;  %s8482_s3 = inlined_call_operand.vmem [shape: f32[1,256], index: 3, kind: input, shape index: {}]   ;;  %s8483_s4 = inlined_call_operand.hbm [shape: f32[128,256], index: 4, kind: input, shape index: {}]   ;;  %s8484_s5 = inlined_call_operand.hbm [shape: f32[1,256], index: 5, kind: input, shape index: {}]   ;;  %s8485_s6 = inlined_call_operand.hbm [shape: f32[128,128], index: 6, kind: input, shape index: {}]   ;;  %s8486_s7 = inlined_call_operand.vmem [shape: f32[1,128], index: 7, kind: input, shape index: {}]   ;;  %s8487_s8 = inlined_call_operand.hbm [shape: f32[128,128], index: 8, kind: input, shape index: {}]   ;;  %s8488_s9 = inlined_call_operand.vmem [shape: f32[1,128], index: 9, kind: input, shape index: {}]   ;;  %s8489_s10 = inlined_call_operand.vmem [shape: f32[1,128], index: 10, kind: input, shape index: {}]   ;;  %s8490_s11 = inlined_call_operand.hbm [shape: f32[128,512], index: 11, kind: input, shape index: {}]   ;;  %s8491_s12 = inlined_call_operand.vmem [shape: f32[1,512], index: 12, kind: input, shape index: {}]   ;;  %s8492_s13 = inlined_call_operand.hbm [shape: f32[512,128], index: 13, kind: input, shape index: {}]   ;;  %s8493_s14 = inlined_call_operand.vmem [shape: f32[1,128], index: 14, kind: input, shape index: {}]   ;;  %s8494_s15 = inlined_call_operand.hbm [shape: f32[128,128], index: 15, kind: output, shape index: {}]  }
   0x1   :  { %8592 = sst [smem:[#allocation116_spill]] %s8482_s3 }
   0x2   :  { %8593 = sst [smem:[#allocation117_spill]] %s8483_s4 }
   0x3   :  { %8594 = sst [smem:[#allocation118_spill]] %s8485_s6 }
   0x4   :  { %8595 = sst [smem:[#allocation119_spill]] %s8486_s7 }
   0x5   :  { %8596 = sst [smem:[#allocation120_spill]] %s8488_s9 }
   0x6   :  { %8597 = sst [smem:[#allocation121_spill]] %s8489_s10 }
   0x7   :  { %8598 = sst [smem:[#allocation122_spill]] %s8490_s11 }
   0x8   :  { %8599 = sst [smem:[#allocation123_spill]] %s8491_s12 }
   0x9   :  { %8600 = sst [smem:[#allocation124_spill]] %s8493_s14 }
   0xa   :  { %8601 = sst [smem:[#allocation125_spill]] %s8494_s15 }
   0xb   :  { %20 = vsyncpa [#allocation3], 0 }
   0xc   :  { %22 = vsyncpa [#allocation3 + $0x1], 0 }
   0xd   :  { %23 = vsyncpa [#allocation6], 0 }
   0xe   :  { %25 = vsyncpa [#allocation6 + $0x1], 0 }
   0xf   :  { %26 = vsyncpa [#allocation9], 0 }
  0x10   :  { %27 = vsyncpa [#allocation12], 0 }
  0x11   :  { %28 = vsyncpa [#allocation15], 0 }
  0x12   :  { %29 = vsyncpa [#allocation4], 0 }
  0x13   :  { %31 = vsyncpa [#allocation4 + $0x1], 0  ;;  %s5021_s18 = smov 0   ;;  %s5023_s19 = smov 0  }
  0x14   :  { %s5025_s20 = smov 0   ;;  %s5027_s21 = smov 0  }
  0x15 LB: > { %8602 = sst [smem:[#allocation31_spill]] %s4901_s18  ;;  %s5042_s22 = sadd.s32 4294967295, %s4913_s21   ;;  %s4913_s21 = sphi %s5027_s21, %s9087_s21   ;;  %s4909_s20 = sphi %s5025_s20, %s9091_s20   ;;  %s4905_s19 = sphi %s5023_s19, %s9090_s19   ;;  %s4901_s18 = sphi %s5021_s18, %s9089_s18  }
  0x16   : > { %s4090_s23 = sadd.s32 4294967294, %s4913_s21   ;;  %s5046_s24 = sadd.s32 1, %s4913_s21  }
  0x17   : > { %8603 = sst [smem:[#allocation32_spill]] %s5046_s24  ;;  %s44_s25 = sadd.s32 1, %s4909_s20 }
  0x18   : > { %s41_s26 = ssub.s32 %s4913_s21, %s5046_s24  ;;  %p51_p0 = scmp.ne.s32.totalorder %s4909_s20, %s4905_s19 }
  0x19   : > { %p42_p1 = scmp.eq.s32.totalorder %s41_s26, 0  ;;  %p52_p2 = scmp.eq.s32.totalorder %s4913_s21, 0 }
  0x1a   : > { %p57_p3 = scmp.ne.s32.totalorder %s4905_s19, %s4901_s18  ;;  %p58_p4 = scmp.eq.s32.totalorder %s5042_s22, 0 }
  0x1b   : > { %s5058_s27 = scalar_select %p42_p1, %s4909_s20, %s44_s25  }
  0x1c   : > { %p5060_p5 = por %p52_p2, %p51_p0  ;;  %p5066_p6 = por %p58_p4, %p57_p3 }
  0x1d   : > { %8604 = sst [smem:[#allocation33_spill]] %s5058_s27  ;;  %p380_p7 = scmp.eq.s32.totalorder %s5042_s22, 1 }
  0x1e   : > { %p386_p8 = scmp.eq.s32.totalorder %s4090_s23, 1  ;;  %p4091_p9 = scmp.ge.s32.totalorder %s4913_s21, 1 }
  0x1f   : > { %p393_p10 = scmp.lt.s32.totalorder %s4913_s21, 3  ;;  %p5073_p11 = por %p380_p7, %p51_p0 }
  0x20   : > { %p5077_p12 = por %p386_p8, %p57_p3  ;;  %s8612_s4 = sld [smem:[#allocation117_spill]] }
  0x21   : > { %s8607_s30 = scalar_select %p5073_p11, 1, 0 }
  0x22   : > { %s8609_s16 = scalar_select %p5077_p12, 1, 0 }
  0x23   : > { %8608 = sst [smem:[#allocation34_spill]] %s8607_s30  ;;  %p5081_p13 = pnand %p4091_p9, %p393_p10 }
  0x24   : > { %8610 = sst [smem:[#allocation35_spill]] %s8609_s16  ;;  %s4915_s24 = smov [#allocation8]  }
  0x25   : > { %p4225_p1 = pneg %p5081_p13  ;;  %s423_s16 = sshll.u32 %s4915_s24, 4  ;;  %s424_s16 = int_to_ptr.vmem [resolvable:$true] %s423_s16 }
  0x26   : > { %s421_s23 = sshll.u32 %s8612_s4, 4  ;;  %s8614_s6 = sld [smem:[#allocation118_spill]]  ;;  %s422_s23 = int_to_ptr.hbm [resolvable:$true] %s421_s23 }
  0x27   : > { %p5092_p0 = pnand %p4225_p1, %p58_p4  ;;  %s4916_s14 = smov 256  }
  0x28   : > { %s4917_s25 = smov 16   ;;  %s4918_s26 = smov [#allocation11]  }
  0x29   : > { %4231 = dma.hbm_to_vmem [thread:$0]  (!%p5092_p0), %s422_s23, 4096, %s424_s16, [#allocation9], %s4916_s14, %s4916_s14, %s4917_s25  }
  0x2a   : > { %s449_s4 = sshll.u32 %s4918_s26, 4  ;;  %s8615_s11 = sld [smem:[#allocation122_spill]]  ;;  %s450_s4 = int_to_ptr.vmem [resolvable:$true] %s449_s4 }
  0x2b   : > { %s8503_s7 = smov 128   ;;  %s4920_s24 = smov 8  }
  0x2c   : > { %s447_s15 = sshll.u32 %s8614_s6, 4  ;;  %s4921_s18 = smov [#allocation14]   ;;  %s448_s15 = int_to_ptr.hbm [resolvable:$true] %s447_s15 }
  0x2d   : > { %4237 = dma.hbm_to_vmem [thread:$0]  (!%p5092_p0), %s448_s15, 2048, %s450_s4, [#allocation12], %s8503_s7, %s8503_s7, %s4920_s24  }
  0x2e   : > { %s486_s30 = sshll.u32 %s4921_s18, 4  ;;  %s4922_s16 = smov 512   ;;  %s487_s30 = int_to_ptr.vmem [resolvable:$true] %s486_s30 }
  0x2f   : > { %s4923_s23 = smov 32   ;;  %s404_s12 = sshll.u32 %s8481_s2, 4  ;;  %s405_s12 = int_to_ptr.hbm [resolvable:$true] %s404_s12 }
  0x30   : > { %s484_s9 = sshll.u32 %s8615_s11, 4  ;;  %s4924_s6 = smov [#allocation7]   ;;  %s485_s9 = int_to_ptr.hbm [resolvable:$true] %s484_s9 }
  0x31   : > { %4243 = dma.hbm_to_vmem [thread:$0]  (!%p5092_p0), %s485_s9, 8192, %s487_s30, [#allocation15], %s4922_s16, %s4922_s16, %s4923_s23  }
  0x32   : > { %s406_s11 = sshll.u32 %s4924_s6, 4  ;;  %s436_s15 = sshll.u32 %s8484_s5, 4  ;;  %s407_s11 = int_to_ptr.vmem [resolvable:$true] %s406_s11  ;;  %s437_s15 = int_to_ptr.hbm [resolvable:$true] %s436_s15 }
  0x33   : > { %4228 = dma.hbm_to_vmem [thread:$0]  (!%p5092_p0), %s405_s12, 4096, %s407_s11, [#allocation6], %s4916_s14, %s4916_s14, %s4917_s25  }
  0x34   : > { %s4925_s18 = smov [#allocation10]   ;;  %s464_s16 = sshll.u32 %s8487_s8, 4  ;;  %s465_s16 = int_to_ptr.hbm [resolvable:$true] %s464_s16 }
  0x35   : > { %s438_s7 = sshll.u32 %s4925_s18, 4  ;;  %s501_s26 = sshll.u32 %s8492_s13, 4  ;;  %s439_s7 = int_to_ptr.vmem [resolvable:$true] %s438_s7  ;;  %s502_s26 = int_to_ptr.hbm [resolvable:$true] %s501_s26 }
  0x36   : > { %4234 = dma.hbm_to_vmem [thread:$0]  (!%p5092_p0), %s437_s15, 32, %s439_s7, [#allocation9]  }
  0x37   : > { %s4926_s3 = smov [#allocation13]   ;;  %s8616_s11 = smov 128  }
  0x38   : > { %s466_s10 = sshll.u32 %s4926_s3, 4  ;;  %s4927_s14 = smov [#allocation16]   ;;  %s467_s10 = int_to_ptr.vmem [resolvable:$true] %s466_s10 }
  0x39   : > { %4240 = dma.hbm_to_vmem [thread:$0]  (!%p5092_p0), %s465_s16, 2048, %s467_s10, [#allocation12], %s8616_s11, %s8616_s11, %s4920_s24  }
  0x3a   : > { %s503_s25 = sshll.u32 %s4927_s14, 4  ;;  %p4099_p2 = scmp.ge.s32.totalorder %s4913_s21, 2  ;;  %s504_s25 = int_to_ptr.vmem [resolvable:$true] %s503_s25 }
  0x3b   : > { %4246 = dma.hbm_to_vmem [thread:$0]  (!%p5092_p0), %s502_s26, 8192, %s504_s25, [#allocation15], %s8616_s11, %s8616_s11, %s4920_s24  }
  0x3c   : > { %516 = sbr.rel (%p4099_p2) target bundleno = 93 (0x5d), region = 68 }
  0x41   : > { %s5141_s7 = sand.u32 1, %s4909_s20   ;;  %s4122_s12 = sshll.u32 %s4913_s21, 6 }
  0x42   : > { %s4173_s27 = smul.u32 192, %s5141_s7  ;;  %s529_s24 = scalar_lea.hbm %s8479_s0, %s4122_s12 }
  0x43   : > { %s542_s18 = sshll.u32 %s529_s24, 4  ;;  %s4928_s23 = smov 2048   ;;  %s543_s18 = int_to_ptr.hbm [resolvable:$true] %s542_s18 }
  0x44   : > { %s4191_s9 = scalar_select %p5060_p5, [#allocation0], [#allocation22] }
  0x45   : > { %s524_s16 = scalar_lea.vmem [#allocation2], %s4173_s27  ;;  %4192 = sst [smem:[#allocation19]] (%p5060_p5), %s4928_s23 }
  0x46   : > { %s534_s30 = sld [smem:[%s4191_s9]]   ;;  %s544_s6 = sshll.u32 %s524_s16, 4  ;;  %s545_s6 = int_to_ptr.vmem [resolvable:$true] %s544_s6 }
  0x47   : > { %s4929_s26 = smov 1024   ;;  %s4930_s3 = smov 8  }
  0x48   : > { %4193 = sst [smem:[#allocation19 + $0x1]] (%p5060_p5), %s4929_s26  ;;  %s4931_s10 = smov 128  }
  0x49   : > { %4194 = sst [smem:[#allocation19 + $0x2]] (%p5060_p5), %s4930_s3  ;;  %s521_s25 = scalar_lea.sflag [#allocation3], %s5141_s7 }
  0x4a   : > { %4195 = sst [smem:[#allocation19 + $0x3]] (%p5060_p5), %s4931_s10  ;;  %s4932_s27 = smov [#allocation18]  }
  0x4b   : > { %4196 = sst [smem:[#allocation19 + $0x4]] (%p5060_p5), %s4931_s10 }
  0x4c   : > { %s4102_s11 = sshll.u32 %s534_s30, 26  ;;  %4197 = sst [smem:[#allocation19 + $0x5]] (%p5060_p5), %s4930_s3 }
  0x4d   : > { %s4103_s14 = sadd.s32 134217728, %s4102_s11 }
  0x4e   : > { %4198 = dma.general (%p5060_p5), %s543_s18, 3072, %s545_s6, %s521_s25, %s4932_s27, [#allocation19], %s4103_s14, 0  }
  0x4f   : > { %s4174_s4 = smul.u32 320, %s5141_s7  ;;  %s567_s15 = sand.u32 1, %s4913_s21  }
  0x50   : > { %s576_s30 = scalar_lea.hbm %s8480_s1, %s4122_s12  ;;  %s4933_s3 = smov 2048  }
  0x51   : > { %s589_s16 = sshll.u32 %s576_s30, 4  ;;  %s571_s6 = scalar_lea.vmem [#allocation5], %s4174_s4  ;;  %s590_s16 = int_to_ptr.hbm [resolvable:$true] %s589_s16 }
  0x52   : > { %s4199_s23 = scalar_select %p5060_p5, [#allocation0], [#allocation23] }
  0x53   : > { %s591_s26 = sshll.u32 %s571_s6, 4  ;;  %4200 = sst [smem:[#allocation21]] (%p5060_p5), %s4933_s3  ;;  %s592_s26 = int_to_ptr.vmem [resolvable:$true] %s591_s26 }
  0x54   : > { %s581_s18 = sld [smem:[%s4199_s23]]   ;;  %s4934_s7 = smov 1024  }
  0x55   : > { %4201 = sst [smem:[#allocation21 + $0x1]] (%p5060_p5), %s4934_s7  ;;  %s4935_s10 = smov 8  }
  0x56   : > { %4202 = sst [smem:[#allocation21 + $0x2]] (%p5060_p5), %s4935_s10  ;;  %s4936_s12 = smov 128  }
  0x57   : > { %4203 = sst [smem:[#allocation21 + $0x3]] (%p5060_p5), %s4936_s12  ;;  %s568_s25 = scalar_lea.sflag [#allocation6], %s567_s15 }
  0x58   : > { %4204 = sst [smem:[#allocation21 + $0x4]] (%p5060_p5), %s4936_s12  ;;  %s4937_s27 = smov [#allocation20]  }
  0x59   : > { %4205 = sst [smem:[#allocation21 + $0x5]] (%p5060_p5), %s4935_s10 }
  0x5a   : > { %s4106_s11 = sshll.u32 %s581_s18, 26 }
  0x5b   : > { %s4107_s14 = sadd.s32 134217728, %s4106_s11 }
  0x5c   : > { %4206 = dma.general (%p5060_p5), %s590_s16, 5120, %s592_s26, %s568_s25, %s4937_s27, [#allocation21], %s4107_s14, 0  }
  0x5d PF: > { %616 = sbr.rel (%p5081_p13) target bundleno = 1654 (0x676), region = 80 }
  0x62   : > { %s5189_s4 = sand.u32 1, %s4905_s19  }
  0x63   : > { %s4175_s24 = smul.u32 192, %s5189_s4  ;;  %s619_s9 = scalar_lea.sflag [#allocation3], %s5189_s4 }
  0x65   : > { %s5193_s30 = scalar_lea.vmem [#allocation2], %s4175_s24 }
  0x66   : > { %4872 = dma.done.wait (%p5066_p6), %s619_s9, 3072  }
  0x67   : > { %4874 = vsyncadd (%p5066_p6), %s619_s9, 4294964224  ;;  %s628_s28 = sand.u32 1, %s5042_s22   ;;  %s4176_s17 = smul.u32 320, %s5189_s4 }
  0x68   : > { %s629_s15 = scalar_lea.sflag [#allocation6], %s628_s28 }
  0x69   : > { %s5201_s16 = scalar_lea.vmem [#allocation5], %s4176_s17 }
  0x6a   : > { %4876 = dma.done.wait (%p5066_p6), %s629_s15, 5120  }
  0x6b   : > { %4878 = vsyncadd (%p5066_p6), %s629_s15, 4294962176 }
  0x6c   : > { %4880 = dma.done.wait (%p58_p4), [#allocation6], 4096  }
  0x6d   : > { %4882 = vsyncadd (%p58_p4), [#allocation6], 4294963200 }
  0x6e   : > { %4884 = dma.done.wait (%p58_p4), [#allocation9], 4128  }
  0x6f   : > { %4886 = vsyncadd (%p58_p4), [#allocation9], 4294963168 }
  0x70   : > { %4888 = dma.done.wait (%p58_p4), [#allocation12], 4096  }
  0x71   : > { %4890 = vsyncadd (%p58_p4), [#allocation12], 4294963200 }
  0x72   : > { %4892 = dma.done.wait (%p58_p4), [#allocation15], 16384  }
  0x73   : > { %4894 = vsyncadd (%p58_p4), [#allocation15], 4294950912  ;;  %v1033_v0 = vld [vmem:[#allocation8 + $0xf0] sm:$0xff]  ;;  %v1031_v1 = vld [vmem:[#allocation8 + $0xe0] sm:$0xff]  ;;  %s8658_s18 = sld [smem:[#allocation116_spill]]  ;;  %s4116_s29 = sshll.u32 %s5189_s4, 6 }
  0x74   : > { %1041 = vmatpush.msra.mxu2 %v1033_v0  ;;  %v817_v2 = vld [vmem:[#allocation7 + $0xf0] sm:$0xff]  ;;  %v815_v4 = vld [vmem:[#allocation7 + $0xe0] sm:$0xff]  ;;  %v1034_v7 = vld [vmem:[#allocation8 + $0xf8] sm:$0xff]  ;;  %s8859_s3 = sld [smem:[#allocation119_spill]]  ;;  %s8428_s23 = scalar_lea.vmem [#allocation17], %s4116_s29 }
  0x75   : > { %v1029_v3 = vld [vmem:[#allocation8 + $0xd0] sm:$0xff]  ;;  %825 = vmatpush.msra.mxu0 %v817_v2  ;;  %v1027_v6 = vld [vmem:[#allocation8 + $0xc0] sm:$0xff]  ;;  %1178 = vmatpush.msra.mxu3 %v1034_v7  ;;  %v1032_v9 = vld [vmem:[#allocation8 + $0xe8] sm:$0xff]  ;;  %s8868_s12 = sld [smem:[#allocation120_spill]] }
  0x76   : > { %1042 = vmatpush.msra.mxu2 %v1031_v1  ;;  %v813_v5 = vld [vmem:[#allocation7 + $0xd0] sm:$0xff]  ;;  %v811_v8 = vld [vmem:[#allocation7 + $0xc0] sm:$0xff]  ;;  %v1030_v11 = vld [vmem:[#allocation8 + $0xd8] sm:$0xff]  ;;  %s8869_s25 = sld [smem:[#allocation121_spill]] }
  0x77   : > { %826 = vmatpush.msra.mxu0 %v815_v4  ;;  %v1025_v10 = vld [vmem:[#allocation8 + $0xb0] sm:$0xff]  ;;  %1179 = vmatpush.msra.mxu3 %v1032_v9  ;;  %v1023_v13 = vld [vmem:[#allocation8 + $0xa0] sm:$0xff]  ;;  %v1028_v14 = vld [vmem:[#allocation8 + $0xc8] sm:$0xff]  ;;  %s8870_s9 = sld [smem:[#allocation123_spill]] }
  0x78   : > { %1043 = vmatpush.msra.mxu2 %v1029_v3  ;;  %v809_v12 = vld [vmem:[#allocation7 + $0xb0] sm:$0xff]  ;;  %v807_v15 = vld [vmem:[#allocation7 + $0xa0] sm:$0xff]  ;;  %v1026_v17 = vld [vmem:[#allocation8 + $0xb8] sm:$0xff] }
  0x79   : > { %827 = vmatpush.msra.mxu0 %v813_v5  ;;  %1180 = vmatpush.msra.mxu3 %v1030_v11  ;;  %v1021_v16 = vld [vmem:[#allocation8 + $0x90] sm:$0xff]  ;;  %v1019_v19 = vld [vmem:[#allocation8 + $0x80] sm:$0xff]  ;;  %v1024_v20 = vld [vmem:[#allocation8 + $0xa8] sm:$0xff] }
  0x7a   : > { %1044 = vmatpush.msra.mxu2 %v1027_v6  ;;  %v805_v18 = vld [vmem:[#allocation7 + $0x90] sm:$0xff]  ;;  %v803_v21 = vld [vmem:[#allocation7 + $0x80] sm:$0xff]  ;;  %v1022_v23 = vld [vmem:[#allocation8 + $0x98] sm:$0xff] }
  0x7b   : > { %828 = vmatpush.msra.mxu0 %v811_v8  ;;  %1181 = vmatpush.msra.mxu3 %v1028_v14  ;;  %v1017_v22 = vld [vmem:[#allocation8 + $0x70] sm:$0xff]  ;;  %v1015_v25 = vld [vmem:[#allocation8 + $0x60] sm:$0xff]  ;;  %v1020_v26 = vld [vmem:[#allocation8 + $0x88] sm:$0xff] }
  0x7c   : > { %1045 = vmatpush.msra.mxu2 %v1025_v10  ;;  %v801_v24 = vld [vmem:[#allocation7 + $0x70] sm:$0xff]  ;;  %v799_v28 = vld [vmem:[#allocation7 + $0x60] sm:$0xff]  ;;  %v1018_v29 = vld [vmem:[#allocation8 + $0x78] sm:$0xff] }
  0x7d   : > { %829 = vmatpush.msra.mxu0 %v809_v12  ;;  %1182 = vmatpush.msra.mxu3 %v1026_v17  ;;  %v1013_v27 = vld [vmem:[#allocation8 + $0x50] sm:$0xff]  ;;  %v1011_v31 = vld [vmem:[#allocation8 + $0x40] sm:$0xff]  ;;  %v1016_v32 = vld [vmem:[#allocation8 + $0x68] sm:$0xff] }
  0x7e   : > { %1046 = vmatpush.msra.mxu2 %v1023_v13  ;;  %v797_v30 = vld [vmem:[#allocation7 + $0x50] sm:$0xff]  ;;  %v795_v33 = vld [vmem:[#allocation7 + $0x40] sm:$0xff]  ;;  %v1014_v35 = vld [vmem:[#allocation8 + $0x58] sm:$0xff] }
  0x7f   : > { %830 = vmatpush.msra.mxu0 %v807_v15  ;;  %1183 = vmatpush.msra.mxu3 %v1024_v20  ;;  %v1009_v34 = vld [vmem:[#allocation8 + $0x30] sm:$0xff]  ;;  %v1007_v37 = vld [vmem:[#allocation8 + $0x20] sm:$0xff]  ;;  %v1012_v38 = vld [vmem:[#allocation8 + $0x48] sm:$0xff] }
  0x80   : > { %1047 = vmatpush.msra.mxu2 %v1021_v16  ;;  %v793_v36 = vld [vmem:[#allocation7 + $0x30] sm:$0xff]  ;;  %v791_v39 = vld [vmem:[#allocation7 + $0x20] sm:$0xff]  ;;  %v1010_v41 = vld [vmem:[#allocation8 + $0x38] sm:$0xff] }
  0x81   : > { %831 = vmatpush.msra.mxu0 %v805_v18  ;;  %1184 = vmatpush.msra.mxu3 %v1022_v23  ;;  %v1005_v40 = vld [vmem:[#allocation8 + $0x10] sm:$0xff]  ;;  %v1003_v43 = vld [vmem:[#allocation8] sm:$0xff]  ;;  %v1008_v44 = vld [vmem:[#allocation8 + $0x28] sm:$0xff] }
  0x82   : > { %1048 = vmatpush.msra.mxu2 %v1019_v19  ;;  %v789_v42 = vld [vmem:[#allocation7 + $0x10] sm:$0xff]  ;;  %v747_v45 = vld [vmem:[%s5201_s16] sm:$0xff]  ;;  %v1006_v48 = vld [vmem:[#allocation8 + $0x18] sm:$0xff] }
  0x83   : > { %832 = vmatpush.msra.mxu0 %v803_v21  ;;  %1185 = vmatpush.msra.mxu3 %v1020_v26  ;;  %v787_v46 = vld [vmem:[#allocation7] sm:$0xff]  ;;  %v1004_v49 = vld [vmem:[#allocation8 + $0x8] sm:$0xff]  ;;  %v749_v52 = vld [vmem:[%s5201_s16 + $0x10] sm:$0xff] }
  0x84   : > { %1049 = vmatpush.msra.mxu2 %v1017_v22  ;;  %v5225_v47 = vld [vmem:[%s5193_s30] sm:$0xff]  ;;  %v748_v50 = vld [vmem:[%s5201_s16 + $0x8] sm:$0xff]  ;;  %v5235_v53 = vld [vmem:[%s5193_s30 + $0x10] sm:$0xff] }
  0x85   : > { %833 = vmatpush.msra.mxu0 %v801_v24  ;;  %1186 = vmatpush.msra.mxu3 %v1018_v29  ;;  %v5230_v51 = vld [vmem:[%s5193_s30 + $0x8] sm:$0xff]  ;;  %v750_v54 = vld [vmem:[%s5201_s16 + $0x18] sm:$0xff]  ;;  %v751_v56 = vld [vmem:[%s5201_s16 + $0x20] sm:$0xff] }
  0x86   : > { %1050 = vmatpush.msra.mxu2 %v1015_v25  ;;  %v5240_v55 = vld [vmem:[%s5193_s30 + $0x18] sm:$0xff]  ;;  %v5245_v57 = vld [vmem:[%s5193_s30 + $0x20] sm:$0xff]  ;;  %v752_v58 = vld [vmem:[%s5201_s16 + $0x28] sm:$0xff] }
  0x87   : > { %834 = vmatpush.msra.mxu0 %v799_v28  ;;  %1187 = vmatpush.msra.mxu3 %v1016_v32  ;;  %v5250_v59 = vld [vmem:[%s5193_s30 + $0x28] sm:$0xff]  ;;  %v753_v60 = vld [vmem:[%s5201_s16 + $0x30] sm:$0xff]  ;;  %v754_v62 = vld [vmem:[%s5201_s16 + $0x38] sm:$0xff] }
  0x88   : > { %1051 = vmatpush.msra.mxu2 %v1013_v27  ;;  %v5255_v61 = vld [vmem:[%s5193_s30 + $0x30] sm:$0xff]  ;;  %v5260_v63 = vld [vmem:[%s5193_s30 + $0x38] sm:$0xff]  ;;  %v755_v0 = vld [vmem:[%s5201_s16 + $0x40] sm:$0xff] }
  0x89   : > { %835 = vmatpush.msra.mxu0 %v797_v30  ;;  %1188 = vmatpush.msra.mxu3 %v1014_v35  ;;  %v5265_v1 = vld [vmem:[%s5193_s30 + $0x40] sm:$0xff]  ;;  %v756_v2 = vld [vmem:[%s5201_s16 + $0x48] sm:$0xff]  ;;  %v757_v4 = vld [vmem:[%s5201_s16 + $0x50] sm:$0xff] }
  0x8a   : > { %1052 = vmatpush.msra.mxu2 %v1011_v31  ;;  %v5270_v3 = vld [vmem:[%s5193_s30 + $0x48] sm:$0xff]  ;;  %v5275_v5 = vld [vmem:[%s5193_s30 + $0x50] sm:$0xff]  ;;  %v818_v6 = vld [vmem:[#allocation7 + $0xf8] sm:$0xff] }
  0x8b   : > { %836 = vmatpush.msra.mxu0 %v795_v33  ;;  %1189 = vmatpush.msra.mxu3 %v1012_v38  ;;  %v816_v7 = vld [vmem:[#allocation7 + $0xe8] sm:$0xff]  ;;  %v758_v8 = vld [vmem:[%s5201_s16 + $0x58] sm:$0xff]  ;;  %v759_v14 = vld [vmem:[%s5201_s16 + $0x60] sm:$0xff] }
  0x8c   : > { %1053 = vmatpush.msra.mxu2 %v1009_v34  ;;  %914 = vmatpush.msra.mxu1 %v818_v6  ;;  %v5280_v9 = vld [vmem:[%s5193_s30 + $0x58] sm:$0xff]  ;;  %v812_v11 = vld [vmem:[#allocation7 + $0xc8] sm:$0xff]  ;;  %v5285_v15 = vld [vmem:[%s5193_s30 + $0x60] sm:$0xff] }
  0x8d   : > { %837 = vmatpush.msra.mxu0 %v793_v36  ;;  %1190 = vmatpush.msra.mxu3 %v1010_v41  ;;  %v814_v10 = vld [vmem:[#allocation7 + $0xd8] sm:$0xff]  ;;  %v808_v13 = vld [vmem:[#allocation7 + $0xa8] sm:$0xff]  ;;  %v761_v25 = vld [vmem:[%s5201_s16 + $0x70] sm:$0xff] }
  0x8e   : > { %1054 = vmatpush.msra.mxu2 %v1007_v37  ;;  %915 = vmatpush.msra.mxu1 %v816_v7  ;;  %v810_v12 = vld [vmem:[#allocation7 + $0xb8] sm:$0xff]  ;;  %v804_v17 = vld [vmem:[#allocation7 + $0x88] sm:$0xff]  ;;  %v5295_v27 = vld [vmem:[%s5193_s30 + $0x70] sm:$0xff] }
  0x8f   : > { %838 = vmatpush.msra.mxu0 %v791_v39  ;;  %1191 = vmatpush.msra.mxu3 %v1008_v44  ;;  %v806_v16 = vld [vmem:[#allocation7 + $0x98] sm:$0xff]  ;;  %v760_v19 = vld [vmem:[%s5201_s16 + $0x68] sm:$0xff]  ;;  %v763_v33 = vld [vmem:[%s5201_s16 + $0x80] sm:$0xff] }
  0x90   : > { %1055 = vmatpush.msra.mxu2 %v1005_v40  ;;  %916 = vmatpush.msra.mxu1 %v814_v10  ;;  %v802_v18 = vld [vmem:[#allocation7 + $0x78] sm:$0xff]  ;;  %v800_v20 = vld [vmem:[#allocation7 + $0x68] sm:$0xff]  ;;  %v5307_v34 = vld [vmem:[%s5193_s30 + $0x80] sm:$0xff] }
  0x91   : > { %839 = vmatpush.msra.mxu0 %v789_v42  ;;  %1192 = vmatpush.msra.mxu3 %v1006_v48  ;;  %v5290_v21 = vld [vmem:[%s5193_s30 + $0x68] sm:$0xff]  ;;  %v798_v22 = vld [vmem:[#allocation7 + $0x58] sm:$0xff]  ;;  %v765_v41 = vld [vmem:[%s5201_s16 + $0x90] sm:$0xff] }
  0x92   : > { %1056 = vmatpush.msra.mxu2 %v1003_v43  ;;  %917 = vmatpush.msra.mxu1 %v812_v11  ;;  %v796_v23 = vld [vmem:[#allocation7 + $0x48] sm:$0xff]  ;;  %v794_v24 = vld [vmem:[#allocation7 + $0x38] sm:$0xff]  ;;  %v5325_v42 = vld [vmem:[%s5193_s30 + $0x90] sm:$0xff] }
  0x93   : > { %1057 = vmatmul.f32.vlgmr.msra.gmra.mxu2 %v747_v45  ;;  %840 = vmatpush.msra.mxu0 %v787_v46  ;;  %v792_v26 = vld [vmem:[#allocation7 + $0x28] sm:$0xff]  ;;  %v790_v28 = vld [vmem:[#allocation7 + $0x18] sm:$0xff]  ;;  %v5390_v11 = vld [vmem:[#allocation10] sm:$0x3] }
  0x94   : > { %841 = vmatmul.f32.vlgmr.msra.gmra.mxu0 %v5225_v47  ;;  %1193 = vmatpush.msra.mxu3 %v1004_v49  ;;  %v1874_v29 = vld [vmem:[#allocation11 + $0x78] sm:$0xff]  ;;  %v788_v30 = vld [vmem:[#allocation7 + $0x8] sm:$0xff]  ;;  %v1873_v36 = vld [vmem:[#allocation11 + $0x70] sm:$0xff] }
  0x95   : > { %1194 = vmatmul.f32.vlgmr.msra.gmra.mxu3 %v747_v45  ;;  %918 = vmatpush.msra.mxu1 %v810_v12  ;;  %v762_v31 = vld [vmem:[%s5201_s16 + $0x78] sm:$0xff]  ;;  %v764_v37 = vld [vmem:[%s5201_s16 + $0x88] sm:$0xff]  ;;  %v771_v12 = vld [vmem:[%s5201_s16 + $0xc0] sm:$0xff] }
  0x96   : > { %4125 = vmatpush.msrb.mxu3 %v1874_v29  ;;  %1879 = vmatpush.msrb.mxu0 %v1874_v29  ;;  %v5301_v32 = vld [vmem:[%s5193_s30 + $0x78] sm:$0xff]  ;;  %v5315_v38 = vld [vmem:[%s5193_s30 + $0x88] sm:$0xff] }
  0x97   : > { %919 = vmatpush.msra.mxu1 %v808_v13  ;;  %v766_v45 = vld [vmem:[%s5201_s16 + $0x98] sm:$0xff]  ;;  %v1872_v49 = vld [vmem:[#allocation11 + $0x68] sm:$0xff] }
  0x98   : > { %4126 = vmatpush.msrb.mxu3 %v1873_v36  ;;  %1880 = vmatpush.msrb.mxu0 %v1873_v36  ;;  %v5335_v46 = vld [vmem:[%s5193_s30 + $0x98] sm:$0xff] }
  0x99   : > { %920 = vmatpush.msra.mxu1 %v806_v16  ;;  %v770_v6 = vld [vmem:[%s5201_s16 + $0xb8] sm:$0xff] }
  0x9a   : > { %4127 = vmatpush.msrb.mxu3 %v1872_v49  ;;  %1881 = vmatpush.msrb.mxu0 %v1872_v49  ;;  %v1870_v16 = vld [vmem:[#allocation11 + $0x58] sm:$0xff] }
  0x9b   : > { %1060 = vmatmul.f32.gmra.mxu2 %v748_v50  ;;  %921 = vmatpush.msra.mxu1 %v804_v17  ;;  %v774_v36 = vld [vmem:[%s5201_s16 + $0xd8] sm:$0xff] }
  0x9c   : > { %844 = vmatmul.f32.gmra.mxu0 %v5230_v51 }
  0x9d   : > { %1197 = vmatmul.f32.gmra.mxu3 %v748_v50  ;;  %922 = vmatpush.msra.mxu1 %v802_v18 }
  0x9f   : > { %923 = vmatpush.msra.mxu1 %v800_v20 }
  0xa1   : > { %924 = vmatpush.msra.mxu1 %v798_v22 }
  0xa3   : > { %1063 = vmatmul.f32.gmra.mxu2 %v749_v52  ;;  %925 = vmatpush.msra.mxu1 %v796_v23 }
  0xa4   : > { %847 = vmatmul.f32.gmra.mxu0 %v5235_v53 }
  0xa5   : > { %1200 = vmatmul.f32.gmra.mxu3 %v749_v52  ;;  %926 = vmatpush.msra.mxu1 %v794_v24  ;;  %v5347_v52 = vld [vmem:[%s5193_s30 + $0xa0] sm:$0xff] }
  0xa7   : > { %927 = vmatpush.msra.mxu1 %v792_v26 }
  0xa9   : > { %928 = vmatpush.msra.mxu1 %v790_v28  ;;  %v773_v28 = vld [vmem:[%s5201_s16 + $0xd0] sm:$0xff] }
  0xab   : > { %1066 = vmatmul.f32.gmra.mxu2 %v750_v54  ;;  %929 = vmatpush.msra.mxu1 %v788_v30 }
  0xac   : > { %850 = vmatmul.f32.gmra.mxu0 %v5240_v55  ;;  %930 = vmatmul.f32.vlgmr.msra.gmra.mxu1 %v5225_v47 }
  0xad   : > { %1203 = vmatmul.f32.gmra.mxu3 %v750_v54 }
  0xb3   : > { %1069 = vmatmul.f32.gmra.mxu2 %v751_v56 }
  0xb4   : > { %853 = vmatmul.f32.gmra.mxu0 %v5245_v57  ;;  %933 = vmatmul.f32.gmra.mxu1 %v5230_v51  ;;  %v767_v51 = vld [vmem:[%s5201_s16 + $0xa0] sm:$0xff] }
  0xb5   : > { %1206 = vmatmul.f32.gmra.mxu3 %v751_v56  ;;  %v768_v56 = vld [vmem:[%s5201_s16 + $0xa8] sm:$0xff] }
  0xbb   : > { %1072 = vmatmul.f32.gmra.mxu2 %v752_v58 }
  0xbc   : > { %856 = vmatmul.f32.gmra.mxu0 %v5250_v59  ;;  %936 = vmatmul.f32.gmra.mxu1 %v5235_v53 }
  0xbd   : > { %1209 = vmatmul.f32.gmra.mxu3 %v752_v58 }
  0xc3   : > { %1075 = vmatmul.f32.gmra.mxu2 %v753_v60 }
  0xc4   : > { %859 = vmatmul.f32.gmra.mxu0 %v5255_v61  ;;  %939 = vmatmul.f32.gmra.mxu1 %v5240_v55 }
  0xc5   : > { %1212 = vmatmul.f32.gmra.mxu3 %v753_v60 }
  0xcb   : > { %1078 = vmatmul.f32.gmra.mxu2 %v754_v62 }
  0xcc   : > { %862 = vmatmul.f32.gmra.mxu0 %v5260_v63  ;;  %942 = vmatmul.f32.gmra.mxu1 %v5245_v57  ;;  %v5359_v57 = vld [vmem:[%s5193_s30 + $0xa8] sm:$0xff] }
  0xcd   : > { %1215 = vmatmul.f32.gmra.mxu3 %v754_v62  ;;  %v769_v62 = vld [vmem:[%s5201_s16 + $0xb0] sm:$0xff] }
  0xd3   : > { %1081 = vmatmul.f32.gmra.mxu2 %v755_v0 }
  0xd4   : > { %865 = vmatmul.f32.gmra.mxu0 %v5265_v1  ;;  %945 = vmatmul.f32.gmra.mxu1 %v5250_v59 }
  0xd5   : > { %1218 = vmatmul.f32.gmra.mxu3 %v755_v0  ;;  %v5371_v0 = vld [vmem:[%s5193_s30 + $0xb0] sm:$0xff] }
  0xdb   : > { %1084 = vmatmul.f32.gmra.mxu2 %v756_v2 }
  0xdc   : > { %868 = vmatmul.f32.gmra.mxu0 %v5270_v3  ;;  %948 = vmatmul.f32.gmra.mxu1 %v5255_v61  ;;  %v1871_v61 = vld [vmem:[#allocation11 + $0x60] sm:$0xff] }
  0xdd   : > { %1221 = vmatmul.f32.gmra.mxu3 %v756_v2  ;;  %1882 = vmatpush.msrb.mxu0 %v1871_v61 }
  0xde   : > { %4128 = vmatpush.msrb.mxu3 %v1871_v61 }
  0xdf   : > { %1883 = vmatpush.msrb.mxu0 %v1870_v16 }
  0xe0   : > { %4129 = vmatpush.msrb.mxu3 %v1870_v16 }
  0xe3   : > { %1087 = vmatmul.f32.gmra.mxu2 %v757_v4 }
  0xe4   : > { %871 = vmatmul.f32.gmra.mxu0 %v5275_v5  ;;  %951 = vmatmul.f32.gmra.mxu1 %v5260_v63  ;;  %v5383_v63 = vld [vmem:[%s5193_s30 + $0xb8] sm:$0xff] }
  0xe5   : > { %1224 = vmatmul.f32.gmra.mxu3 %v757_v4 }
  0xeb   : > { %1090 = vmatmul.f32.gmra.mxu2 %v758_v8 }
  0xec   : > { %874 = vmatmul.f32.gmra.mxu0 %v5280_v9  ;;  %954 = vmatmul.f32.gmra.mxu1 %v5265_v1  ;;  %v5397_v1 = vperm.slane %v5390_v11, 0 }
  0xed   : > { %1227 = vmatmul.f32.gmra.mxu3 %v758_v8 }
  0xf3   : > { %1093 = vmatmul.f32.gmra.mxu2 %v759_v14 }
  0xf4   : > { %877 = vmatmul.f32.gmra.mxu0 %v5285_v15  ;;  %957 = vmatmul.f32.gmra.mxu1 %v5270_v3  ;;  %v772_v3 = vld [vmem:[%s5201_s16 + $0xc8] sm:$0xff] }
  0xf5   : > { %1230 = vmatmul.f32.gmra.mxu3 %v759_v14 }
  0xfb   : > { %1096 = vmatmul.f32.gmra.mxu2 %v760_v19 }
  0xfc   : > { %880 = vmatmul.f32.gmra.mxu0 %v5290_v21  ;;  %960 = vmatmul.f32.gmra.mxu1 %v5275_v5 }
  0xfd   : > { %1233 = vmatmul.f32.gmra.mxu3 %v760_v19 }
 0x103   : > { %1099 = vmatmul.f32.gmra.mxu2 %v761_v25 }
 0x104   : > { %883 = vmatmul.f32.gmra.mxu0 %v5295_v27  ;;  %963 = vmatmul.f32.gmra.mxu1 %v5280_v9 }
 0x105   : > { %1236 = vmatmul.f32.gmra.mxu3 %v761_v25 }
 0x10b   : > { %1102 = vmatmul.f32.gmra.mxu2 %v762_v31 }
 0x10c   : > { %886 = vmatmul.f32.gmra.mxu0 %v5301_v32  ;;  %966 = vmatmul.f32.gmra.mxu1 %v5285_v15  ;;  %v775_v15 = vld [vmem:[%s5201_s16 + $0xe0] sm:$0xff] }
 0x10d   : > { %1239 = vmatmul.f32.gmra.mxu3 %v762_v31 }
 0x111   : > { %v5339_v48 = vpop.f32.mrf.mxu0 }
 0x113   : > { %1105 = vmatmul.f32.gmra.mxu2 %v763_v33 }
 0x114   : > { %889 = vmatmul.f32.gmra.mxu0 %v5307_v34  ;;  %969 = vmatmul.f32.gmra.mxu1 %v5290_v21  ;;  %v1867_v21 = vld [vmem:[#allocation11 + $0x40] sm:$0xff] }
 0x115   : > { %1242 = vmatmul.f32.gmra.mxu3 %v763_v33 }
 0x116   : > { %v5310_v35 = vpop.f32.mrf.mxu2 }
 0x117   : > { %v5403_v18 = vadd.f32 %v5310_v35, %v5397_v1 }
 0x118   : > { %v5317_v39 = vpop.f32.mrf.mxu3 }
 0x119   : > { %v5352_v54 = vpop.f32.mrf.mxu0 }
 0x11b   : > { %1108 = vmatmul.f32.gmra.mxu2 %v764_v37 }
 0x11c   : > { %892 = vmatmul.f32.gmra.mxu0 %v5315_v38  ;;  %972 = vmatmul.f32.gmra.mxu1 %v5295_v27  ;;  %v777_v27 = vld [vmem:[%s5201_s16 + $0xf0] sm:$0xff] }
 0x11d   : > { %1245 = vmatmul.f32.gmra.mxu3 %v764_v37  ;;  %v1869_v37 = vld [vmem:[#allocation11 + $0x50] sm:$0xff] }
 0x11e   : > { %v5320_v40 = vpop.f32.mrf.mxu2  ;;  %4130 = vmatpush.msrb.mxu3 %v1869_v37  ;;  %1884 = vmatpush.msrb.mxu0 %v1869_v37 }
 0x11f   : > { %v5418_v25 = vadd.f32 %v5320_v40, %v5397_v1 }
 0x120   : > { %v5327_v43 = vpop.f32.mrf.mxu3 }
 0x121   : > { %v5366_v60 = vpop.f32.mrf.mxu0 }
 0x123   : > { %1111 = vmatmul.f32.gmra.mxu2 %v765_v41 }
 0x124   : > { %895 = vmatmul.f32.gmra.mxu0 %v5325_v42  ;;  %975 = vmatmul.f32.gmra.mxu1 %v5301_v32  ;;  %v778_v32 = vld [vmem:[%s5201_s16 + $0xf8] sm:$0xff] }
 0x125   : > { %1248 = vmatmul.f32.gmra.mxu3 %v765_v41 }
 0x126   : > { %v5330_v44 = vpop.f32.mrf.mxu2 }
 0x127   : > { %v5431_v31 = vadd.f32 %v5330_v44, %v5397_v1 }
 0x128   : > { %v5337_v47 = vpop.f32.mrf.mxu3 }
 0x129   : > { %v5380_v7 = vpop.f32.mrf.mxu0  ;;  %8617 = vst [vmem:[#allocation36_spill] sm:$0xff] %v5431_v31  ;;  %v5489_v37 = vpop.f32.mrf.mxu1 }
 0x12b   : > { %1114 = vmatmul.f32.gmra.mxu2 %v766_v45 }
 0x12c   : > { %898 = vmatmul.f32.gmra.mxu0 %v5335_v46  ;;  %978 = vmatmul.f32.gmra.mxu1 %v5307_v34  ;;  %v779_v34 = vld [vmem:[%s5201_s16 + $0x100] sm:$0xff] }
 0x12d   : > { %1251 = vmatmul.f32.gmra.mxu3 %v766_v45 }
 0x12e   : > { %v5342_v50 = vpop.f32.mrf.mxu2 }
 0x12f   : > { %v5446_v44 = vadd.f32 %v5342_v50, %v5397_v1 }
 0x130   : > { %v5349_v53 = vpop.f32.mrf.mxu3 }
 0x131   : > { %v5399_v14 = vpop.f32.mrf.mxu0  ;;  %8619 = vst [vmem:[#allocation38_spill] sm:$0xff] %v5446_v44 }
 0x133   : > { %1117 = vmatmul.f32.gmra.mxu2 %v767_v51 }
 0x134   : > { %901 = vmatmul.f32.gmra.mxu0 %v5347_v52  ;;  %981 = vmatmul.f32.gmra.mxu1 %v5315_v38 }
 0x135   : > { %1254 = vmatmul.f32.gmra.mxu3 %v767_v51 }
 0x136   : > { %v5354_v55 = vpop.f32.mrf.mxu2 }
 0x137   : > { %v5461_v50 = vadd.f32 %v5354_v55, %v5397_v1 }
 0x138   : > { %v5361_v58 = vpop.f32.mrf.mxu3 }
 0x139   : > { %v5414_v23 = vpop.f32.mrf.mxu0  ;;  %8621 = vst [vmem:[#allocation40_spill] sm:$0xff] %v5461_v50 }
 0x13b   : > { %1120 = vmatmul.f32.gmra.mxu2 %v768_v56 }
 0x13c   : > { %904 = vmatmul.f32.gmra.mxu0 %v5359_v57  ;;  %984 = vmatmul.f32.gmra.mxu1 %v5325_v42  ;;  %v1866_v42 = vld [vmem:[#allocation11 + $0x38] sm:$0xff] }
 0x13d   : > { %1257 = vmatmul.f32.gmra.mxu3 %v768_v56 }
 0x13e   : > { %v5364_v59 = vpop.f32.mrf.mxu2 }
 0x140   : > { %v5373_v2 = vpop.f32.mrf.mxu3 }
 0x141   : > { %v5433_v33 = vpop.f32.mrf.mxu0 }
 0x143   : > { %1123 = vmatmul.f32.gmra.mxu2 %v769_v62 }
 0x144   : > { %907 = vmatmul.f32.gmra.mxu0 %v5371_v0  ;;  %987 = vmatmul.f32.gmra.mxu1 %v5335_v46 }
 0x145   : > { %1260 = vmatmul.f32.gmra.mxu3 %v769_v62 }
 0x146   : > { %v5376_v4 = vpop.f32.mrf.mxu2 }
 0x148   : > { %v5385_v8 = vpop.f32.mrf.mxu3 }
 0x149   : > { %v5453_v49 = vpop.f32.mrf.mxu0 }
 0x14b   : > { %1126 = vmatmul.f32.gmra.mxu2 %v770_v6 }
 0x14c   : > { %910 = vmatmul.f32.gmra.mxu0 %v5383_v63  ;;  %990 = vmatmul.f32.gmra.mxu1 %v5347_v52 }
 0x14d   : > { %1263 = vmatmul.f32.gmra.mxu3 %v770_v6  ;;  %v776_v6 = vld [vmem:[%s5201_s16 + $0xe8] sm:$0xff] }
 0x14e   : > { %v5388_v10 = vpop.f32.mrf.mxu2 }
 0x150   : > { %v5394_v13 = vpop.f32.mrf.mxu3 }
 0x151   : > { %v5472_v16 = vpop.f32.mrf.mxu0 }
 0x153   : > { %1129 = vmatmul.f32.gmra.mxu2 %v771_v12 }
 0x154   : > { %993 = vmatmul.f32.gmra.mxu1 %v5359_v57 }
 0x155   : > { %1266 = vmatmul.f32.gmra.mxu3 %v771_v12 }
 0x156   : > { %v1082_v17 = vpop.f32.mrf.mxu2 }
 0x157   : > { %v5406_v19 = vadd.f32 %v1082_v17, %v5397_v1  ;;  %v1868_v17 = vld [vmem:[#allocation11 + $0x48] sm:$0xff] }
 0x158   : > { %v5412_v22 = vpop.f32.mrf.mxu3  ;;  %4131 = vmatpush.msrb.mxu3 %v1868_v17  ;;  %1885 = vmatpush.msrb.mxu0 %v1868_v17  ;;  %v5504_v17 = vpop.f32.mrf.mxu1 }
 0x15a   : > { %4132 = vmatpush.msrb.mxu3 %v1867_v21  ;;  %1886 = vmatpush.msrb.mxu0 %v1867_v21  ;;  %v781_v21 = vld [vmem:[%s5201_s16 + $0x110] sm:$0xff] }
 0x15b   : > { %1132 = vmatmul.f32.gmra.mxu2 %v772_v3 }
 0x15c   : > { %4133 = vmatpush.msrb.mxu3 %v1866_v42  ;;  %1887 = vmatpush.msrb.mxu0 %v1866_v42  ;;  %v783_v42 = vld [vmem:[%s5201_s16 + $0x120] sm:$0xff] }
 0x15d   : > { %1269 = vmatmul.f32.gmra.mxu3 %v772_v3  ;;  %v5476_v3 = vadd.f32 %v5364_v59, %v5397_v1  ;;  %996 = vmatmul.f32.gmra.mxu1 %v5371_v0 }
 0x15e   : > { %v1085_v24 = vpop.f32.mrf.mxu2 }
 0x15f   : > { %v5421_v26 = vadd.f32 %v1085_v24, %v5397_v1  ;;  %8623 = vst [vmem:[#allocation42_spill] sm:$0xff] %v5476_v3  ;;  %v782_v3 = vld [vmem:[%s5201_s16 + $0x118] sm:$0xff] }
 0x160   : > { %v5427_v29 = vpop.f32.mrf.mxu3 }
 0x163   : > { %1135 = vmatmul.f32.gmra.mxu2 %v773_v28 }
 0x165   : > { %1272 = vmatmul.f32.gmra.mxu3 %v773_v28  ;;  %999 = vmatmul.f32.gmra.mxu1 %v5383_v63 }
 0x166   : > { %v1088_v30 = vpop.f32.mrf.mxu2 }
 0x167   : > { %v5436_v35 = vadd.f32 %v1088_v30, %v5397_v1 }
 0x168   : > { %v5442_v40 = vpop.f32.mrf.mxu3 }
 0x169   : > { %8618 = vst [vmem:[#allocation37_spill] sm:$0xff] %v5436_v35 }
 0x16b   : > { %1138 = vmatmul.f32.gmra.mxu2 %v774_v36 }
 0x16d   : > { %1275 = vmatmul.f32.gmra.mxu3 %v774_v36  ;;  %v5487_v36 = vpop.f32.mrf.mxu0 }
 0x16e   : > { %v1091_v41 = vpop.f32.mrf.mxu2 }
 0x16f   : > { %v5449_v45 = vadd.f32 %v1091_v41, %v5397_v1  ;;  %v5493_v41 = vadd.f32 %v5376_v4, %v5397_v1  ;;  %v5508_v4 = vadd.f32 %v5388_v10, %v5397_v1  ;;  %v5521_v10 = vpop.f32.mrf.mxu1 }
 0x170   : > { %v5457_v56 = vpop.f32.mrf.mxu3 }
 0x171   : > { %8620 = vst [vmem:[#allocation39_spill] sm:$0xff] %v5449_v45 }
 0x172   : > { %8625 = vst [vmem:[#allocation44_spill] sm:$0xff] %v5493_v41 }
 0x173   : > { %1141 = vmatmul.f32.gmra.mxu2 %v775_v15  ;;  %8627 = vst [vmem:[#allocation46_spill] sm:$0xff] %v5508_v4  ;;  %v1862_v4 = vld [vmem:[#allocation11 + $0x18] sm:$0xff] }
 0x175   : > { %1278 = vmatmul.f32.gmra.mxu3 %v775_v15 }
 0x176   : > { %v1094_v62 = vpop.f32.mrf.mxu2 }
 0x177   : > { %v5464_v61 = vadd.f32 %v1094_v62, %v5397_v1  ;;  %v5531_v28 = vpop.f32.mrf.mxu1 }
 0x178   : > { %v5470_v12 = vpop.f32.mrf.mxu3 }
 0x179   : > { %8622 = vst [vmem:[#allocation41_spill] sm:$0xff] %v5464_v61 }
 0x17b   : > { %1144 = vmatmul.f32.gmra.mxu2 %v776_v6 }
 0x17d   : > { %1281 = vmatmul.f32.gmra.mxu3 %v776_v6 }
 0x17e   : > { %v1097_v55 = vpop.f32.mrf.mxu2 }
 0x17f   : > { %v5479_v24 = vadd.f32 %v1097_v55, %v5397_v1  ;;  %v5541_v62 = vpop.f32.mrf.mxu1 }
 0x180   : > { %v5485_v30 = vpop.f32.mrf.mxu3  ;;  %8630 = vst [vmem:[#allocation49_spill] sm:$0xff] %v5541_v62 }
 0x181   : > { %8624 = vst [vmem:[#allocation43_spill] sm:$0xff] %v5479_v24 }
 0x183   : > { %1147 = vmatmul.f32.gmra.mxu2 %v777_v27 }
 0x185   : > { %1284 = vmatmul.f32.gmra.mxu3 %v777_v27 }
 0x186   : > { %v1100_v59 = vpop.f32.mrf.mxu2 }
 0x187   : > { %v5496_v15 = vadd.f32 %v1100_v59, %v5397_v1  ;;  %v5510_v59 = vpop.f32.mrf.mxu0  ;;  %v5551_v61 = vpop.f32.mrf.mxu1 }
 0x188   : > { %v5502_v6 = vpop.f32.mrf.mxu3  ;;  %8632 = vst [vmem:[#allocation51_spill] sm:$0xff] %v5551_v61  ;;  %v1865_v61 = vld [vmem:[#allocation11 + $0x30] sm:$0xff] }
 0x189   : > { %8626 = vst [vmem:[#allocation45_spill] sm:$0xff] %v5496_v15  ;;  %4134 = vmatpush.msrb.mxu3 %v1865_v61  ;;  %1888 = vmatpush.msrb.mxu0 %v1865_v61  ;;  %v1864_v61 = vld [vmem:[#allocation11 + $0x28] sm:$0xff] }
 0x18b   : > { %1150 = vmatmul.f32.gmra.mxu2 %v778_v32  ;;  %4135 = vmatpush.msrb.mxu3 %v1864_v61 }
 0x18c   : > { %1889 = vmatpush.msrb.mxu0 %v1864_v61 }
 0x18d   : > { %1287 = vmatmul.f32.gmra.mxu3 %v778_v32 }
 0x18e   : > { %v1103_v55 = vpop.f32.mrf.mxu2 }
 0x18f   : > { %v5513_v27 = vadd.f32 %v1103_v55, %v5397_v1  ;;  %v780_v55 = vld [vmem:[%s5201_s16 + $0x108] sm:$0xff]  ;;  %v5527_v32 = vpop.f32.mrf.mxu0 }
 0x190   : > { %v5519_v51 = vpop.f32.mrf.mxu3 }
 0x191   : > { %8628 = vst [vmem:[#allocation47_spill] sm:$0xff] %v5513_v27 }
 0x193   : > { %1153 = vmatmul.f32.gmra.mxu2 %v779_v34 }
 0x195   : > { %1290 = vmatmul.f32.gmra.mxu3 %v779_v34 }
 0x196   : > { %v5523_v9 = vpop.f32.mrf.mxu2 }
 0x197   : > { %v5539_v34 = vpop.f32.mrf.mxu0 }
 0x198   : > { %v5529_v38 = vpop.f32.mrf.mxu3 }
 0x19b   : > { %1156 = vmatmul.f32.gmra.mxu2 %v780_v55 }
 0x19d   : > { %1293 = vmatmul.f32.gmra.mxu3 %v780_v55 }
 0x19e   : > { %v5533_v5 = vpop.f32.mrf.mxu2 }
 0x19f   : > { %v5549_v46 = vpop.f32.mrf.mxu0 }
 0x1a0   : > { %v5537_v20 = vpop.f32.mrf.mxu3 }
 0x1a1   : > { %8629 = vst [vmem:[#allocation48_spill] sm:$0xff] %v5537_v20  ;;  %v1863_v20 = vld [vmem:[#allocation11 + $0x20] sm:$0xff] }
 0x1a2   : > { %4136 = vmatpush.msrb.mxu3 %v1863_v20  ;;  %1890 = vmatpush.msrb.mxu0 %v1863_v20 }
 0x1a3   : > { %1159 = vmatmul.f32.gmra.mxu2 %v781_v21 }
 0x1a4   : > { %4137 = vmatpush.msrb.mxu3 %v1862_v4  ;;  %1891 = vmatpush.msrb.mxu0 %v1862_v4 }
 0x1a5   : > { %1296 = vmatmul.f32.gmra.mxu3 %v781_v21  ;;  %v5559_v21 = vpop.f32.mrf.mxu1 }
 0x1a6   : > { %v5543_v24 = vpop.f32.mrf.mxu2  ;;  %8634 = vst [vmem:[#allocation53_spill] sm:$0xff] %v5559_v21  ;;  %v785_v21 = vld [vmem:[%s5201_s16 + $0x130] sm:$0xff] }
 0x1a7   : > { %v5563_v44 = vpop.f32.mrf.mxu0 }
 0x1a8   : > { %v5547_v55 = vpop.f32.mrf.mxu3 }
 0x1a9   : > { %8631 = vst [vmem:[#allocation50_spill] sm:$0xff] %v5547_v55  ;;  %v784_v55 = vld [vmem:[%s5201_s16 + $0x128] sm:$0xff] }
 0x1ab   : > { %1162 = vmatmul.f32.gmra.mxu2 %v782_v3 }
 0x1ad   : > { %1299 = vmatmul.f32.gmra.mxu3 %v782_v3  ;;  %v5569_v57 = vpop.f32.mrf.mxu1 }
 0x1ae   : > { %v5553_v50 = vpop.f32.mrf.mxu2  ;;  %8637 = vst [vmem:[#allocation56_spill] sm:$0xff] %v5569_v57 }
 0x1af   : > { %v5575_v35 = vpop.f32.mrf.mxu0 }
 0x1b0   : > { %v5557_v45 = vpop.f32.mrf.mxu3 }
 0x1b1   : > { %8633 = vst [vmem:[#allocation52_spill] sm:$0xff] %v5557_v45 }
 0x1b3   : > { %1165 = vmatmul.f32.gmra.mxu2 %v783_v42 }
 0x1b5   : > { %1302 = vmatmul.f32.gmra.mxu3 %v783_v42  ;;  %v5579_v31 = vpop.f32.mrf.mxu1 }
 0x1b6   : > { %v5561_v52 = vpop.f32.mrf.mxu2  ;;  %8640 = vst [vmem:[#allocation59_spill] sm:$0xff] %v5579_v31 }
 0x1b7   : > { %8635 = vst [vmem:[#allocation54_spill] sm:$0xff] %v5561_v52  ;;  %v5584_v57 = vpop.f32.mrf.mxu0 }
 0x1b8   : > { %v5567_v3 = vpop.f32.mrf.mxu3 }
 0x1b9   : > { %8636 = vst [vmem:[#allocation55_spill] sm:$0xff] %v5567_v3  ;;  %v786_v3 = vld [vmem:[%s5201_s16 + $0x138] sm:$0xff]  ;;  %s9074_s16 = sld [smem:[#allocation124_spill]] }
 0x1bb   : > { %1168 = vmatmul.f32.gmra.mxu2 %v784_v55 }
 0x1bd   : > { %1305 = vmatmul.f32.gmra.mxu3 %v784_v55  ;;  %v5588_v63 = vpop.f32.mrf.mxu1 }
 0x1be   : > { %v5571_v45 = vpop.f32.mrf.mxu2  ;;  %8642 = vst [vmem:[#allocation61_spill] sm:$0xff] %v5588_v63 }
 0x1bf   : > { %8638 = vst [vmem:[#allocation57_spill] sm:$0xff] %v5571_v45  ;;  %v5592_v45 = vpop.f32.mrf.mxu0 }
 0x1c0   : > { %v5577_v42 = vpop.f32.mrf.mxu3 }
 0x1c1   : > { %8639 = vst [vmem:[#allocation58_spill] sm:$0xff] %v5577_v42 }
 0x1c3   : > { %1171 = vmatmul.f32.gmra.mxu2 %v785_v21 }
 0x1c5   : > { %1308 = vmatmul.f32.gmra.mxu3 %v785_v21  ;;  %v5598_v52 = vpop.f32.mrf.mxu1 }
 0x1c6   : > { %v1124_v0 = vpop.f32.mrf.mxu2  ;;  %8646 = vst [vmem:[#allocation65_spill] sm:$0xff] %v5598_v52 }
 0x1c7   : > { %v5602_v61 = vpop.f32.mrf.mxu0 }
 0x1c8   : > { %v5582_v62 = vpop.f32.mrf.mxu3 }
 0x1c9   : > { %8641 = vst [vmem:[#allocation60_spill] sm:$0xff] %v5582_v62 }
 0x1cb   : > { %1174 = vmatmul.f32.gmra.mxu2 %v786_v3 }
 0x1cd   : > { %1311 = vmatmul.f32.gmra.mxu3 %v786_v3  ;;  %v5606_v3 = vpop.f32.mrf.mxu1 }
 0x1ce   : > { %v5586_v55 = vpop.f32.mrf.mxu2  ;;  %8649 = vst [vmem:[#allocation68_spill] sm:$0xff] %v5606_v3 }
 0x1d0   : > { %v5590_v42 = vpop.f32.mrf.mxu3 }
 0x1d1   : > { %8643 = vst [vmem:[#allocation62_spill] sm:$0xff] %v5590_v42  ;;  %v5610_v42 = vpop.f32.mrf.mxu0 }
 0x1d6   : > { %v5594_v21 = vpop.f32.mrf.mxu2 }
 0x1d7   : > { %8644 = vst [vmem:[#allocation63_spill] sm:$0xff] %v5594_v21  ;;  %v5612_v21 = vld [vmem:[#allocation13 + $0x78] sm:$0xff] }
 0x1d8   : > { %v5596_v31 = vpop.f32.mrf.mxu3  ;;  %8651 = vst [vmem:[#allocation70_spill] sm:$0xff] %v5612_v21  ;;  %1936 = vmatpush.msrb.mxu1 %v5612_v21 }
 0x1d9   : > { %8645 = vst [vmem:[#allocation64_spill] sm:$0xff] %v5596_v31  ;;  %v5623_v20 = vpop.f32.mrf.mxu0 }
 0x1da   : > { %8656 = vst [vmem:[#allocation75_spill] sm:$0xff] %v5623_v20 }
 0x1de   : > { %v5600_v62 = vpop.f32.mrf.mxu2 }
 0x1df   : > { %8647 = vst [vmem:[#allocation66_spill] sm:$0xff] %v5600_v62  ;;  %v5619_v62 = vpop.f32.mrf.mxu1 }
 0x1e0   : > { %v5604_v27 = vpop.f32.mrf.mxu3  ;;  %8654 = vst [vmem:[#allocation73_spill] sm:$0xff] %v5619_v62  ;;  %v5637_v62 = vperm.slane %v5390_v11, 1 }
 0x1e1   : > { %8648 = vst [vmem:[#allocation67_spill] sm:$0xff] %v5604_v27 }
 0x1e6   : > { %v5608_v63 = vpop.f32.mrf.mxu2 }
 0x1e7   : > { %8650 = vst [vmem:[#allocation69_spill] sm:$0xff] %v5608_v63  ;;  %v819_v63 = vld [vmem:[%s8658_s18] sm:$0x3]  ;;  %s4124_s18 = sshll.u32 %s5042_s22, 6  ;;  %s3913_s22 = scalar_lea.sflag [#allocation4], %s5189_s4 }
 0x1e8   : > { %v5614_v31 = vpop.f32.mrf.mxu3  ;;  %v5632_v21 = vperm.slane %v819_v63, 0 }
 0x1e9   : > { %8652 = vst [vmem:[#allocation71_spill] sm:$0xff] %v5614_v31  ;;  %v5630_v31 = vpop.f32.mrf.mxu1 }
 0x1ea   : > { %8659 = vst [vmem:[#allocation77_spill] sm:$0xff] %v5630_v31  ;;  %v5649_v20 = vadd.f32 %v5352_v54, %v5632_v21  ;;  %v5653_v31 = vadd.f32 %v5317_v39, %v5637_v62  ;;  %v5657_v11 = vadd.f32 %v5366_v60, %v5632_v21  ;;  %v5669_v54 = vadd.f32 %v5337_v47, %v5637_v62 }
 0x1eb   : > { %v5673_v39 = vadd.f32 %v5472_v16, %v5632_v21  ;;  %v5677_v60 = vadd.f32 %v5487_v36, %v5632_v21  ;;  %v5689_v47 = vadd.f32 %v5414_v23, %v5632_v21  ;;  %v5693_v16 = vadd.f32 %v5510_v59, %v5632_v21 }
 0x1ec   : > { %8661 = vst [vmem:[#allocation79_spill] sm:$0xff] %v5657_v11  ;;  %v5697_v36 = vadd.f32 %v5361_v58, %v5637_v62  ;;  %v5714_v59 = vadd.f32 %v5453_v49, %v5632_v21  ;;  %v5718_v58 = vadd.f32 %v5385_v8, %v5637_v62  ;;  %v5738_v8 = vadd.f32 %v5412_v22, %v5637_v62 }
 0x1ed   : > { %8663 = vst [vmem:[#allocation81_spill] sm:$0xff] %v5669_v54  ;;  %v1317_v49 = vmax.f32 %v5649_v20, %v5677_v60  ;;  %v5758_v22 = vadd.f32 %v5442_v40, %v5637_v62  ;;  %v5760_v54 = vperm.slane %v819_v63, 1  ;;  %v5777_v40 = vadd.f32 %v5457_v56, %v5637_v62 }
 0x1ee   : > { %v5617_v52 = vpop.f32.mrf.mxu2  ;;  %8666 = vst [vmem:[#allocation84_spill] sm:$0xff] %v5689_v47  ;;  %v5781_v63 = vadd.f32 %v5575_v35, %v5632_v21  ;;  %v5815_v56 = vadd.f32 %v5533_v5, %v5397_v1 }
 0x1ef   : > { %8653 = vst [vmem:[#allocation72_spill] sm:$0xff] %v5617_v52  ;;  %v5837_v5 = vadd.f32 %v5504_v17, %v5760_v54 }
 0x1f0   : > { %v5621_v27 = vpop.f32.mrf.mxu3  ;;  %8667 = vst [vmem:[#allocation85_spill] sm:$0xff] %v5693_v16 }
 0x1f1   : > { %8655 = vst [vmem:[#allocation74_spill] sm:$0xff] %v5621_v27  ;;  %v5639_v27 = vpop.f32.mrf.mxu0  ;;  %v5710_v23 = vpop.f32.mrf.mxu1 }
 0x1f2   : > { %8668 = vst [vmem:[#allocation86_spill] sm:$0xff] %v5697_v36 }
 0x1f3   : > { %8672 = vst [vmem:[#allocation90_spill] sm:$0xff] %v5714_v59 }
 0x1f4   : > { %8673 = vst [vmem:[#allocation91_spill] sm:$0xff] %v5718_v58  ;;  %v5746_v58 = vadd.f32 %v5427_v29, %v5637_v62  ;;  %v8681_v29 = vmax.f32 %v5493_v41, %v5496_v15  ;;  %v5819_v41 = vadd.f32 %v5489_v37, %v5760_v54  ;;  %v8691_v37 = vmax.f32 %v5403_v18, %v5406_v19 }
 0x1f5   : > { %8680 = vst [vmem:[#allocation98_spill] sm:$0xff] %v5758_v22 }
 0x1f6   : > { %v5625_v3 = vpop.f32.mrf.mxu2  ;;  %8677 = vst [vmem:[#allocation95_spill] sm:$0xff] %v5746_v58 }
 0x1f7   : > { %8657 = vst [vmem:[#allocation76_spill] sm:$0xff] %v5625_v3  ;;  %v5645_v3 = vadd.f32 %v5339_v48, %v5632_v21  ;;  %v5665_v48 = vadd.f32 %v5380_v7, %v5632_v21  ;;  %v5685_v7 = vadd.f32 %v5349_v53, %v5637_v62  ;;  %v5705_v53 = vadd.f32 %v5373_v2, %v5637_v62 }
 0x1f8   : > { %v5634_v52 = vpop.f32.mrf.mxu3  ;;  %v5726_v2 = vadd.f32 %v5539_v34, %v5632_v21  ;;  %v1319_v34 = vmax.f32 %v5657_v11, %v5693_v16  ;;  %8684 = vst [vmem:[#allocation101_spill] sm:$0xff] %v5777_v40 }
 0x1f9   : > { %8660 = vst [vmem:[#allocation78_spill] sm:$0xff] %v5634_v52  ;;  %v5661_v52 = vadd.f32 %v5327_v43, %v5637_v62  ;;  %v5681_v43 = vadd.f32 %v5399_v14, %v5632_v21  ;;  %v5701_v14 = vadd.f32 %v5433_v33, %v5632_v21  ;;  %v5722_v33 = vadd.f32 %v5527_v32, %v5632_v21  ;;  %v908_v11 = vpop.f32.mrf.mxu0 }
 0x1fa   : > { %8662 = vst [vmem:[#allocation80_spill] sm:$0xff] %v5665_v48 }
 0x1fb   : > { %8664 = vst [vmem:[#allocation82_spill] sm:$0xff] %v5681_v43  ;;  %v1323_v58 = vmax.f32 %v5681_v43, %v5726_v2 }
 0x1fc   : > { %8665 = vst [vmem:[#allocation83_spill] sm:$0xff] %v5685_v7  ;;  %v5708_v7 = vadd.f32 %v1124_v0, %v5397_v1  ;;  %v1315_v0 = vmax.f32 %v5645_v3, %v5673_v39 }
 0x1fd   : > { %8669 = vst [vmem:[#allocation87_spill] sm:$0xff] %v5701_v14 }
 0x1fe   : > { %v5641_v4 = vpop.f32.mrf.mxu2  ;;  %8670 = vst [vmem:[#allocation88_spill] sm:$0xff] %v5705_v53  ;;  %v5732_v53 = vadd.f32 %v5394_v13, %v5637_v62  ;;  %v5750_v13 = vadd.f32 %v5549_v46, %v5632_v21  ;;  %v5766_v16 = vmax.f32 %v8681_v29, %v5708_v7  ;;  %v5785_v29 = vadd.f32 %v5470_v12, %v5637_v62 }
 0x1ff   : > { %8671 = vst [vmem:[#allocation89_spill] sm:$0xff] %v5708_v7  ;;  %v5793_v7 = vadd.f32 %v5584_v57, %v5632_v21  ;;  %v5803_v12 = vadd.f32 %v5485_v30, %v5637_v62  ;;  %v5811_v57 = vadd.f32 %v5502_v6, %v5637_v62  ;;  %v5823_v30 = vadd.f32 %v5586_v55, %v5397_v1 }
 0x200   : > { %8674 = vst [vmem:[#allocation92_spill] sm:$0xff] %v5722_v33  ;;  %v5740_v32 = vpop.f32.mrf.mxu3  ;;  %v1325_v15 = vmax.f32 %v5689_v47, %v5750_v13  ;;  %v5833_v6 = vadd.f32 %v5602_v61, %v5632_v21  ;;  %v5852_v61 = vadd.f32 %v5521_v10, %v5760_v54  ;;  %v8695_v10 = vmax.f32 %v5418_v25, %v5421_v26  ;;  %v5892_v47 = vld [vmem:[#allocation13 + $0x70] sm:$0xff] }
 0x201   : > { %8675 = vst [vmem:[#allocation93_spill] sm:$0xff] %v5726_v2  ;;  %1937 = vmatpush.msrb.mxu1 %v5892_v47  ;;  %v8714_v2 = vld [vmem:[#allocation37_spill] sm:$0xff] }
 0x202   : > { %8676 = vst [vmem:[#allocation94_spill] sm:$0xff] %v5732_v53  ;;  %v5754_v53 = vadd.f32 %v5563_v44, %v5632_v21  ;;  %v1321_v44 = vmax.f32 %v5665_v48, %v5722_v33  ;;  %v8720_v48 = vld [vmem:[#allocation39_spill] sm:$0xff] }
 0x203   : > { %8678 = vst [vmem:[#allocation96_spill] sm:$0xff] %v5750_v13 }
 0x204   : > { %8679 = vst [vmem:[#allocation97_spill] sm:$0xff] %v5754_v53  ;;  %v1327_v35 = vmax.f32 %v5701_v14, %v5754_v53  ;;  %v5829_v53 = vadd.f32 %v5519_v51, %v5637_v62  ;;  %v5848_v51 = vadd.f32 %v5529_v38, %v5637_v62  ;;  %v5869_v38 = vadd.f32 %v5531_v28, %v5760_v54  ;;  %v8698_v14 = vld [vmem:[#allocation47_spill] sm:$0xff] }
 0x205   : > { %8682 = vst [vmem:[#allocation99_spill] sm:$0xff] %v5766_v16  ;;  %v8704_v16 = vld [vmem:[#allocation54_spill] sm:$0xff] }
 0x206   : > { %v1148_v36 = vpop.f32.mrf.mxu2  ;;  %8685 = vst [vmem:[#allocation102_spill] sm:$0xff] %v5781_v63 }
 0x207   : > { %v5769_v46 = vadd.f32 %v1148_v36, %v5397_v1  ;;  %8686 = vst [vmem:[#allocation103_spill] sm:$0xff] %v5785_v29  ;;  %v5789_v36 = vadd.f32 %v5523_v9, %v5397_v1  ;;  %v5807_v9 = vadd.f32 %v5592_v45, %v5632_v21  ;;  %v1329_v45 = vmax.f32 %v5714_v59, %v5781_v63 }
 0x208   : > { %8687 = vst [vmem:[#allocation104_spill] sm:$0xff] %v5803_v12  ;;  %v5861_v63 = vadd.f32 %v5543_v24, %v5397_v1  ;;  %v5875_v59 = vmax.f32 %v8695_v10, %v5815_v56  ;;  %v8697_v24 = vld [vmem:[#allocation46_spill] sm:$0xff]  ;;  %v5890_v13 = vpop.f32.mrf.mxu3  ;;  %v5895_v10 = vmax.f32 %v1319_v34, %v5833_v6  ;;  %v5916_v34 = vadd.f32 %v5639_v27, %v5632_v21 }
 0x209   : > { %8683 = vst [vmem:[#allocation100_spill] sm:$0xff] %v5769_v46  ;;  %v1332_v55 = vmax.f32 %v8691_v37, %v5789_v36  ;;  %v5857_v17 = vmax.f32 %v1317_v49, %v5807_v9  ;;  %v5879_v49 = vadd.f32 %v5553_v50, %v5397_v1  ;;  %v8703_v46 = vld [vmem:[#allocation48_spill] sm:$0xff]  ;;  %v8716_v27 = vld [vmem:[#allocation50_spill] sm:$0xff] }
 0x20a   : > { %8688 = vst [vmem:[#allocation105_spill] sm:$0xff] %v5811_v57  ;;  %v5844_v57 = vmax.f32 %v1315_v0, %v5793_v7  ;;  %v5865_v0 = vadd.f32 %v5610_v42, %v5632_v21  ;;  %v8699_v42 = vmax.f32 %v8697_v24, %v8698_v14  ;;  %v5899_v50 = vadd.f32 %v8703_v46, %v5637_v62  ;;  %v8711_v46 = vld [vmem:[#allocation49_spill] sm:$0xff] }
 0x20b   : > { %8689 = vst [vmem:[#allocation106_spill] sm:$0xff] %v5823_v30  ;;  %v5920_v24 = vadd.f32 %v8711_v46, %v5760_v54  ;;  %v5935_v33 = vadd.f32 %v8716_v27, %v5637_v62  ;;  %v5938_v46 = vadd.f32 %v908_v11, %v5632_v21  ;;  %v8726_v27 = vld [vmem:[#allocation63_spill] sm:$0xff]  ;;  %v8727_v11 = vld [vmem:[#allocation40_spill] sm:$0xff] }
 0x20c   : > { %8690 = vst [vmem:[#allocation107_spill] sm:$0xff] %v5829_v53  ;;  %v5854_v53 = vpop.f32.mrf.mxu1  ;;  %v5885_v12 = vmax.f32 %v8699_v42, %v5823_v30  ;;  %v8706_v42 = vld [vmem:[#allocation75_spill] sm:$0xff] }
 0x20d   : > { %8692 = vst [vmem:[#allocation108_spill] sm:$0xff] %v5852_v61  ;;  %v5907_v30 = vadd.f32 %v8706_v42, %v5632_v21  ;;  %v8713_v42 = vld [vmem:[#allocation36_spill] sm:$0xff]  ;;  %v8728_v61 = vld [vmem:[#allocation41_spill] sm:$0xff] }
 0x20e   : > { %8693 = vst [vmem:[#allocation109_spill] sm:$0xff] %v5865_v0  ;;  %v1151_v37 = vpop.f32.mrf.mxu2  ;;  %v8715_v43 = vmax.f32 %v8713_v42, %v8714_v2 }
 0x20f   : > { %8694 = vst [vmem:[#allocation110_spill] sm:$0xff] %v5869_v38  ;;  %v5888_v28 = vadd.f32 %v1151_v37, %v5397_v1  ;;  %v5903_v38 = vadd.f32 %v8704_v16, %v5397_v1  ;;  %v8708_v37 = vld [vmem:[#allocation57_spill] sm:$0xff]  ;;  %v911_v16 = vpop.f32.mrf.mxu0 }
 0x210   : > { %8696 = vst [vmem:[#allocation111_spill] sm:$0xff] %v5879_v49  ;;  %v5912_v14 = vadd.f32 %v8708_v37, %v5397_v1  ;;  %v5928_v40 = vmax.f32 %v8715_v43, %v5861_v63  ;;  %v5931_v37 = vmax.f32 %v1321_v44, %v5865_v0  ;;  %v8724_v44 = vld [vmem:[#allocation51_spill] sm:$0xff] }
 0x211   : > { %8700 = vst [vmem:[#allocation112_spill] sm:$0xff] %v5885_v12  ;;  %v8722_v12 = vld [vmem:[#allocation52_spill] sm:$0xff]  ;;  %v5952_v0 = vadd.f32 %v8724_v44, %v5760_v54  ;;  %v8734_v44 = vld [vmem:[#allocation42_spill] sm:$0xff] }
 0x212   : > { %8701 = vst [vmem:[#allocation113_spill] sm:$0xff] %v5888_v28  ;;  %v5948_v43 = vadd.f32 %v8722_v12, %v5637_v62  ;;  %v8732_v12 = vld [vmem:[#allocation53_spill] sm:$0xff] }
 0x213   : > { %8702 = vst [vmem:[#allocation114_spill] sm:$0xff] %v5892_v47  ;;  %v1131_v47 = vadd.f32 %v8726_v27, %v5397_v1 }
 0x214   : > { %8705 = vst [vmem:[#allocation48_spill] sm:$0xff] %v5903_v38 }
 0x215   : > { %8707 = vst [vmem:[#allocation54_spill] sm:$0xff] %v5907_v30 }
 0x216   : > { %8709 = vst [vmem:[#allocation75_spill] sm:$0xff] %v5912_v14 }
 0x217   : > { %8710 = vst [vmem:[#allocation57_spill] sm:$0xff] %v5916_v34 }
 0x218   : > { %8712 = vst [vmem:[#allocation49_spill] sm:$0xff] %v5920_v24  ;;  %v8719_v24 = vld [vmem:[#allocation38_spill] sm:$0xff] }
 0x219   : > { %8717 = vst [vmem:[#allocation36_spill] sm:$0xff] %v5935_v33  ;;  %v8721_v29 = vmax.f32 %v8719_v24, %v8720_v48  ;;  %v8729_v33 = vmax.f32 %v8727_v11, %v8728_v61  ;;  %v5979_v61 = vmax.f32 %v1325_v15, %v5916_v34  ;;  %v8746_v15 = vld [vmem:[#allocation59_spill] sm:$0xff] }
 0x21a   : > { %8718 = vst [vmem:[#allocation37_spill] sm:$0xff] %v5938_v46  ;;  %v6002_v34 = vadd.f32 %v8746_v15, %v5760_v54  ;;  %v8752_v15 = vld [vmem:[#allocation62_spill] sm:$0xff] }
 0x21b   : > { %v5944_v28 = vmax.f32 %v8721_v29, %v5879_v49  ;;  %8723 = vst [vmem:[#allocation50_spill] sm:$0xff] %v5948_v43  ;;  %v5960_v22 = vmax.f32 %v8729_v33, %v5903_v38  ;;  %v5963_v29 = vmax.f32 %v1323_v58, %v5907_v30  ;;  %v5966_v49 = vadd.f32 %v911_v16, %v5632_v21  ;;  %v8738_v33 = vld [vmem:[#allocation55_spill] sm:$0xff]  ;;  %v8740_v21 = vld [vmem:[#allocation56_spill] sm:$0xff] }
 0x21c   : > { %8725 = vst [vmem:[#allocation38_spill] sm:$0xff] %v5952_v0  ;;  %v5970_v43 = vadd.f32 %v8732_v12, %v5760_v54  ;;  %v8735_v0 = vld [vmem:[#allocation43_spill] sm:$0xff]  ;;  %v5983_v58 = vadd.f32 %v8738_v33, %v5637_v62  ;;  %v5987_v16 = vadd.f32 %v8740_v21, %v5760_v54  ;;  %v5990_v12 = vmax.f32 %v1327_v35, %v5938_v46  ;;  %v1154_v33 = vpop.f32.mrf.mxu2  ;;  %v8749_v35 = vld [vmem:[#allocation69_spill] sm:$0xff] }
 0x21d   : > { %8730 = vst [vmem:[#allocation52_spill] sm:$0xff] %v5963_v29  ;;  %v8736_v27 = vmax.f32 %v8734_v44, %v8735_v0  ;;  %v6010_v46 = vadd.f32 %v8749_v35, %v5397_v1  ;;  %v6020_v0 = vadd.f32 %v8752_v15, %v5637_v62  ;;  %v8760_v15 = vld [vmem:[#allocation68_spill] sm:$0xff] }
 0x21e   : > { %8731 = vst [vmem:[#allocation51_spill] sm:$0xff] %v5966_v49 }
 0x21f   : > { %8733 = vst [vmem:[#allocation63_spill] sm:$0xff] %v5970_v43  ;;  %v5976_v48 = vmax.f32 %v8736_v27, %v5912_v14  ;;  %v8743_v43 = vld [vmem:[#allocation58_spill] sm:$0xff] }
 0x220   : > { %8737 = vst [vmem:[#allocation53_spill] sm:$0xff] %v5979_v61  ;;  %v5994_v30 = vadd.f32 %v8743_v43, %v5637_v62  ;;  %v8745_v27 = vld [vmem:[#allocation66_spill] sm:$0xff]  ;;  %v1155_v43 = vadd.f32 %v1154_v33, %v5397_v1  ;;  %v8757_v33 = vld [vmem:[#allocation64_spill] sm:$0xff]  ;;  %v8762_v61 = vld [vmem:[#allocation67_spill] sm:$0xff] }
 0x221   : > { %8739 = vst [vmem:[#allocation55_spill] sm:$0xff] %v5983_v58  ;;  %v5998_v14 = vadd.f32 %v8745_v27, %v5397_v1  ;;  %v8747_v58 = vld [vmem:[#allocation60_spill] sm:$0xff]  ;;  %v979_v27 = vpop.f32.mrf.mxu1  ;;  %v6033_v44 = vadd.f32 %v8757_v33, %v5637_v62  ;;  %v6047_v38 = vadd.f32 %v8762_v61, %v5637_v62 }
 0x222   : > { %8741 = vst [vmem:[#allocation56_spill] sm:$0xff] %v5987_v16  ;;  %v6006_v21 = vadd.f32 %v8747_v58, %v5637_v62  ;;  %v1333_v16 = vmax.f32 %v1332_v55, %v1131_v47  ;;  %v8754_v58 = vld [vmem:[#allocation61_spill] sm:$0xff]  ;;  %v8756_v55 = vld [vmem:[#allocation72_spill] sm:$0xff] }
 0x223   : > { %8742 = vst [vmem:[#allocation115_spill] sm:$0xff] %v5990_v12  ;;  %v6016_v12 = vmax.f32 %v1329_v45, %v5966_v49  ;;  %v6028_v35 = vadd.f32 %v8756_v55, %v5397_v1  ;;  %v8758_v45 = vld [vmem:[#allocation65_spill] sm:$0xff]  ;;  %v1337_v55 = vmax.f32 %v5875_v59, %v5998_v14  ;;  %v8763_v33 = vld [vmem:[#allocation76_spill] sm:$0xff] }
 0x224   : > { %8744 = vst [vmem:[#allocation58_spill] sm:$0xff] %v5994_v30  ;;  %v6013_v30 = vld [vmem:[#allocation13 + $0x68] sm:$0xff]  ;;  %v6037_v49 = vadd.f32 %v8758_v45, %v5760_v54  ;;  %v6051_v11 = vadd.f32 %v8763_v33, %v5397_v1 }
 0x225   : > { %8748 = vst [vmem:[#allocation66_spill] sm:$0xff] %v6006_v21  ;;  %v6024_v21 = vadd.f32 %v8754_v58, %v5760_v54  ;;  %1938 = vmatpush.msrb.mxu1 %v6013_v30  ;;  %v1334_v58 = vmax.f32 %v1333_v16, %v1155_v43  ;;  %v8764_v45 = vld [vmem:[#allocation73_spill] sm:$0xff]  ;;  %v8766_v16 = vld [vmem:[#allocation71_spill] sm:$0xff] }
 0x226   : > { %8750 = vst [vmem:[#allocation59_spill] sm:$0xff] %v6013_v30  ;;  %v6055_v29 = vadd.f32 %v8764_v45, %v5760_v54  ;;  %v8768_v59 = vld [vmem:[#allocation77_spill] sm:$0xff]  ;;  %v1349_v33 = vmax.f32 %v5960_v22, %v6051_v11  ;;  %v8792_v22 = vld [vmem:[#allocation80_spill] sm:$0xff] }
 0x227   : > { %8751 = vst [vmem:[#allocation60_spill] sm:$0xff] %v6016_v12  ;;  %v1288_v12 = vpop.f32.mrf.mxu3  ;;  %v6065_v30 = vadd.f32 %v8768_v59, %v5760_v54  ;;  %v1363_v61 = vmax.f32 %v5844_v57, %v1334_v58 }
 0x228   : > { %8753 = vst [vmem:[#allocation69_spill] sm:$0xff] %v6020_v0  ;;  %v6041_v0 = vadd.f32 %v8760_v15, %v5760_v54  ;;  %v6076_v15 = vadd.f32 %v5641_v4, %v5397_v1 }
 0x229   : > { %8755 = vst [vmem:[#allocation62_spill] sm:$0xff] %v6024_v21  ;;  %v1443_v59 = vsub.f32 %v5403_v18, %v1363_v61  ;;  %v1459_v57 = vsub.f32 %v5789_v36, %v1363_v61  ;;  %v1467_v58 = vsub.f32 %v1131_v47, %v1363_v61  ;;  %v1379_v4 = vsub.f32 %v5673_v39, %v1363_v61 }
 0x22a   : > { %8759 = vst [vmem:[#allocation61_spill] sm:$0xff] %v6037_v49  ;;  %v8770_v49 = vld [vmem:[#allocation74_spill] sm:$0xff]  ;;  %v1353_v18 = vmax.f32 %v5976_v48, %v6076_v15 }
 0x22b   : > { %8761 = vst [vmem:[#allocation72_spill] sm:$0xff] %v6041_v0  ;;  %v6061_v0 = vadd.f32 %v8766_v16, %v5637_v62  ;;  %v6072_v45 = vadd.f32 %v8770_v49, %v5637_v62  ;;  %v6080_v16 = vadd.f32 %v5710_v23, %v5760_v54  ;;  %v1475_v49 = vsub.f32 %v1155_v43, %v1363_v61 }
 0x22c   : > { %8765 = vst [vmem:[#allocation64_spill] sm:$0xff] %v6055_v29  ;;  %v1157_v29 = vpop.f32.mrf.mxu2  ;;  %v1515_v23 = vmul.f32 1.442695, %v1459_v57  ;;  %v1531_v36 = vmul.f32 1.442695, %v1467_v58  ;;  %v1387_v43 = vsub.f32 %v5793_v7, %v1363_v61  ;;  %v6106_v57 = vadd.f32 %v979_v27, %v5760_v54 }
 0x22d   : > { %8767 = vst [vmem:[#allocation65_spill] sm:$0xff] %v6061_v0  ;;  %v1483_v0 = vmul.f32 1.442695, %v1443_v59  ;;  %v1547_v39 = vmul.f32 1.442695, %v1475_v49  ;;  %v982_v59 = vpop.f32.mrf.mxu1  ;;  %v6110_v7 = vadd.f32 %v5854_v53, %v5760_v54 }
 0x22e   : > { %8769 = vst [vmem:[#allocation68_spill] sm:$0xff] %v6065_v30  ;;  %v1451_v30 = vsub.f32 %v5406_v19, %v1363_v61  ;;  %v8773_v19 = vld [vmem:[#allocation78_spill] sm:$0xff]  ;;  %v6119_v27 = vadd.f32 %v982_v59, %v5760_v54 }
 0x22f   : > { %8771 = vst [vmem:[#allocation67_spill] sm:$0xff] %v6072_v45  ;;  %v1371_v45 = vsub.f32 %v5645_v3, %v1363_v61  ;;  %v6094_v47 = vadd.f32 %v8773_v19, %v5637_v62  ;;  %v6099_v3 = vadd.f32 %v5740_v32, %v5637_v62  ;;  %4328 = vpow2.f32 %v1483_v0  ;;  %v1861_v61 = vld [vmem:[#allocation11 + $0x10] sm:$0xff] }
 0x230   : > { %8772 = vst [vmem:[#allocation76_spill] sm:$0xff] %v6080_v16  ;;  %v1499_v21 = vmul.f32 1.442695, %v1451_v30  ;;  %v1158_v16 = vadd.f32 %v1157_v29, %v5397_v1  ;;  %v6103_v29 = vadd.f32 %v5890_v13, %v5637_v62  ;;  %v1411_v0 = vmul.f32 1.442695, %v1379_v4  ;;  %1892 = vmatpush.msrb.mxu0 %v1861_v61  ;;  %4138 = vmatpush.msrb.mxu3 %v1861_v61 }
 0x231   : > { %v1395_v19 = vmul.f32 1.442695, %v1371_v45  ;;  %v6116_v13 = vadd.f32 %v1288_v12, %v5637_v62 }
 0x232   : > { %v1338_v30 = vmax.f32 %v1337_v55, %v1158_v16  ;;  %4330 = vpow2.f32 %v1499_v21  ;;  %v1291_v55 = vpop.f32.mrf.mxu3  ;;  %v1427_v21 = vmul.f32 1.442695, %v1387_v43 }
 0x233   : > { %4332 = vpow2.f32 %v1515_v23  ;;  %v1292_v49 = vadd.f32 %v1291_v55, %v5637_v62 }
 0x234   : > { %v6113_v32 = vmax.f32 %v5857_v17, %v1338_v30  ;;  %4334 = vpow2.f32 %v1531_v36  ;;  %v1160_v4 = vpop.f32.mrf.mxu2 }
 0x235   : > { %4336 = vpow2.f32 %v1547_v39  ;;  %v4329_v23 = vpop.eup %4328 }
 0x236   : > { %v1444_v53 = vsub.f32 %v5418_v25, %v6113_v32  ;;  %v1452_v17 = vsub.f32 %v5421_v26, %v6113_v32  ;;  %v1460_v45 = vsub.f32 %v5815_v56, %v6113_v32  ;;  %v1468_v12 = vsub.f32 %v5998_v14, %v6113_v32 }
 0x237   : > { %v1476_v58 = vsub.f32 %v1158_v16, %v6113_v32  ;;  %4338 = vpow2.f32 %v1395_v19  ;;  %v1603_v26 = vmul.f32 %v4329_v23, %v5653_v31  ;;  %v1372_v56 = vsub.f32 %v5649_v20, %v6113_v32 }
 0x238   : > { %v1485_v36 = vmul.f32 1.442695, %v1444_v53  ;;  %v1501_v43 = vmul.f32 1.442695, %v1452_v17  ;;  %v1517_v39 = vmul.f32 1.442695, %v1460_v45  ;;  %4340 = vpow2.f32 %v1411_v0  ;;  %v4331_v25 = vpop.eup %4330 }
 0x239   : > { %v1533_v30 = vmul.f32 1.442695, %v1468_v12  ;;  %4342 = vpow2.f32 %v1427_v21  ;;  %v4333_v14 = vpop.eup %4332  ;;  %v1699_v59 = vadd.f32 %v4331_v25, %v4329_v23  ;;  %v1611_v16 = vmul.f32 %v4331_v25, %v5738_v8 }
 0x23a   : > { %4344 = vpow2.f32 %v1485_v36  ;;  %v6136_v19 = vadd.f32 %v1160_v4, %v5397_v1  ;;  %v4335_v55 = vpop.eup %4334  ;;  %v1549_v61 = vmul.f32 1.442695, %v1476_v58  ;;  %v1619_v0 = vmul.f32 %v4333_v14, %v5848_v51 }
 0x23b   : > { %4346 = vpow2.f32 %v1501_v43  ;;  %v1380_v21 = vsub.f32 %v5677_v60, %v6113_v32  ;;  %v4337_v31 = vpop.eup %4336  ;;  %v1700_v53 = vadd.f32 %v4333_v14, %v1699_v59  ;;  %v1643_v20 = vadd.f32 %v1611_v16, %v1603_v26  ;;  %v1860_v14 = vld [vmem:[#allocation11 + $0x8] sm:$0xff]  ;;  %v1294_v16 = vpop.f32.mrf.mxu3 }
 0x23c   : > { %4348 = vpow2.f32 %v1517_v39  ;;  %v1388_v17 = vsub.f32 %v5807_v9, %v6113_v32  ;;  %v1627_v8 = vmul.f32 %v4335_v55, %v6033_v44  ;;  %v8774_v12 = vmax.f32 %v5928_v40, %v6010_v46  ;;  %1893 = vmatpush.msrb.mxu0 %v1860_v14  ;;  %4139 = vmatpush.msrb.mxu3 %v1860_v14 }
 0x23d   : > { %v4339_v45 = vpop.eup %4338  ;;  %4350 = vpow2.f32 %v1533_v30  ;;  %v1397_v51 = vmul.f32 1.442695, %v1372_v56  ;;  %v1701_v23 = vadd.f32 %v4335_v55, %v1700_v53  ;;  %v1635_v36 = vmul.f32 %v4337_v31, %v1292_v49  ;;  %v6154_v56 = vld [vmem:[#allocation13 + $0x60] sm:$0xff] }
 0x23e   : > { %v1342_v58 = vmax.f32 %v8774_v12, %v6136_v19  ;;  %v4341_v4 = vpop.eup %4340  ;;  %v1563_v60 = vmul.f32 %v4339_v45, %v5819_v41  ;;  %v1644_v43 = vadd.f32 %v1643_v20, %v1619_v0  ;;  %1939 = vmatpush.msrb.mxu1 %v6154_v56 }
 0x23f   : > { %v4343_v39 = vpop.eup %4342  ;;  %v1571_v25 = vmul.f32 %v4341_v4, %v6002_v34  ;;  %v1683_v9 = vadd.f32 %v4341_v4, %v4339_v45  ;;  %4352 = vpow2.f32 %v1397_v51  ;;  %v1702_v30 = vadd.f32 %v4337_v31, %v1701_v23 }
 0x240   : > { %v6151_v32 = vmax.f32 %v5895_v10, %v1342_v58  ;;  %v4345_v44 = vpop.eup %4344  ;;  %4354 = vpow2.f32 %v1549_v61  ;;  %v1579_v40 = vmul.f32 %v4343_v39, %v6106_v57  ;;  %v1645_v26 = vadd.f32 %v1644_v43, %v1627_v8 }
 0x241   : > { %v4347_v41 = vpop.eup %4346  ;;  %v1587_v49 = vadd.f32 %v1571_v25, %v1563_v60  ;;  %v1684_v59 = vadd.f32 %v4343_v39, %v1683_v9  ;;  %v1295_v51 = vadd.f32 %v1294_v16, %v5637_v62  ;;  %v1413_v23 = vmul.f32 1.442695, %v1380_v21  ;;  %v1163_v60 = vpop.f32.mrf.mxu2 }
 0x242   : > { %v1445_v34 = vsub.f32 %v8713_v42, %v6151_v32  ;;  %v1453_v10 = vsub.f32 %v8714_v2, %v6151_v32  ;;  %v4349_v55 = vpop.eup %4348  ;;  %v1703_v61 = vadd.f32 %v4347_v41, %v4345_v44  ;;  %v1646_v0 = vadd.f32 %v1645_v26, %v1635_v36 }
 0x243   : > { %v1461_v57 = vsub.f32 %v5861_v63, %v6151_v32  ;;  %v1469_v31 = vsub.f32 %v6010_v46, %v6151_v32  ;;  %v4351_v53 = vpop.eup %4350  ;;  %v1588_v20 = vadd.f32 %v1587_v49, %v1579_v40  ;;  %v6165_v45 = vadd.f32 %v1702_v30, %v1684_v59  ;;  %v8775_v30 = vld [vmem:[#allocation95_spill] sm:$0xff] }
 0x244   : > { %v1477_v2 = vsub.f32 %v6136_v19, %v6151_v32  ;;  %v1487_v42 = vmul.f32 1.442695, %v1445_v34  ;;  %v1704_v8 = vadd.f32 %v4349_v55, %v1703_v61  ;;  %v1503_v12 = vmul.f32 1.442695, %v1453_v10  ;;  %v8778_v34 = vld [vmem:[#allocation85_spill] sm:$0xff] }
 0x245   : > { %v1519_v58 = vmul.f32 1.442695, %v1461_v57  ;;  %v6170_v4 = vpop.eup %4352  ;;  %4356 = vrcp.f32 %v6165_v45  ;;  %v6173_v63 = vadd.f32 %v1646_v0, %v1588_v20  ;;  %v1535_v46 = vmul.f32 1.442695, %v1469_v31 }
 0x246   : > { %v4355_v36 = vpop.eup %4354  ;;  %v1705_v43 = vadd.f32 %v4351_v53, %v1704_v8  ;;  %4358 = vpow2.f32 %v1487_v42  ;;  %v1551_v19 = vmul.f32 1.442695, %v1477_v2  ;;  %v1604_v39 = vmul.f32 %v4345_v44, %v5661_v52  ;;  %v985_v52 = vpop.f32.mrf.mxu1  ;;  %v6204_v8 = vld [vmem:[#allocation13 + $0x58] sm:$0xff] }
 0x247   : > { %4360 = vpow2.f32 %v1503_v12  ;;  %v1429_v25 = vmul.f32 1.442695, %v1388_v17  ;;  %v6178_v9 = vmul.f32 %v6170_v4, %v5837_v5  ;;  %v1612_v40 = vmul.f32 %v4347_v41, %v8775_v30  ;;  %v8776_v17 = vld [vmem:[#allocation79_spill] sm:$0xff]  ;;  %1940 = vmatpush.msrb.mxu1 %v6204_v8 }
 0x248   : > { %v6181_v26 = vadd.f32 %v4355_v36, %v1705_v43  ;;  %4362 = vpow2.f32 %v1519_v58  ;;  %v1620_v21 = vmul.f32 %v4349_v55, %v5899_v50  ;;  %v1164_v14 = vadd.f32 %v1163_v60, %v5397_v1 }
 0x249   : > { %4364 = vpow2.f32 %v1535_v46  ;;  %v1628_v49 = vmul.f32 %v4351_v53, %v6047_v38  ;;  %v1647_v59 = vadd.f32 %v1612_v40, %v1604_v39  ;;  %v1373_v44 = vsub.f32 %v8776_v17, %v6151_v32 }
 0x24a   : > { %4366 = vpow2.f32 %v1551_v19  ;;  %v8777_v5 = vmax.f32 %v5944_v28, %v6028_v35  ;;  %v1381_v10 = vsub.f32 %v8778_v34, %v6151_v32  ;;  %v1389_v50 = vsub.f32 %v5833_v6, %v6151_v32  ;;  %v1297_v6 = vpop.f32.mrf.mxu3  ;;  %v8779_v32 = vld [vmem:[#allocation81_spill] sm:$0xff] }
 0x24b   : > { %v6195_v16 = vpop.eup %4356  ;;  %4368 = vpow2.f32 %v1413_v23  ;;  %v1636_v38 = vmul.f32 %v4355_v36, %v1295_v51  ;;  %v1648_v55 = vadd.f32 %v1647_v59, %v1620_v21  ;;  %v1399_v61 = vmul.f32 1.442695, %v1373_v44  ;;  %v8781_v23 = vld [vmem:[#allocation111_spill] sm:$0xff]  ;;  %v8782_v44 = vld [vmem:[#allocation98_spill] sm:$0xff] }
 0x24c   : > { %v1346_v41 = vmax.f32 %v8777_v5, %v1164_v14  ;;  %v4359_v0 = vpop.eup %4358  ;;  %4370 = vpow2.f32 %v1429_v25  ;;  %v6201_v28 = vadd.f32 %v985_v52, %v5760_v54  ;;  %v1415_v31 = vmul.f32 1.442695, %v1381_v10 }
 0x24d   : > { %v4361_v53 = vpop.eup %4360  ;;  %v1649_v20 = vadd.f32 %v1648_v55, %v1628_v49  ;;  %4372 = vpow2.f32 %v1399_v61  ;;  %v1431_v2 = vmul.f32 1.442695, %v1389_v50  ;;  %v1605_v42 = vmul.f32 %v4359_v0, %v8779_v32  ;;  %v1166_v49 = vpop.f32.mrf.mxu2 }
 0x24e   : > { %v6198_v57 = vmax.f32 %v5931_v37, %v1346_v41  ;;  %v4363_v12 = vpop.eup %4362  ;;  %v1707_v58 = vadd.f32 %v4361_v53, %v4359_v0  ;;  %v8780_v37 = vld [vmem:[#allocation39_spill] sm:$0xff]  ;;  %4374 = vpow2.f32 %v1415_v31  ;;  %v1298_v21 = vadd.f32 %v1297_v6, %v5637_v62  ;;  %v1859_v41 = vld [vmem:[#allocation11] sm:$0xff]  ;;  %v8784_v31 = vld [vmem:[#allocation70_spill] sm:$0xff] }
 0x24f   : > { %v4365_v36 = vpop.eup %4364  ;;  %v6213_v43 = vadd.f32 %v1649_v20, %v1636_v38  ;;  %4376 = vpow2.f32 %v1431_v2  ;;  %v1613_v5 = vmul.f32 %v4361_v53, %v8782_v44  ;;  %1894 = vmatpush.msrb.mxu0 %v1859_v41  ;;  %4140 = vmatpush.msrb.mxu3 %v1859_v41  ;;  %v1167_v0 = vadd.f32 %v1166_v49, %v5397_v1  ;;  %v8785_v6 = vld [vmem:[#allocation36_spill] sm:$0xff] }
 0x250   : > { %v1446_v51 = vsub.f32 %v8719_v24, %v6198_v57  ;;  %v1454_v46 = vsub.f32 %v8780_v37, %v6198_v57  ;;  %v1462_v60 = vsub.f32 %v8781_v23, %v6198_v57  ;;  %v1470_v19 = vsub.f32 %v6028_v35, %v6198_v57  ;;  %v4367_v25 = vpop.eup %4366  ;;  %v8783_v35 = vld [vmem:[#allocation62_spill] sm:$0xff]  ;;  %v8787_v37 = vld [vmem:[#allocation65_spill] sm:$0xff]  ;;  %v8791_v41 = vld [vmem:[#allocation52_spill] sm:$0xff] }
 0x251   : > { %v1478_v39 = vsub.f32 %v1164_v14, %v6198_v57  ;;  %v1708_v30 = vadd.f32 %v4363_v12, %v1707_v58  ;;  %v4369_v59 = vpop.eup %4368  ;;  %1993 = vmatpush.msra.mxu0 %v8784_v31  ;;  %v1621_v32 = vmul.f32 %v4363_v12, %v8785_v6  ;;  %v1651_v23 = vadd.f32 %v1613_v5, %v1605_v42  ;;  %v8790_v42 = vld [vmem:[#allocation59_spill] sm:$0xff] }
 0x252   : > { %v1489_v24 = vmul.f32 1.442695, %v1446_v51  ;;  %v1505_v40 = vmul.f32 1.442695, %v1454_v46  ;;  %v1521_v52 = vmul.f32 1.442695, %v1462_v60  ;;  %v4371_v34 = vpop.eup %4370  ;;  %v1572_v50 = vmul.f32 %v4369_v59, %v8783_v35 }
 0x253   : > { %v1537_v17 = vmul.f32 1.442695, %v1470_v19  ;;  %v1709_v10 = vadd.f32 %v4365_v36, %v1708_v30  ;;  %v1685_v14 = vadd.f32 %v4369_v59, %v6170_v4  ;;  %v4373_v38 = vpop.eup %4372  ;;  %v1580_v55 = vmul.f32 %v4371_v34, %v6119_v27  ;;  %v8786_v4 = vld [vmem:[#allocation108_spill] sm:$0xff]  ;;  %v988_v27 = vpop.f32.mrf.mxu1  ;;  %v8788_v60 = vld [vmem:[#allocation114_spill] sm:$0xff] }
 0x254   : > { %4378 = vpow2.f32 %v1489_v24  ;;  %v1553_v61 = vmul.f32 1.442695, %v1478_v39  ;;  %v1589_v20 = vadd.f32 %v1572_v50, %v6178_v9  ;;  %v4375_v58 = vpop.eup %4374  ;;  %v1565_v51 = vmul.f32 %v4373_v38, %v8786_v4  ;;  %1994 = vmatpush.msra.mxu0 %v8788_v60  ;;  %v8789_v39 = vld [vmem:[#allocation61_spill] sm:$0xff]  ;;  %v8793_v35 = vld [vmem:[#allocation92_spill] sm:$0xff] }
 0x255   : > { %4380 = vpow2.f32 %v1505_v40  ;;  %v1710_v53 = vadd.f32 %v4367_v25, %v1709_v10  ;;  %v1686_v2 = vadd.f32 %v4371_v34, %v1685_v14  ;;  %v1629_v46 = vmul.f32 %v4365_v36, %v8787_v37  ;;  %v4377_v24 = vpop.eup %4376 }
 0x256   : > { %4382 = vpow2.f32 %v1521_v52  ;;  %v1573_v30 = vmul.f32 %v4375_v58, %v8789_v39  ;;  %v1637_v9 = vmul.f32 %v4367_v25, %v1298_v21  ;;  %v6234_v40 = vadd.f32 %v1589_v20, %v1580_v55  ;;  %1995 = vmatpush.msra.mxu0 %v8790_v42  ;;  %v1300_v25 = vpop.f32.mrf.mxu3  ;;  %v8795_v20 = vld [vmem:[#allocation41_spill] sm:$0xff] }
 0x257   : > { %v6231_v19 = vadd.f32 %v6181_v26, %v1686_v2  ;;  %4384 = vpow2.f32 %v1537_v17  ;;  %v1687_v12 = vadd.f32 %v4375_v58, %v4373_v38  ;;  %v1652_v49 = vadd.f32 %v1651_v23, %v1621_v32  ;;  %v8796_v32 = vld [vmem:[#allocation48_spill] sm:$0xff]  ;;  %v8799_v42 = vld [vmem:[#allocation101_spill] sm:$0xff] }
 0x258   : > { %v1350_v36 = vmax.f32 %v1349_v33, %v1167_v0  ;;  %4386 = vpow2.f32 %v1553_v61  ;;  %v1581_v26 = vmul.f32 %v4377_v24, %v6201_v28  ;;  %v1591_v52 = vadd.f32 %v1573_v30, %v1565_v51  ;;  %1996 = vmatpush.msra.mxu0 %v6154_v56  ;;  %v8794_v61 = vld [vmem:[#allocation40_spill] sm:$0xff] }
 0x259   : > { %v6242_v17 = vadd.f32 %v988_v27, %v5760_v54  ;;  %v1688_v44 = vadd.f32 %v4377_v24, %v1687_v12  ;;  %v1653_v5 = vadd.f32 %v1652_v49, %v1629_v46  ;;  %v1374_v33 = vsub.f32 %v8792_v22, %v6198_v57  ;;  %v8797_v46 = vld [vmem:[#allocation109_spill] sm:$0xff] }
 0x25a   : > { %v4379_v59 = vpop.eup %4378  ;;  %v6245_v34 = vmax.f32 %v8791_v41, %v1350_v36  ;;  %4388 = vrcp.f32 %v6231_v19  ;;  %v6251_v28 = vadd.f32 %v1591_v52, %v1581_v26  ;;  %v1382_v50 = vsub.f32 %v8793_v35, %v6198_v57  ;;  %1997 = vmatpush.msra.mxu0 %v6204_v8 }
 0x25b   : > { %v4381_v21 = vpop.eup %4380  ;;  %v6255_v38 = vadd.f32 %v1710_v53, %v1688_v44  ;;  %v6257_v55 = vadd.f32 %v1653_v5, %v1637_v9  ;;  %v1390_v23 = vsub.f32 %v8797_v46, %v6198_v57  ;;  %v1401_v27 = vmul.f32 1.442695, %v1374_v33  ;;  %v1169_v9 = vpop.f32.mrf.mxu2  ;;  %v8800_v44 = vld [vmem:[#allocation50_spill] sm:$0xff]  ;;  %v8801_v33 = vld [vmem:[#allocation67_spill] sm:$0xff] }
 0x25c   : > { %v1711_v10 = vadd.f32 %v4381_v21, %v4379_v59  ;;  %v4383_v14 = vpop.eup %4382  ;;  %v1447_v31 = vsub.f32 %v8794_v61, %v6245_v34  ;;  %v1455_v2 = vsub.f32 %v8795_v20, %v6245_v34  ;;  %v1463_v58 = vsub.f32 %v8796_v32, %v6245_v34  ;;  %v991_v22 = vpop.f32.mrf.mxu1 }
 0x25d   : > { %v4385_v56 = vpop.eup %4384  ;;  %v1471_v4 = vsub.f32 %v6051_v11, %v6245_v34  ;;  %v1479_v53 = vsub.f32 %v1167_v0, %v6245_v34  ;;  %4390 = vrcp.f32 %v6255_v38  ;;  %v1301_v12 = vadd.f32 %v1300_v25, %v5637_v62  ;;  %v8798_v11 = vld [vmem:[#allocation83_spill] sm:$0xff] }
 0x25e   : > { %v1712_v6 = vadd.f32 %v4383_v14, %v1711_v10  ;;  %v1491_v51 = vmul.f32 1.442695, %v1447_v31  ;;  %v1507_v37 = vmul.f32 1.442695, %v1455_v2  ;;  %v4387_v60 = vpop.eup %4386  ;;  %v1523_v8 = vmul.f32 1.442695, %v1463_v58  ;;  %v1303_v61 = vpop.f32.mrf.mxu3 }
 0x25f   : > { %v1539_v30 = vmul.f32 1.442695, %v1471_v4  ;;  %v1555_v24 = vmul.f32 1.442695, %v1479_v53  ;;  %v1606_v49 = vmul.f32 %v4379_v59, %v8798_v11  ;;  %v1417_v57 = vmul.f32 1.442695, %v1382_v50 }
 0x260   : > { %v1713_v39 = vadd.f32 %v4385_v56, %v1712_v6  ;;  %4392 = vpow2.f32 %v1491_v51  ;;  %v6274_v0 = vpop.eup %4388  ;;  %v1614_v26 = vmul.f32 %v4381_v21, %v8799_v42  ;;  %v1433_v52 = vmul.f32 1.442695, %v1390_v23  ;;  %v8802_v59 = vld [vmem:[#allocation82_spill] sm:$0xff]  ;;  %v8803_v50 = vld [vmem:[#allocation93_spill] sm:$0xff] }
 0x261   : > { %4394 = vpow2.f32 %v1507_v37  ;;  %v1622_v5 = vmul.f32 %v4383_v14, %v8800_v44  ;;  %v1170_v41 = vadd.f32 %v1169_v9, %v5397_v1  ;;  %v1630_v25 = vmul.f32 %v4385_v56, %v8801_v33  ;;  %v8804_v58 = vld [vmem:[#allocation53_spill] sm:$0xff]  ;;  %v8805_v53 = vld [vmem:[#allocation54_spill] sm:$0xff]  ;;  %v8808_v9 = vld [vmem:[#allocation43_spill] sm:$0xff] }
 0x262   : > { %v6276_v36 = vadd.f32 %v4387_v60, %v1713_v39  ;;  %4396 = vpow2.f32 %v1523_v8  ;;  %v1655_v10 = vadd.f32 %v1614_v26, %v1606_v49  ;;  %v1375_v35 = vsub.f32 %v8802_v59, %v6245_v34  ;;  %v8806_v23 = vld [vmem:[#allocation86_spill] sm:$0xff] }
 0x263   : > { %4398 = vpow2.f32 %v1539_v30  ;;  %v1638_v31 = vmul.f32 %v4387_v60, %v1301_v12  ;;  %v1354_v21 = vmax.f32 %v1353_v18, %v1170_v41  ;;  %v1383_v14 = vsub.f32 %v8803_v50, %v6245_v34  ;;  %v6289_v20 = vpop.eup %4390  ;;  %v8807_v8 = vld [vmem:[#allocation42_spill] sm:$0xff]  ;;  %v8809_v12 = vld [vmem:[#allocation75_spill] sm:$0xff] }
 0x264   : > { %4400 = vpow2.f32 %v1555_v24  ;;  %v1656_v2 = vadd.f32 %v1655_v10, %v1622_v5  ;;  %v6292_v56 = vadd.f32 %v991_v22, %v5760_v54  ;;  %v1403_v6 = vmul.f32 1.442695, %v1375_v35  ;;  %v8810_v10 = vld [vmem:[#allocation103_spill] sm:$0xff] }
 0x265   : > { %4402 = vpow2.f32 %v1401_v27  ;;  %v6295_v4 = vmax.f32 %v8804_v58, %v1354_v21  ;;  %v1391_v48 = vsub.f32 %v8805_v53, %v6245_v34  ;;  %v1304_v18 = vadd.f32 %v1303_v61, %v5637_v62  ;;  %v8811_v21 = vld [vmem:[#allocation110_spill] sm:$0xff] }
 0x266   : > { %v4393_v32 = vpop.eup %4392  ;;  %4404 = vpow2.f32 %v1417_v57  ;;  %v1657_v37 = vadd.f32 %v1656_v2, %v1630_v25  ;;  %v1419_v46 = vmul.f32 1.442695, %v1383_v14  ;;  %v1740_v35 = vmul.f32 %v6195_v16, %v6165_v45  ;;  %v8812_v14 = vld [vmem:[#allocation72_spill] sm:$0xff]  ;;  %v1930_v58 = vld [vmem:[#allocation13 + $0x50] sm:$0xff] }
 0x267   : > { %v4395_v51 = vpop.eup %4394  ;;  %4406 = vpow2.f32 %v1433_v52  ;;  %v1607_v27 = vmul.f32 %v4393_v32, %v8806_v23  ;;  %v1448_v30 = vsub.f32 %v8807_v8, %v6295_v4  ;;  %v1456_v24 = vsub.f32 %v8808_v9, %v6295_v4  ;;  %1941 = vmatpush.msrb.mxu1 %v1930_v58  ;;  %1998 = vmatpush.msra.mxu0 %v1930_v58  ;;  %v8819_v58 = vld [vmem:[#allocation84_spill] sm:$0xff] }
 0x268   : > { %v4397_v60 = vpop.eup %4396  ;;  %v1715_v39 = vadd.f32 %v4395_v51, %v4393_v32  ;;  %v1464_v11 = vsub.f32 %v8809_v12, %v6295_v4  ;;  %v6307_v49 = vadd.f32 %v1657_v37, %v1638_v31  ;;  %v1472_v57 = vsub.f32 %v6076_v15, %v6295_v4 }
 0x269   : > { %v4399_v34 = vpop.eup %4398  ;;  %v1480_v42 = vsub.f32 %v1170_v41, %v6295_v4  ;;  %4408 = vpow2.f32 %v1403_v6  ;;  %v1493_v44 = vmul.f32 1.442695, %v1448_v30  ;;  %v1509_v5 = vmul.f32 1.442695, %v1456_v24 }
 0x26a   : > { %v4401_v26 = vpop.eup %4400  ;;  %v1716_v52 = vadd.f32 %v4397_v60, %v1715_v39  ;;  %v1525_v22 = vmul.f32 1.442695, %v1464_v11  ;;  %v1541_v25 = vmul.f32 1.442695, %v1472_v57  ;;  %4410 = vpow2.f32 %v1419_v46 }
 0x26b   : > { %v4403_v33 = vpop.eup %4402  ;;  %v1615_v59 = vmul.f32 %v4395_v51, %v8810_v10  ;;  %4412 = vpow2.f32 %v1493_v44  ;;  %v1557_v41 = vmul.f32 1.442695, %v1480_v42  ;;  %v1435_v32 = vmul.f32 1.442695, %v1391_v48  ;;  %v8813_v51 = vld [vmem:[#allocation55_spill] sm:$0xff] }
 0x26c   : > { %v4405_v61 = vpop.eup %4404  ;;  %v1717_v31 = vadd.f32 %v4399_v34, %v1716_v52  ;;  %v1566_v15 = vmul.f32 %v4403_v33, %v8811_v21  ;;  %4414 = vpow2.f32 %v1509_v5  ;;  %v1623_v37 = vmul.f32 %v4397_v60, %v8813_v51  ;;  %v8814_v60 = vld [vmem:[#allocation49_spill] sm:$0xff]  ;;  %v8815_v52 = vld [vmem:[#allocation64_spill] sm:$0xff] }
 0x26d   : > { %v4407_v50 = vpop.eup %4406  ;;  %v1574_v2 = vmul.f32 %v4405_v61, %v8812_v14  ;;  %v1689_v6 = vadd.f32 %v4405_v61, %v4403_v33  ;;  %4416 = vpow2.f32 %v1525_v22  ;;  %v1631_v46 = vmul.f32 %v4399_v34, %v6094_v47  ;;  %v1172_v34 = vpop.f32.mrf.mxu2  ;;  %v8816_v14 = vld [vmem:[#allocation99_spill] sm:$0xff] }
 0x26e   : > { %v6317_v53 = vadd.f32 %v4401_v26, %v1717_v31  ;;  %4418 = vpow2.f32 %v1541_v25  ;;  %v1659_v30 = vadd.f32 %v1615_v59, %v1607_v27  ;;  %v1582_v9 = vmul.f32 %v4407_v50, %v6242_v17 }
 0x26f   : > { %v4409_v23 = vpop.eup %4408  ;;  %v1593_v39 = vadd.f32 %v1574_v2, %v1566_v15  ;;  %v1690_v8 = vadd.f32 %v4407_v50, %v1689_v6  ;;  %4420 = vpow2.f32 %v1557_v41  ;;  %v1639_v24 = vmul.f32 %v4401_v26, %v1304_v18  ;;  %v8817_v2 = vld [vmem:[#allocation100_spill] sm:$0xff] }
 0x270   : > { %v1741_v48 = vsub.f32 1.0, %v1740_v35  ;;  %v4411_v12 = vpop.eup %4410  ;;  %4422 = vpow2.f32 %v1435_v32  ;;  %v1567_v57 = vmul.f32 %v4409_v23, %v8814_v60  ;;  %v1660_v47 = vadd.f32 %v1659_v30, %v1623_v37  ;;  %v1306_v37 = vpop.f32.mrf.mxu3  ;;  %v8822_v60 = vld [vmem:[#allocation115_spill] sm:$0xff] }
 0x271   : > { %v6323_v11 = vadd.f32 %v6276_v36, %v1690_v8  ;;  %v4413_v42 = vpop.eup %4412  ;;  %v1575_v44 = vmul.f32 %v4411_v12, %v8815_v52  ;;  %vm1744_vm0 = vweird.f32 %v6165_v45  ;;  %vm1745_vm1 = vweird.f32 %v6195_v16  ;;  %v8821_v8 = vld [vmem:[#allocation57_spill] sm:$0xff] }
 0x272   : > { %v1742_v5 = vmul.f32 %v6195_v16, %v1741_v48  ;;  %v4415_v17 = vpop.eup %4414  ;;  %v6330_v18 = vadd.f32 %v1593_v39, %v1582_v9  ;;  %v1661_v27 = vadd.f32 %v1660_v47, %v1631_v46  ;;  %v1748_v36 = vand.u32 2147483647, %v6165_v45  ;;  %vm1746_vm2 = vmor %vm1744_vm0, %vm1745_vm1 }
 0x273   : > { %v1750_v26 = vand.u32 2147483648, %v6165_v45  ;;  %v4417_v22 = vpop.eup %4416  ;;  %v1719_v33 = vadd.f32 %v4415_v17, %v4413_v42  ;;  %v1691_v25 = vadd.f32 %v4411_v12, %v4409_v23  ;;  %v1173_v59 = vadd.f32 %v1172_v34, %v5397_v1  ;;  %v8820_v45 = vld [vmem:[#allocation96_spill] sm:$0xff]  ;;  %v994_v12 = vpop.f32.mrf.mxu1 }
 0x274   : > { %v1743_v10 = vadd.f32 %v6195_v16, %v1742_v5  ;;  %v4419_v35 = vpop.eup %4418  ;;  %v1595_v61 = vadd.f32 %v1575_v44, %v1567_v57  ;;  %v1662_v31 = vadd.f32 %v1661_v27, %v1639_v24  ;;  %vm1749_vm3 = vcmp.eq.f32.partialorder %v1748_v36, 8.507059e+37  ;;  %v8824_v36 = vld [vmem:[#allocation44_spill] sm:$0xff] }
 0x275   : > { %v1751_v21 = vor.u32 1.1754944e-38, %v1750_v26  ;;  %v4421_v15 = vpop.eup %4420  ;;  %v1720_v41 = vadd.f32 %v4417_v22, %v1719_v33  ;;  %v8818_v6 = vmax.f32 %v8816_v14, %v8817_v2  ;;  %v1376_v51 = vsub.f32 %v8819_v58, %v6295_v4  ;;  %v8825_v26 = vld [vmem:[#allocation45_spill] sm:$0xff] }
 0x276   : > { %v1747_v50 = vsel %vm1746_vm2, %v6195_v16, %v1743_v10  ;;  %v4423_v46 = vpop.eup %4422  ;;  %4424 = vrcp.f32 %v6323_v11  ;;  %v1384_v39 = vsub.f32 %v8820_v45, %v6295_v4  ;;  %v1392_v30 = vsub.f32 %v8821_v8, %v6295_v4  ;;  %v8823_v4 = vld [vmem:[#allocation88_spill] sm:$0xff] }
 0x277   : > { %v1358_v32 = vmax.f32 %v8818_v6, %v1173_v59  ;;  %v1752_v23 = vsel %vm1749_vm3, %v1751_v21, %v1747_v50  ;;  %v1721_v9 = vadd.f32 %v4419_v35, %v1720_v41  ;;  %v1583_v16 = vmul.f32 %v4423_v46, %v6292_v56  ;;  %v1929_v41 = vld [vmem:[#allocation13 + $0x48] sm:$0xff] }
 0x278   : > { %v1692_v24 = vadd.f32 %v4423_v46, %v1691_v25  ;;  %v1851_v48 = vmul.f32 %v1752_v23, %v6173_v63  ;;  %v1405_v47 = vmul.f32 1.442695, %v1376_v51  ;;  %v1421_v34 = vmul.f32 1.442695, %v1384_v39  ;;  %v8826_v25 = vld [vmem:[#allocation89_spill] sm:$0xff]  ;;  %1942 = vmatpush.msrb.mxu1 %v1929_v41  ;;  %1999 = vmatpush.msra.mxu0 %v1929_v41  ;;  %v8828_v46 = vld [vmem:[#allocation58_spill] sm:$0xff] }
 0x279   : > { %v6352_v57 = vmax.f32 %v8822_v60, %v1358_v32  ;;  %v1307_v52 = vadd.f32 %v1306_v37, %v5637_v62  ;;  %v6355_v44 = vadd.f32 %v4421_v15, %v1721_v9  ;;  %v1596_v5 = vadd.f32 %v1595_v61, %v1583_v16 }
 0x27a   : > { %v6358_v27 = vadd.f32 %v6317_v53, %v1692_v24  ;;  %1895 = vmatmul.f32.vlgmr.msrb.gmra.mxu0 %v1851_v48  ;;  %v1608_v56 = vmul.f32 %v4413_v42, %v8823_v4  ;;  %v8827_v42 = vld [vmem:[#allocation104_spill] sm:$0xff]  ;;  %v1437_v37 = vmul.f32 1.442695, %v1392_v30  ;;  %v1632_v45 = vmul.f32 %v4419_v35, %v6099_v3 }
 0x27b   : > { %v1449_v63 = vsub.f32 %v8824_v36, %v6352_v57  ;;  %v1457_v33 = vsub.f32 %v8825_v26, %v6352_v57  ;;  %v1465_v10 = vsub.f32 %v8826_v25, %v6352_v57  ;;  %v1473_v21 = vsub.f32 %v8817_v2, %v6352_v57  ;;  %v997_v3 = vpop.f32.mrf.mxu1  ;;  %v8834_v36 = vld [vmem:[#allocation113_spill] sm:$0xff]  ;;  %v1309_v25 = vpop.f32.mrf.mxu3 }
 0x27c   : > { %4426 = vrcp.f32 %v6358_v27  ;;  %v6370_v53 = vadd.f32 %v1662_v31, %v1596_v5  ;;  %v1481_v61 = vsub.f32 %v1173_v59, %v6352_v57  ;;  %v1616_v50 = vmul.f32 %v4415_v17, %v8827_v42  ;;  %v6374_v14 = vpop.eup %4424  ;;  %v1175_v17 = vpop.f32.mrf.mxu2  ;;  %v8836_v42 = vld [vmem:[#allocation87_spill] sm:$0xff] }
 0x27d   : > { %v1495_v6 = vmul.f32 1.442695, %v1449_v63  ;;  %v1511_v32 = vmul.f32 1.442695, %v1457_v33  ;;  %v1527_v58 = vmul.f32 1.442695, %v1465_v10  ;;  %4428 = vpow2.f32 %v1405_v47 }
 0x27e   : > { %v1543_v51 = vmul.f32 1.442695, %v1473_v21  ;;  %v6377_v2 = vadd.f32 %v994_v12, %v5760_v54  ;;  %4430 = vpow2.f32 %v1421_v34  ;;  %v1559_v31 = vmul.f32 1.442695, %v1481_v61 }
 0x27f   : > { %4432 = vpow2.f32 %v1495_v6  ;;  %v1624_v59 = vmul.f32 %v4417_v22, %v8828_v46  ;;  %v1663_v23 = vadd.f32 %v1616_v50, %v1608_v56  ;;  %v1676_v39 = vadd.f32 %v6213_v43, %v6234_v40  ;;  %v8833_v56 = vld [vmem:[#allocation112_spill] sm:$0xff]  ;;  %v8839_v46 = vld [vmem:[#allocation37_spill] sm:$0xff] }
 0x280   : > { %4434 = vpow2.f32 %v1511_v32  ;;  %v1754_v8 = vmul.f32 %v6274_v0, %v6231_v19  ;;  %v1640_v9 = vmul.f32 %v4421_v15, %v1307_v52  ;;  %v1762_v30 = vand.u32 2147483647, %v6231_v19  ;;  %v8829_v15 = vld [vmem:[#allocation38_spill] sm:$0xff]  ;;  %v8832_v52 = vld [vmem:[#allocation68_spill] sm:$0xff] }
 0x281   : > { %4436 = vpow2.f32 %v1527_v58  ;;  %v1664_v16 = vadd.f32 %v1663_v23, %v1624_v59  ;;  %v1764_v48 = vand.u32 2147483648, %v6231_v19  ;;  %v6390_v12 = vadd.f32 %v1175_v17, %v5397_v1  ;;  %v8837_v58 = vld [vmem:[#allocation60_spill] sm:$0xff] }
 0x282   : > { %v6386_v24 = vpop.eup %4426  ;;  %4438 = vpow2.f32 %v1543_v51  ;;  %v1755_v22 = vsub.f32 1.0, %v1754_v8  ;;  %vm1758_vm4 = vweird.f32 %v6231_v19  ;;  %vm1759_vm5 = vweird.f32 %v6274_v0 }
 0x283   : > { %v4429_v35 = vpop.eup %4428  ;;  %4440 = vpow2.f32 %v1559_v31  ;;  %v1665_v43 = vadd.f32 %v1664_v16, %v1632_v45  ;;  %vm6396_vm6 = vcmp.eq.f32.partialorder %v1762_v30, 8.507059e+37  ;;  %v8835_v63 = vmax.f32 %v8833_v56, %v8834_v36  ;;  %vm1760_vm7 = vmor %vm1758_vm4, %vm1759_vm5 }
 0x284   : > { %v4431_v40 = vpop.eup %4430  ;;  %4442 = vpow2.f32 %v1437_v37  ;;  %v1568_v60 = vmul.f32 %v4429_v35, %v8829_v15  ;;  %v1756_v47 = vmul.f32 %v6274_v0, %v1755_v22  ;;  %v6408_v33 = vadd.f32 %v997_v3, %v5760_v54  ;;  %v8838_v37 = vld [vmem:[#allocation97_spill] sm:$0xff]  ;;  %v8840_v22 = vld [vmem:[#allocation46_spill] sm:$0xff]  ;;  %v8841_v3 = vld [vmem:[#allocation47_spill] sm:$0xff] }
 0x285   : > { %v4433_v1 = vpop.eup %4432  ;;  %v1576_v5 = vmul.f32 %v4431_v40, %v8832_v52  ;;  %v6401_v4 = vadd.f32 %v1665_v43, %v1640_v9  ;;  %v1362_v26 = vmax.f32 %v8835_v63, %v6390_v12  ;;  %v1693_v21 = vadd.f32 %v4431_v40, %v4429_v35  ;;  %v1928_v43 = vld [vmem:[#allocation13 + $0x40] sm:$0xff]  ;;  %v8842_v15 = vld [vmem:[#allocation106_spill] sm:$0xff]  ;;  %v1927_v63 = vld [vmem:[#allocation13 + $0x38] sm:$0xff] }
 0x286   : > { %v4435_v10 = vpop.eup %4434  ;;  %v1757_v41 = vadd.f32 %v6274_v0, %v1756_v47  ;;  %v1765_v61 = vor.u32 1.1754944e-38, %v1764_v48  ;;  %v1377_v50 = vsub.f32 %v8836_v42, %v6352_v57  ;;  %v1385_v31 = vsub.f32 %v8838_v37, %v6352_v57  ;;  %1943 = vmatpush.msrb.mxu1 %v1928_v43  ;;  %2000 = vmatpush.msra.mxu0 %v1928_v43  ;;  %v8845_v37 = vld [vmem:[#allocation66_spill] sm:$0xff] }
 0x287   : > { %v4437_v6 = vpop.eup %4436  ;;  %v1723_v32 = vadd.f32 %v4435_v10, %v4433_v1  ;;  %v6418_v51 = vmax.f32 %v8837_v58, %v1362_v26  ;;  %v1393_v59 = vsub.f32 %v8839_v46, %v6352_v57  ;;  %v1597_v17 = vadd.f32 %v1576_v5, %v1568_v60 }
 0x288   : > { %v4439_v23 = vpop.eup %4438  ;;  %v1761_v45 = vsel %vm1760_vm7, %v6274_v0, %v1757_v41  ;;  %v1407_v8 = vmul.f32 1.442695, %v1377_v50  ;;  %v1310_v9 = vadd.f32 %v1309_v25, %v5637_v62  ;;  %v1423_v56 = vmul.f32 1.442695, %v1385_v31  ;;  %1944 = vmatpush.msrb.mxu1 %v1927_v63  ;;  %2001 = vmatpush.msra.mxu0 %v1927_v63  ;;  %v8844_v50 = vld [vmem:[#allocation105_spill] sm:$0xff] }
 0x289   : > { %v4441_v16 = vpop.eup %4440  ;;  %v1724_v30 = vadd.f32 %v4437_v6, %v1723_v32  ;;  %v1766_v19 = vsel %vm6396_vm6, %v1765_v61, %v1761_v45  ;;  %v1450_v48 = vsub.f32 %v8840_v22, %v6418_v51  ;;  %v1458_v35 = vsub.f32 %v8841_v3, %v6418_v51  ;;  %v8843_v61 = vld [vmem:[#allocation91_spill] sm:$0xff]  ;;  %v1000_v3 = vpop.f32.mrf.mxu1 }
 0x28a   : > { %v4443_v57 = vpop.eup %4442  ;;  %v1852_v40 = vmul.f32 %v1766_v19, %v1676_v39  ;;  %v1466_v0 = vsub.f32 %v8842_v15, %v6418_v51  ;;  %v1474_v60 = vsub.f32 %v8834_v36, %v6418_v51  ;;  %v1482_v47 = vsub.f32 %v6390_v12, %v6418_v51  ;;  %v8846_v19 = vld [vmem:[#allocation63_spill] sm:$0xff] }
 0x28b   : > { %v1725_v34 = vadd.f32 %v4439_v23, %v1724_v30  ;;  %v1694_v52 = vadd.f32 %v4443_v57, %v1693_v21  ;;  %v1497_v5 = vmul.f32 1.442695, %v1450_v48  ;;  %v1513_v26 = vmul.f32 1.442695, %v1458_v35  ;;  %v8849_v35 = vld [vmem:[#allocation90_spill] sm:$0xff]  ;;  %v8851_v15 = vld [vmem:[#allocation51_spill] sm:$0xff] }
 0x28c   : > { %1898 = vmatmul.f32.gmra.mxu0 %v1852_v40  ;;  %v1529_v25 = vmul.f32 1.442695, %v1466_v0  ;;  %4444 = vpow2.f32 %v1407_v8  ;;  %v1439_v39 = vmul.f32 1.442695, %v1393_v59  ;;  %v1545_v12 = vmul.f32 1.442695, %v1474_v60 }
 0x28d   : > { %v6438_v41 = vadd.f32 %v4441_v16, %v1725_v34  ;;  %v6441_v36 = vadd.f32 %v6355_v44, %v1694_v52  ;;  %4446 = vpow2.f32 %v1497_v5  ;;  %v1561_v21 = vmul.f32 1.442695, %v1482_v47  ;;  %v1312_v5 = vpop.f32.mrf.mxu3 }
 0x28e   : > { %4448 = vpow2.f32 %v1513_v26  ;;  %v1609_v42 = vmul.f32 %v4433_v1, %v8843_v61  ;;  %v1617_v32 = vmul.f32 %v4435_v10, %v8844_v50  ;;  %v1584_v58 = vmul.f32 %v4443_v57, %v6377_v2  ;;  %v8850_v57 = vld [vmem:[#allocation102_spill] sm:$0xff]  ;;  %v8853_v50 = vld [vmem:[#allocation107_spill] sm:$0xff] }
 0x28f   : > { %4450 = vrcp.f32 %v6441_v36  ;;  %v1625_v31 = vmul.f32 %v4437_v6, %v8845_v37  ;;  %v1633_v46 = vmul.f32 %v4439_v23, %v6103_v29  ;;  %v1677_v59 = vadd.f32 %v6257_v55, %v6251_v28 }
 0x290   : > { %4452 = vpow2.f32 %v1529_v25  ;;  %v1667_v44 = vadd.f32 %v1617_v32, %v1609_v42  ;;  %v1768_v45 = vmul.f32 %v6289_v20, %v6255_v38  ;;  %v6453_v8 = vadd.f32 %v1597_v17, %v1584_v58 }
 0x291   : > { %4454 = vpow2.f32 %v1545_v12  ;;  %v1641_v1 = vmul.f32 %v4441_v16, %v1310_v9  ;;  %v1776_v2 = vand.u32 2147483647, %v6255_v38  ;;  %v1778_v29 = vand.u32 2147483648, %v6255_v38 }
 0x292   : > { %v4445_v10 = vpop.eup %4444  ;;  %4456 = vpow2.f32 %v1561_v21  ;;  %v1668_v30 = vadd.f32 %v1667_v44, %v1625_v31  ;;  %v1769_v6 = vsub.f32 1.0, %v1768_v45  ;;  %vm1772_vm8 = vweird.f32 %v6255_v38  ;;  %v8854_v45 = vld [vmem:[#allocation76_spill] sm:$0xff] }
 0x293   : > { %v4447_v23 = vpop.eup %4446  ;;  %4458 = vpow2.f32 %v1423_v56  ;;  %v1569_v22 = vmul.f32 %v4445_v10, %v8846_v19  ;;  %vm1773_vm9 = vweird.f32 %v6289_v20  ;;  %vm6461_vm10 = vcmp.eq.f32.partialorder %v1776_v2, 8.507059e+37  ;;  %v8852_v56 = vld [vmem:[#allocation94_spill] sm:$0xff] }
 0x294   : > { %v4449_v28 = vpop.eup %4448  ;;  %4460 = vpow2.f32 %v1439_v39  ;;  %v1669_v55 = vadd.f32 %v1668_v30, %v1633_v46  ;;  %v1770_v17 = vmul.f32 %v6289_v20, %v1769_v6  ;;  %v1378_v43 = vsub.f32 %v8849_v35, %v6418_v51  ;;  %vm1774_vm11 = vmor %vm1772_vm8, %vm1773_vm9 }
 0x295   : > { %v6465_v16 = vpop.eup %4450  ;;  %v1727_v48 = vadd.f32 %v4449_v28, %v4447_v23  ;;  %v1386_v40 = vsub.f32 %v8850_v57, %v6418_v51  ;;  %v1394_v0 = vsub.f32 %v8851_v15, %v6418_v51  ;;  %v1779_v52 = vor.u32 1.1754944e-38, %v1778_v29 }
 0x296   : > { %v4453_v60 = vpop.eup %4452  ;;  %v6473_v47 = vadd.f32 %v1669_v55, %v1641_v1  ;;  %v1771_v34 = vadd.f32 %v6289_v20, %v1770_v17  ;;  %v1610_v63 = vmul.f32 %v4447_v23, %v8852_v56  ;;  %v1409_v39 = vmul.f32 1.442695, %v1378_v43  ;;  %v8856_v43 = vld [vmem:[#allocation56_spill] sm:$0xff] }
 0x297   : > { %v4455_v26 = vpop.eup %4454  ;;  %v1728_v25 = vadd.f32 %v4453_v60, %v1727_v48  ;;  %v1425_v12 = vmul.f32 1.442695, %v1386_v40  ;;  %v1441_v21 = vmul.f32 1.442695, %v1394_v0  ;;  %v1001_v42 = vadd.f32 %v1000_v3, %v5760_v54  ;;  %v8855_v54 = vld [vmem:[#allocation69_spill] sm:$0xff] }
 0x298   : > { %v4457_v51 = vpop.eup %4456  ;;  %v1775_v61 = vsel %vm1774_vm11, %v6289_v20, %v1771_v34  ;;  %v1618_v32 = vmul.f32 %v4449_v28, %v8853_v50  ;;  %v1634_v58 = vmul.f32 %v4455_v26, %v6116_v13  ;;  %4462 = vpow2.f32 %v1409_v39  ;;  %v1926_v13 = vld [vmem:[#allocation13 + $0x30] sm:$0xff] }
 0x299   : > { %v4459_v37 = vpop.eup %4458  ;;  %v1729_v31 = vadd.f32 %v4455_v26, %v1728_v25  ;;  %v1780_v46 = vsel %vm6461_vm10, %v1779_v52, %v1775_v61  ;;  %v1313_v38 = vadd.f32 %v1312_v5, %v5637_v62  ;;  %4464 = vpow2.f32 %v1425_v12  ;;  %1945 = vmatpush.msrb.mxu1 %v1926_v13  ;;  %2002 = vmatpush.msra.mxu0 %v1926_v13  ;;  %v1925_v12 = vld [vmem:[#allocation13 + $0x28] sm:$0xff] }
 0x29a   : > { %v4461_v44 = vpop.eup %4460  ;;  %v1577_v1 = vmul.f32 %v4459_v37, %v8854_v45  ;;  %v1695_v2 = vadd.f32 %v4459_v37, %v4445_v10  ;;  %v1853_v30 = vmul.f32 %v1780_v46, %v1677_v59  ;;  %4466 = vpow2.f32 %v1441_v21  ;;  %v1924_v21 = vld [vmem:[#allocation13 + $0x20] sm:$0xff]  ;;  %v1923_v37 = vld [vmem:[#allocation13 + $0x18] sm:$0xff] }
 0x29b   : > { %v1730_v20 = vadd.f32 %v4457_v51, %v1729_v31  ;;  %v1626_v6 = vmul.f32 %v4453_v60, %v8855_v54  ;;  %v1671_v29 = vadd.f32 %v1618_v32, %v1610_v63  ;;  %v1678_v28 = vadd.f32 %v6307_v49, %v6330_v18  ;;  %1946 = vmatpush.msrb.mxu1 %v1925_v12 }
 0x29c   : > { %v1599_v23 = vadd.f32 %v1577_v1, %v1569_v22  ;;  %v1696_v19 = vadd.f32 %v4461_v44, %v1695_v2  ;;  %1901 = vmatmul.f32.gmra.mxu0 %v1853_v30  ;;  %v1782_v62 = vmul.f32 %v6374_v14, %v6323_v11  ;;  %v1585_v55 = vmul.f32 %v4461_v44, %v6408_v33 }
 0x29d   : > { %v1642_v10 = vmul.f32 %v4457_v51, %v1313_v38  ;;  %v1672_v59 = vadd.f32 %v1671_v29, %v1626_v6  ;;  %v1790_v17 = vand.u32 2147483647, %v6323_v11  ;;  %vm1786_vm12 = vweird.f32 %v6323_v11  ;;  %2003 = vmatpush.msra.mxu0 %v1925_v12  ;;  %1947 = vmatpush.msrb.mxu1 %v1924_v21  ;;  %v1922_v38 = vld [vmem:[#allocation13 + $0x10] sm:$0xff]  ;;  %v2197_v12 = vld [vmem:[#allocation14 + $0x198] sm:$0xff] }
 0x29e   : > { %v6497_v9 = vadd.f32 %v6438_v41, %v1696_v19  ;;  %v1783_v22 = vsub.f32 1.0, %v1782_v62  ;;  %v1792_v48 = vand.u32 2147483648, %v6323_v11  ;;  %v4463_v49 = vpop.eup %4462  ;;  %v1600_v18 = vadd.f32 %v1599_v23, %v1585_v55  ;;  %v1920_v23 = vld [vmem:[#allocation13] sm:$0xff] }
 0x29f   : > { %v1673_v3 = vadd.f32 %v1672_v59, %v1634_v58  ;;  %vm1787_vm13 = vweird.f32 %v6374_v14  ;;  %v1796_v33 = vmul.f32 %v6386_v24, %v6358_v27  ;;  %v4465_v35 = vpop.eup %4464  ;;  %v1570_v57 = vmul.f32 %v4463_v49, %v8856_v43  ;;  %2004 = vmatpush.msra.mxu0 %v1924_v21  ;;  %1948 = vmatpush.msrb.mxu1 %v1923_v37  ;;  %v2193_v21 = vld [vmem:[#allocation14 + $0x178] sm:$0xff] }
 0x2a0   : > { %4468 = vrcp.f32 %v6497_v9  ;;  %v1784_v41 = vmul.f32 %v6374_v14, %v1783_v22  ;;  %vm6507_vm14 = vcmp.eq.f32.partialorder %v1790_v17, 8.507059e+37  ;;  %v4467_v15 = vpop.eup %4466  ;;  %v1578_v0 = vmul.f32 %v4465_v35, %v6110_v7  ;;  %vm1788_vm15 = vmor %vm1786_vm12, %vm1787_vm13 }
 0x2a1   : > { %v1697_v60 = vadd.f32 %v4465_v35, %v4463_v49  ;;  %v1674_v34 = vadd.f32 %v1673_v3, %v1642_v10  ;;  %v1797_v52 = vsub.f32 1.0, %v1796_v33  ;;  %v1586_v5 = vmul.f32 %v4467_v15, %v1001_v42  ;;  %2005 = vmatpush.msra.mxu0 %v1923_v37  ;;  %1949 = vmatpush.msrb.mxu1 %v1922_v38 }
 0x2a2   : > { %v1785_v56 = vadd.f32 %v6374_v14, %v1784_v41  ;;  %v1793_v63 = vor.u32 1.1754944e-38, %v1792_v48  ;;  %v1804_v26 = vand.u32 2147483647, %v6358_v27  ;;  %vm1801_vm0 = vweird.f32 %v6386_v24 }
 0x2a3   : > { %v1698_v25 = vadd.f32 %v4467_v15, %v1697_v60  ;;  %v1798_v39 = vmul.f32 %v6386_v24, %v1797_v52  ;;  %v1806_v7 = vand.u32 2147483648, %v6358_v27  ;;  %vm1800_vm1 = vweird.f32 %v6358_v27  ;;  %2006 = vmatpush.msra.mxu0 %v1922_v38  ;;  %v4324_v15 = vld [vmem:[%s8859_s3] ss:$0 sm:$0xff]  ;;  %s9082_s3 = sld [smem:[#allocation125_spill]] }
 0x2a4   : > { %v1789_v51 = vsel %vm1788_vm15, %v6374_v14, %v1785_v56  ;;  %v1680_v61 = vadd.f32 %v6401_v4, %v6453_v8  ;;  %v1810_v42 = vmul.f32 %v6465_v16, %v6441_v36  ;;  %v1601_v11 = vadd.f32 %v1578_v0, %v1570_v57  ;;  %vm1802_vm2 = vmor %vm1800_vm1, %vm1801_vm0  ;;  %v2205_v56 = vld [vmem:[#allocation14 + $0x1d8] sm:$0xff] }
 0x2a5   : > { %v6527_v50 = vadd.f32 %v1730_v20, %v1698_v25  ;;  %v1794_v32 = vsel %vm6507_vm14, %v1793_v63, %v1789_v51  ;;  %v1799_v58 = vadd.f32 %v6386_v24, %v1798_v39  ;;  %vm1805_vm3 = vcmp.eq.f32.partialorder %v1804_v26, 8.507059e+37  ;;  %v2189_v51 = vld [vmem:[#allocation14 + $0x158] sm:$0xff] }
 0x2a6   : > { %v4469_v14 = vpop.eup %4468  ;;  %v1854_v31 = vmul.f32 %v1794_v32, %v1678_v28  ;;  %v1807_v27 = vor.u32 1.1754944e-38, %v1806_v7  ;;  %v1811_v4 = vsub.f32 1.0, %v1810_v42  ;;  %vm1815_vm4 = vweird.f32 %v6465_v16  ;;  %v2201_v7 = vld [vmem:[#allocation14 + $0x1b8] sm:$0xff] }
 0x2a7   : > { %4470 = vrcp.f32 %v6527_v50  ;;  %v1803_v8 = vsel %vm1802_vm2, %v6386_v24, %v1799_v58  ;;  %v1818_v46 = vand.u32 2147483647, %v6441_v36  ;;  %v1820_v1 = vand.u32 2147483648, %v6441_v36  ;;  %v1921_v24 = vld [vmem:[#allocation13 + $0x8] sm:$0xff] }
 0x2a8   : > { %1904 = vmatmul.f32.gmra.mxu0 %v1854_v31  ;;  %v1808_v44 = vsel %vm1805_vm3, %v1807_v27, %v1803_v8  ;;  %v1812_v45 = vmul.f32 %v6465_v16, %v1811_v4  ;;  %v1681_v2 = vadd.f32 %v6473_v47, %v1600_v18  ;;  %v1602_v30 = vadd.f32 %v1601_v11, %v1586_v5  ;;  %v2185_v8 = vld [vmem:[#allocation14 + $0x138] sm:$0xff] }
 0x2a9   : > { %v1855_v20 = vmul.f32 %v1808_v44, %v6370_v53  ;;  %v1824_v54 = vmul.f32 %v4469_v14, %v6497_v9  ;;  %vm1814_vm5 = vweird.f32 %v6441_v36  ;;  %v1821_v29 = vor.u32 1.1754944e-38, %v1820_v1  ;;  %1950 = vmatpush.msrb.mxu1 %v1921_v24  ;;  %2007 = vmatpush.msra.mxu0 %v1921_v24  ;;  %v2181_v44 = vld [vmem:[#allocation14 + $0x118] sm:$0xff]  ;;  %s3924_s7 = scalar_lea.hbm %s9082_s3, %s4124_s18  ;;  %s4847_s30 = scalar_lea.hbm %s9082_s3, 128 }
 0x2aa   : > { %v1813_v6 = vadd.f32 %v6465_v16, %v1812_v45  ;;  %vm1816_vm6 = vmor %vm1814_vm5, %vm1815_vm4  ;;  %v1682_v47 = vadd.f32 %v1674_v34, %v1602_v30  ;;  %vm1819_vm7 = vcmp.eq.f32.partialorder %v1818_v46, 8.507059e+37  ;;  %v1834_v19 = vand.u32 2147483648, %v6497_v9  ;;  %v2209_v34 = vld [vmem:[#allocation14 + $0x1f8] sm:$0xff]  ;;  %s3927_s11 = sshll.u32 %s3924_s7, 4  ;;  %s3928_s11 = int_to_ptr.hbm [resolvable:$true] %s3927_s11 }
 0x2ab   : > { %1907 = vmatmul.f32.vlgmr.msrb.gmra.mxu3 %v1855_v20  ;;  %v1825_v13 = vsub.f32 1.0, %v1824_v54  ;;  %vm1829_vm8 = vweird.f32 %v4469_v14  ;;  %v1832_v36 = vand.u32 2147483647, %v6497_v9  ;;  %1951 = vmatpush.msrb.mxu1 %v1920_v23  ;;  %vm1828_vm9 = vweird.f32 %v6497_v9  ;;  %v2177_v20 = vld [vmem:[#allocation14 + $0xf8] sm:$0xff]  ;;  %s4841_s14 = sshra.s32 %s3928_s11, 4  ;;  %s4842_s14 = int_to_ptr.hbm [resolvable:$true] %s4841_s14 }
 0x2ac   : > { %v1817_v53 = vsel %vm1816_vm6, %v6465_v16, %v1813_v6  ;;  %2008 = vmatpush.msra.mxu0 %v1920_v23  ;;  %vm1830_vm10 = vmor %vm1828_vm9, %vm1829_vm8  ;;  %v1835_v16 = vor.u32 1.1754944e-38, %v1834_v19  ;;  %v1848_v49 = vand.u32 2147483648, %v6527_v50  ;;  %v1846_v33 = vand.u32 2147483647, %v6527_v50  ;;  %2343 = vmatpush.msrb.mxu2 %v2209_v34  ;;  %v2202_v23 = vld [vmem:[#allocation14 + $0x1c0] sm:$0xff]  ;;  %v2165_v19 = vld [vmem:[#allocation14 + $0x98] sm:$0xff]  ;;  %p4848_p6 = scmp.lt.s32.totalorder %s4842_s14, %s9082_s3 }
 0x2ad   : > { %v4471_v28 = vpop.eup %4470  ;;  %v1822_v62 = vsel %vm1819_vm7, %v1821_v29, %v1817_v53  ;;  %v1826_v55 = vmul.f32 %v4469_v14, %v1825_v13  ;;  %vm1833_vm11 = vcmp.eq.f32.partialorder %v1832_v36, 8.507059e+37  ;;  %vm1842_vm13 = vweird.f32 %v6527_v50  ;;  %v2173_v29 = vld [vmem:[#allocation14 + $0xd8] sm:$0xff]  ;;  %v2198_v53 = vld [vmem:[#allocation14 + $0x1a0] sm:$0xff] }
 0x2ae   : > { %v1856_v10 = vmul.f32 %v1822_v62, %v1680_v61  ;;  %v1838_v59 = vmul.f32 %v4471_v28, %v6527_v50  ;;  %vm1843_vm12 = vweird.f32 %v4471_v28  ;;  %v1849_v9 = vor.u32 1.1754944e-38, %v1848_v49  ;;  %2344 = vmatpush.msrb.mxu2 %v2205_v56  ;;  %v2169_v13 = vld [vmem:[#allocation14 + $0xb8] sm:$0xff]  ;;  %v2207_v62 = vld [vmem:[#allocation14 + $0x1e8] sm:$0xff]  ;;  %v2194_v36 = vld [vmem:[#allocation14 + $0x180] sm:$0xff] }
 0x2af   : > { %v1827_v17 = vadd.f32 %v4469_v14, %v1826_v55  ;;  %vm1844_vm14 = vmor %vm1842_vm13, %vm1843_vm12  ;;  %vm1847_vm15 = vcmp.eq.f32.partialorder %v1846_v33, 8.507059e+37  ;;  %2261 = vmatpush.msrb.mxu0 %v2207_v62  ;;  %v2170_v34 = vld [vmem:[#allocation14 + $0xc0] sm:$0xff]  ;;  %v2161_v56 = vld [vmem:[#allocation14 + $0x78] sm:$0xff] }
 0x2b0   : > { %v1839_v22 = vsub.f32 1.0, %v1838_v59  ;;  %2345 = vmatpush.msrb.mxu2 %v2201_v7  ;;  %v2151_v62 = vld [vmem:[#allocation14 + $0x28] sm:$0xff] }
 0x2b1   : > { %v1831_v48 = vsel %vm1830_vm10, %v4469_v14, %v1827_v17  ;;  %v2190_v17 = vld [vmem:[#allocation14 + $0x160] sm:$0xff] }
 0x2b2   : > { %v1836_v18 = vsel %vm1833_vm11, %v1835_v16, %v1831_v48  ;;  %v1840_v3 = vmul.f32 %v4471_v28, %v1839_v22  ;;  %2346 = vmatpush.msrb.mxu2 %v2197_v12  ;;  %v2186_v16 = vld [vmem:[#allocation14 + $0x140] sm:$0xff]  ;;  %v2183_v12 = vld [vmem:[#allocation14 + $0x128] sm:$0xff] }
 0x2b3   : > { %1910 = vmatmul.f32.gmra.mxu3 %v1856_v10  ;;  %v1857_v35 = vmul.f32 %v1836_v18, %v1681_v2  ;;  %v2203_v10 = vld [vmem:[#allocation14 + $0x1c8] sm:$0xff]  ;;  %v2182_v22 = vld [vmem:[#allocation14 + $0x120] sm:$0xff] }
 0x2b4   : > { %v1841_v43 = vadd.f32 %v4471_v28, %v1840_v3  ;;  %2347 = vmatpush.msrb.mxu2 %v2193_v21  ;;  %2262 = vmatpush.msrb.mxu0 %v2203_v10  ;;  %v2178_v18 = vld [vmem:[#allocation14 + $0x100] sm:$0xff] }
 0x2b5   : > { %v2166_v21 = vld [vmem:[#allocation14 + $0xa0] sm:$0xff] }
 0x2b6   : > { %v1845_v57 = vsel %vm1844_vm14, %v4471_v28, %v1841_v43  ;;  %2348 = vmatpush.msrb.mxu2 %v2189_v51  ;;  %v2179_v51 = vld [vmem:[#allocation14 + $0x108] sm:$0xff] }
 0x2b7   : > { %v1850_v41 = vsel %vm1847_vm15, %v1849_v9, %v1845_v57 }
 0x2b8   : > { %v1858_v40 = vmul.f32 %v1850_v41, %v1682_v47  ;;  %2349 = vmatpush.msrb.mxu2 %v2185_v8  ;;  %v2206_v47 = vld [vmem:[#allocation14 + $0x1e0] sm:$0xff] }
 0x2b9   : > { %2220 = vmatpush.msra.mxu1 %v2206_v47  ;;  %v2154_v47 = vld [vmem:[#allocation14 + $0x40] sm:$0xff] }
 0x2ba   : > { %2350 = vmatpush.msrb.mxu2 %v2181_v44 }
 0x2bb   : > { %1913 = vmatmul.f32.gmra.mxu3 %v1857_v35  ;;  %2221 = vmatpush.msra.mxu1 %v2202_v23  ;;  %v2155_v23 = vld [vmem:[#allocation14 + $0x48] sm:$0xff] }
 0x2bc   : > { %2351 = vmatpush.msrb.mxu2 %v2177_v20  ;;  %v2158_v20 = vld [vmem:[#allocation14 + $0x60] sm:$0xff] }
 0x2bd   : > { %2222 = vmatpush.msra.mxu1 %v2198_v53  ;;  %v2157_v53 = vld [vmem:[#allocation14 + $0x58] sm:$0xff] }
 0x2be   : > { %2352 = vmatpush.msrb.mxu2 %v2173_v29 }
 0x2bf   : > { %2223 = vmatpush.msra.mxu1 %v2194_v36  ;;  %v2153_v36 = vld [vmem:[#allocation14 + $0x38] sm:$0xff] }
 0x2c0   : > { %2353 = vmatpush.msrb.mxu2 %v2169_v13 }
 0x2c1   : > { %2224 = vmatpush.msra.mxu1 %v2190_v17  ;;  %v2146_v17 = vld [vmem:[#allocation14] sm:$0xff] }
 0x2c2   : > { %2354 = vmatpush.msrb.mxu2 %v2165_v19 }
 0x2c3   : > { %1916 = vmatmul.f32.gmra.mxu3 %v1858_v40  ;;  %2225 = vmatpush.msra.mxu1 %v2186_v16  ;;  %v2199_v40 = vld [vmem:[#allocation14 + $0x1a8] sm:$0xff] }
 0x2c4   : > { %2263 = vmatpush.msrb.mxu0 %v2199_v40  ;;  %2355 = vmatpush.msrb.mxu2 %v2161_v56  ;;  %v2147_v16 = vld [vmem:[#allocation14 + $0x8] sm:$0xff]  ;;  %v2208_v40 = vld [vmem:[#allocation14 + $0x1f0] sm:$0xff] }
 0x2c5   : > { %2226 = vmatpush.msra.mxu1 %v2182_v22 }
 0x2c6   : > { %2356 = vmatpush.msrb.mxu2 %v2157_v53 }
 0x2c7   : > { %2227 = vmatpush.msra.mxu1 %v2178_v18 }
 0x2c8   : > { %2357 = vmatpush.msrb.mxu2 %v2153_v36 }
 0x2f7   : > { %v1896_v0 = vpop.f32.mrf.mxu0 }
 0x2f8   : > { %v6558_v60 = vadd.f32 %v4324_v15, %v1896_v0  ;;  %v2195_v0 = vld [vmem:[#allocation14 + $0x188] sm:$0xff] }
 0x2f9   : > { %2264 = vmatpush.msrb.mxu0 %v2195_v0 }
 0x2fa   : > { %8860 = vst [vmem:[#allocation73_spill] sm:$0xff] %v6558_v60  ;;  %1952 = vmatmul.f32.vlgmr.msrb.gmra.mxu1 %v6558_v60 }
 0x309   : > { %v1899_v52 = vpop.f32.mrf.mxu0 }
 0x30a   : > { %v6561_v5 = vadd.f32 %v4324_v15, %v1899_v52  ;;  %v2191_v52 = vld [vmem:[#allocation14 + $0x168] sm:$0xff] }
 0x30b   : > { %2265 = vmatpush.msrb.mxu0 %v2191_v52 }
 0x30c   : > { %8861 = vst [vmem:[#allocation71_spill] sm:$0xff] %v6561_v5  ;;  %1955 = vmatmul.f32.gmra.mxu1 %v6561_v5 }
 0x319   : > { %v1902_v63 = vpop.f32.mrf.mxu0 }
 0x31a   : > { %v6564_v26 = vadd.f32 %v4324_v15, %v1902_v63  ;;  %v2187_v63 = vld [vmem:[#allocation14 + $0x148] sm:$0xff] }
 0x31b   : > { %2266 = vmatpush.msrb.mxu0 %v2187_v63 }
 0x31c   : > { %8862 = vst [vmem:[#allocation77_spill] sm:$0xff] %v6564_v26  ;;  %1958 = vmatmul.f32.gmra.mxu1 %v6564_v26 }
 0x31d   : > { %2267 = vmatpush.msrb.mxu0 %v2183_v12  ;;  %v2200_v12 = vld [vmem:[#allocation14 + $0x1b0] sm:$0xff] }
 0x31f   : > { %2268 = vmatpush.msrb.mxu0 %v2179_v51 }
 0x325   : > { %v1905_v25 = vpop.f32.mrf.mxu0 }
 0x326   : > { %v6567_v39 = vadd.f32 %v4324_v15, %v1905_v25 }
 0x328   : > { %8863 = vst [vmem:[#allocation74_spill] sm:$0xff] %v6567_v39  ;;  %1961 = vmatmul.f32.gmra.mxu1 %v6567_v39 }
 0x32e   : > { %v1908_v61 = vpop.f32.mrf.mxu3 }
 0x32f   : > { %v6570_v42 = vadd.f32 %v4324_v15, %v1908_v61  ;;  %v2175_v61 = vld [vmem:[#allocation14 + $0xe8] sm:$0xff] }
 0x330   : > { %2269 = vmatpush.msrb.mxu0 %v2175_v61 }
 0x331   : > { %8864 = vst [vmem:[#allocation78_spill] sm:$0xff] %v6570_v42  ;;  %1964 = vmatmul.f32.gmra.mxu1 %v6570_v42 }
 0x336   : > { %v1911_v11 = vpop.f32.mrf.mxu3 }
 0x337   : > { %v6573_v50 = vadd.f32 %v4324_v15, %v1911_v11  ;;  %v2162_v11 = vld [vmem:[#allocation14 + $0x80] sm:$0xff] }
 0x339   : > { %8865 = vst [vmem:[#allocation95_spill] sm:$0xff] %v6573_v50  ;;  %1967 = vmatmul.f32.gmra.mxu1 %v6573_v50 }
 0x33e   : > { %v1914_v32 = vpop.f32.mrf.mxu3 }
 0x33f   : > { %v6576_v58 = vadd.f32 %v4324_v15, %v1914_v32 }
 0x341   : > { %8866 = vst [vmem:[#allocation79_spill] sm:$0xff] %v6576_v58  ;;  %1970 = vmatmul.f32.gmra.mxu1 %v6576_v58 }
 0x346   : > { %v1917_v37 = vpop.f32.mrf.mxu3 }
 0x347   : > { %v6579_v14 = vadd.f32 %v4324_v15, %v1917_v37  ;;  %v2174_v15 = vld [vmem:[#allocation14 + $0xe0] sm:$0xff] }
 0x348   : > { %2228 = vmatpush.msra.mxu1 %v2174_v15  ;;  %v2204_v15 = vld [vmem:[#allocation14 + $0x1d0] sm:$0xff] }
 0x349   : > { %8867 = vst [vmem:[#allocation85_spill] sm:$0xff] %v6579_v14  ;;  %1973 = vmatmul.f32.gmra.mxu1 %v6579_v14 }
 0x34a   : > { %2229 = vmatpush.msra.mxu1 %v2170_v34 }
 0x34c   : > { %2230 = vmatpush.msra.mxu1 %v2166_v21  ;;  %v2196_v21 = vld [vmem:[#allocation14 + $0x190] sm:$0xff] }
 0x34e   : > { %2231 = vmatpush.msra.mxu1 %v2162_v11 }
 0x350   : > { %2232 = vmatpush.msra.mxu1 %v2158_v20 }
 0x352   : > { %2233 = vmatpush.msra.mxu1 %v2154_v47  ;;  %v2184_v47 = vld [vmem:[#allocation14 + $0x130] sm:$0xff] }
 0x377   : > { %v1953_v31 = vpop.f32.mrf.mxu1 }
 0x378   : > { %v6583_v27 = vsub.f32 %v6558_v60, %v1953_v31  ;;  %v2171_v31 = vld [vmem:[#allocation14 + $0xc8] sm:$0xff] }
 0x379   : > { %2270 = vmatpush.msrb.mxu0 %v2171_v31  ;;  %v2192_v31 = vld [vmem:[#allocation14 + $0x170] sm:$0xff]  ;;  %v3665_v60 = vld [vmem:[#allocation16 + $0x8] sm:$0xff] }
 0x37a   : > { %v1985_v4 = vmul.f32 %v6583_v27, %v6583_v27 }
 0x37c   : > { %2009 = vmatmul.f32.vlgmr.msra.gmra.mxu0 %v1985_v4 }
 0x389   : > { %v1956_v46 = vpop.f32.mrf.mxu1 }
 0x38a   : > { %v6588_v38 = vsub.f32 %v6561_v5, %v1956_v46  ;;  %v2167_v46 = vld [vmem:[#allocation14 + $0xa8] sm:$0xff] }
 0x38b   : > { %2271 = vmatpush.msrb.mxu0 %v2167_v46 }
 0x38c   : > { %v1986_v45 = vmul.f32 %v6588_v38, %v6588_v38 }
 0x38e   : > { %2012 = vmatmul.f32.gmra.mxu0 %v1986_v45  ;;  %v2163_v45 = vld [vmem:[#allocation14 + $0x88] sm:$0xff] }
 0x38f   : > { %2272 = vmatpush.msrb.mxu0 %v2163_v45 }
 0x399   : > { %v1959_v1 = vpop.f32.mrf.mxu1 }
 0x39a   : > { %v6593_v2 = vsub.f32 %v6564_v26, %v1959_v1 }
 0x39c   : > { %v1987_v30 = vmul.f32 %v6593_v2, %v6593_v2 }
 0x39e   : > { %2015 = vmatmul.f32.gmra.mxu0 %v1987_v30 }
 0x3a5   : > { %v1962_v54 = vpop.f32.mrf.mxu1 }
 0x3a6   : > { %v6598_v24 = vsub.f32 %v6567_v39, %v1962_v54  ;;  %v2159_v54 = vld [vmem:[#allocation14 + $0x68] sm:$0xff] }
 0x3a7   : > { %2273 = vmatpush.msrb.mxu0 %v2159_v54 }
 0x3a8   : > { %v1988_v6 = vmul.f32 %v6598_v24, %v6598_v24 }
 0x3a9   : > { %2274 = vmatpush.msrb.mxu0 %v2155_v23  ;;  %v2180_v23 = vld [vmem:[#allocation14 + $0x110] sm:$0xff] }
 0x3aa   : > { %2018 = vmatmul.f32.gmra.mxu0 %v1988_v6  ;;  %v6625_v6 = vld [vmem:[%s8868_s12] ss:$0 sm:$0xff]  ;;  %s3925_s12 = sshll.u32 %s8428_s23, 4  ;;  %s3926_s12 = int_to_ptr.vmem [resolvable:$true] %s3925_s12 }
 0x3ab   : > { %2275 = vmatpush.msrb.mxu0 %v2151_v62 }
 0x3ad   : > { %2276 = vmatpush.msrb.mxu0 %v2147_v16 }
 0x3ae   : > { %v1965_v28 = vpop.f32.mrf.mxu1 }
 0x3af   : > { %v6603_v55 = vsub.f32 %v6570_v42, %v1965_v28  ;;  %v2150_v28 = vld [vmem:[#allocation14 + $0x20] sm:$0xff] }
 0x3b0   : > { %2234 = vmatpush.msra.mxu1 %v2150_v28 }
 0x3b1   : > { %v1989_v59 = vmul.f32 %v6603_v55, %v6603_v55 }
 0x3b2   : > { %2235 = vmatpush.msra.mxu1 %v2146_v17 }
 0x3b3   : > { %2021 = vmatmul.f32.gmra.mxu0 %v1989_v59  ;;  %v6632_v59 = vld [vmem:[%s8869_s25] ss:$0 sm:$0xff]  ;;  %s4843_s25 = scalar_lea.hbm %s4842_s14, 64 }
 0x3b4   : > { %2302 = vmatpush.msrb.mxu1 %v2208_v40  ;;  %p4844_p3 = scmp.ne.s32.totalorder %s4842_s14, %s4843_s25  ;;  %p4849_p7 = scmp.lt.s32.totalorder %s4847_s30, %s4843_s25 }
 0x3b6   : > { %v1968_v48 = vpop.f32.mrf.mxu1  ;;  %2303 = vmatpush.msrb.mxu1 %v2204_v15  ;;  %p4845_p4 = pnand %p4844_p3, %p5073_p11  ;;  %p4850_p8 = por %p4849_p7, %p4848_p6 }
 0x3b7   : > { %v6608_v49 = vsub.f32 %v6573_v50, %v1968_v48 }
 0x3b8   : > { %2304 = vmatpush.msrb.mxu1 %v2200_v12  ;;  %p4846_p5 = pneg %p4845_p4 }
 0x3b9   : > { %v1990_v3 = vmul.f32 %v6608_v49, %v6608_v49 }
 0x3ba   : > { %2305 = vmatpush.msrb.mxu1 %v2196_v21  ;;  %v2156_v21 = vld [vmem:[#allocation14 + $0x50] sm:$0xff]  ;;  %p4851_p9 = pnand %p4850_p8, %p4846_p5 }
 0x3bb   : > { %2024 = vmatmul.f32.gmra.mxu0 %v1990_v3 }
 0x3bc   : > { %2306 = vmatpush.msrb.mxu1 %v2192_v31  ;;  %v2152_v31 = vld [vmem:[#allocation14 + $0x30] sm:$0xff] }
 0x3be   : > { %v1971_v33 = vpop.f32.mrf.mxu1 }
 0x3bf   : > { %v6613_v35 = vsub.f32 %v6576_v58, %v1971_v33 }
 0x3c1   : > { %v1991_v43 = vmul.f32 %v6613_v35, %v6613_v35 }
 0x3c3   : > { %2027 = vmatmul.f32.gmra.mxu0 %v1991_v43 }
 0x3c6   : > { %v1974_v9 = vpop.f32.mrf.mxu1 }
 0x3c7   : > { %v6618_v57 = vsub.f32 %v6579_v14, %v1974_v9 }
 0x3c9   : > { %v1992_v41 = vmul.f32 %v6618_v57, %v6618_v57 }
 0x3cb   : > { %2030 = vmatmul.f32.gmra.mxu0 %v1992_v41 }
 0x3f9   : > { %v2010_v25 = vpop.f32.mrf.mxu0 }
 0x3fa   : > { %v2011_v7 = vadd.f32 1e-06, %v2010_v25 }
 0x3fc   : > { %4472 = vrsqrt.f32 %v2011_v7  ;;  %vm2040_vm1 = vweird.f32 %v2011_v7 }
 0x402   : > { %v4473_v32 = vpop.eup %4472 }
 0x403   : > { %v2035_v37 = vmul.f32 %v4473_v32, %v2011_v7  ;;  %vm2041_vm0 = vweird.f32 %v4473_v32 }
 0x404   : > { %vm2042_vm2 = vmor %vm2040_vm1, %vm2041_vm0 }
 0x405   : > { %v2036_v4 = vmul.f32 %v4473_v32, %v2035_v37 }
 0x407   : > { %v2037_v8 = vmul.f32 0.5, %v2036_v4  ;;  %v2188_v4 = vld [vmem:[#allocation14 + $0x150] sm:$0xff] }
 0x408   : > { %2307 = vmatpush.msrb.mxu1 %v2188_v4 }
 0x409   : > { %v2038_v44 = vsub.f32 1.5, %v2037_v8 }
 0x40a   : > { %2308 = vmatpush.msrb.mxu1 %v2184_v47 }
 0x40b   : > { %v2039_v1 = vmul.f32 %v4473_v32, %v2038_v44  ;;  %v2013_v30 = vpop.f32.mrf.mxu0 }
 0x40c   : > { %v2014_v29 = vadd.f32 1e-06, %v2013_v30  ;;  %2309 = vmatpush.msrb.mxu1 %v2180_v23 }
 0x40d   : > { %v2043_v13 = vsel %vm2042_vm2, %v4473_v32, %v2039_v1 }
 0x40e   : > { %v2114_v19 = vmul.f32 %v2043_v13, %v6583_v27  ;;  %4474 = vrsqrt.f32 %v2014_v29  ;;  %v2149_v27 = vld [vmem:[#allocation14 + $0x18] sm:$0xff]  ;;  %vm2050_vm4 = vweird.f32 %v2014_v29 }
 0x40f   : > { %2358 = vmatpush.msrb.mxu2 %v2149_v27  ;;  %v2176_v27 = vld [vmem:[#allocation14 + $0xf0] sm:$0xff] }
 0x410   : > { %v2126_v10 = vmul.f32 %v6625_v6, %v2114_v19  ;;  %2310 = vmatpush.msrb.mxu1 %v2176_v27 }
 0x412   : > { %v6635_v22 = vadd.f32 %v6632_v59, %v2126_v10 }
 0x414   : > { %v4475_v48 = vpop.eup %4474  ;;  %2236 = vmatmul.f32.vlgmr.msra.gmra.mxu1 %v6635_v22  ;;  %2277 = vmatmul.f32.vlgmr.msrb.gmra.mxu0 %v6635_v22 }
 0x415   : > { %v2045_v18 = vmul.f32 %v4475_v48, %v2014_v29  ;;  %2359 = vmatmul.f32.vlgmr.msrb.gmra.mxu2 %v6635_v22  ;;  %vm2051_vm3 = vweird.f32 %v4475_v48 }
 0x416   : > { %vm2052_vm5 = vmor %vm2050_vm4, %vm2051_vm3 }
 0x417   : > { %v2046_v3 = vmul.f32 %v4475_v48, %v2045_v18 }
 0x419   : > { %v2047_v33 = vmul.f32 0.5, %v2046_v3 }
 0x41b   : > { %v2048_v43 = vsub.f32 1.5, %v2047_v33  ;;  %v2016_v9 = vpop.f32.mrf.mxu0 }
 0x41c   : > { %v2017_v41 = vadd.f32 1e-06, %v2016_v9 }
 0x41d   : > { %v2049_v0 = vmul.f32 %v4475_v48, %v2048_v43 }
 0x41e   : > { %4476 = vrsqrt.f32 %v2017_v41  ;;  %vm2060_vm7 = vweird.f32 %v2017_v41 }
 0x41f   : > { %v2053_v34 = vsel %vm2052_vm5, %v4475_v48, %v2049_v0  ;;  %v2172_v48 = vld [vmem:[#allocation14 + $0xd0] sm:$0xff] }
 0x420   : > { %v2115_v52 = vmul.f32 %v2053_v34, %v6588_v38  ;;  %2311 = vmatpush.msrb.mxu1 %v2172_v48  ;;  %v2164_v34 = vld [vmem:[#allocation14 + $0x90] sm:$0xff] }
 0x422   : > { %v2127_v56 = vmul.f32 %v6625_v6, %v2115_v52 }
 0x424   : > { %v4477_v63 = vpop.eup %4476  ;;  %v6643_v25 = vadd.f32 %v6632_v59, %v2127_v56 }
 0x425   : > { %v2055_v7 = vmul.f32 %v4477_v63, %v2017_v41  ;;  %vm2061_vm6 = vweird.f32 %v4477_v63  ;;  %v2168_v41 = vld [vmem:[#allocation14 + $0xb0] sm:$0xff] }
 0x426   : > { %2239 = vmatmul.f32.gmra.mxu1 %v6643_v25  ;;  %2280 = vmatmul.f32.gmra.mxu0 %v6643_v25  ;;  %vm2062_vm8 = vmor %vm2060_vm7, %vm2061_vm6 }
 0x427   : > { %v2056_v51 = vmul.f32 %v4477_v63, %v2055_v7  ;;  %v2019_v61 = vpop.f32.mrf.mxu0  ;;  %2362 = vmatmul.f32.gmra.mxu2 %v6643_v25  ;;  %2312 = vmatpush.msrb.mxu1 %v2168_v41 }
 0x428   : > { %v2020_v11 = vadd.f32 1e-06, %v2019_v61 }
 0x429   : > { %v2057_v38 = vmul.f32 0.5, %v2056_v51  ;;  %2313 = vmatpush.msrb.mxu1 %v2164_v34 }
 0x42a   : > { %4478 = vrsqrt.f32 %v2020_v11  ;;  %vm2070_vm10 = vweird.f32 %v2020_v11 }
 0x42b   : > { %v2058_v32 = vsub.f32 1.5, %v2057_v38 }
 0x42d   : > { %v2059_v37 = vmul.f32 %v4477_v63, %v2058_v32 }
 0x42f   : > { %v2063_v8 = vsel %vm2062_vm8, %v4477_v63, %v2059_v37  ;;  %v2160_v63 = vld [vmem:[#allocation14 + $0x70] sm:$0xff] }
 0x430   : > { %v4479_v46 = vpop.eup %4478  ;;  %v2116_v44 = vmul.f32 %v2063_v8, %v6593_v2  ;;  %v2022_v45 = vpop.f32.mrf.mxu0  ;;  %2314 = vmatpush.msrb.mxu1 %v2160_v63 }
 0x431   : > { %v2065_v1 = vmul.f32 %v4479_v46, %v2020_v11  ;;  %v2023_v30 = vadd.f32 1e-06, %v2022_v45  ;;  %vm2071_vm9 = vweird.f32 %v4479_v46 }
 0x432   : > { %v2128_v20 = vmul.f32 %v6625_v6, %v2116_v44  ;;  %vm2072_vm11 = vmor %vm2070_vm10, %vm2071_vm9  ;;  %2315 = vmatpush.msrb.mxu1 %v2156_v21 }
 0x433   : > { %v2066_v54 = vmul.f32 %v4479_v46, %v2065_v1  ;;  %4480 = vrsqrt.f32 %v2023_v30  ;;  %vm2080_vm13 = vweird.f32 %v2023_v30 }
 0x434   : > { %v6651_v29 = vadd.f32 %v6632_v59, %v2128_v20  ;;  %2316 = vmatpush.msrb.mxu1 %v2152_v31 }
 0x435   : > { %v2067_v13 = vmul.f32 0.5, %v2066_v54 }
 0x436   : > { %2242 = vmatmul.f32.gmra.mxu1 %v6651_v29  ;;  %2283 = vmatmul.f32.gmra.mxu0 %v6651_v29 }
 0x437   : > { %v2068_v53 = vsub.f32 1.5, %v2067_v13  ;;  %2365 = vmatmul.f32.gmra.mxu2 %v6651_v29 }
 0x438   : > { %v2025_v2 = vpop.f32.mrf.mxu0 }
 0x439   : > { %v4481_v19 = vpop.eup %4480  ;;  %v2069_v28 = vmul.f32 %v4479_v46, %v2068_v53  ;;  %v2026_v62 = vadd.f32 1e-06, %v2025_v2 }
 0x43a   : > { %v2075_v36 = vmul.f32 %v4481_v19, %v2023_v30  ;;  %vm2081_vm12 = vweird.f32 %v4481_v19 }
 0x43b   : > { %v2073_v10 = vsel %vm2072_vm11, %v4479_v46, %v2069_v28  ;;  %4482 = vrsqrt.f32 %v2026_v62  ;;  %vm2082_vm14 = vmor %vm2080_vm13, %vm2081_vm12  ;;  %vm2090_vm0 = vweird.f32 %v2026_v62 }
 0x43c   : > { %v2117_v17 = vmul.f32 %v2073_v10, %v6598_v24  ;;  %v2076_v16 = vmul.f32 %v4481_v19, %v2075_v36 }
 0x43e   : > { %v2077_v18 = vmul.f32 0.5, %v2076_v16  ;;  %v2129_v3 = vmul.f32 %v6625_v6, %v2117_v17 }
 0x440   : > { %v2078_v33 = vsub.f32 1.5, %v2077_v18  ;;  %v6659_v43 = vadd.f32 %v6632_v59, %v2129_v3  ;;  %v2028_v9 = vpop.f32.mrf.mxu0 }
 0x441   : > { %v4483_v40 = vpop.eup %4482  ;;  %v2029_v15 = vadd.f32 1e-06, %v2028_v9 }
 0x442   : > { %v2079_v0 = vmul.f32 %v4481_v19, %v2078_v33  ;;  %v2085_v24 = vmul.f32 %v4483_v40, %v2026_v62  ;;  %2245 = vmatmul.f32.gmra.mxu1 %v6659_v43  ;;  %2286 = vmatmul.f32.gmra.mxu0 %v6659_v43  ;;  %vm2091_vm15 = vweird.f32 %v4483_v40 }
 0x443   : > { %2368 = vmatmul.f32.gmra.mxu2 %v6659_v43  ;;  %4484 = vrsqrt.f32 %v2029_v15  ;;  %vm2092_vm1 = vmor %vm2090_vm0, %vm2091_vm15  ;;  %vm2100_vm3 = vweird.f32 %v2029_v15 }
 0x444   : > { %v2083_v52 = vsel %vm2082_vm14, %v4481_v19, %v2079_v0  ;;  %v2086_v56 = vmul.f32 %v4483_v40, %v2085_v24 }
 0x445   : > { %v2118_v7 = vmul.f32 %v2083_v52, %v6603_v55  ;;  %v2148_v55 = vld [vmem:[#allocation14 + $0x10] sm:$0xff] }
 0x446   : > { %v2087_v12 = vmul.f32 0.5, %v2086_v56  ;;  %2317 = vmatpush.msrb.mxu1 %v2148_v55 }
 0x447   : > { %v2130_v51 = vmul.f32 %v6625_v6, %v2118_v7 }
 0x448   : > { %v2088_v61 = vsub.f32 1.5, %v2087_v12  ;;  %v2031_v11 = vpop.f32.mrf.mxu0 }
 0x449   : > { %v4485_v38 = vpop.eup %4484  ;;  %v2032_v32 = vadd.f32 1e-06, %v2031_v11  ;;  %v2142_v37 = vadd.f32 %v6632_v59, %v2130_v51 }
 0x44a   : > { %v2089_v4 = vmul.f32 %v4483_v40, %v2088_v61  ;;  %v2095_v8 = vmul.f32 %v4485_v38, %v2029_v15  ;;  %vm2101_vm2 = vweird.f32 %v4485_v38 }
 0x44b   : > { %4486 = vrsqrt.f32 %v2032_v32  ;;  %2248 = vmatmul.f32.gmra.mxu1 %v2142_v37  ;;  %2289 = vmatmul.f32.gmra.mxu0 %v2142_v37  ;;  %vm2102_vm4 = vmor %vm2100_vm3, %vm2101_vm2  ;;  %vm2110_vm6 = vweird.f32 %v2032_v32 }
 0x44c   : > { %v2093_v46 = vsel %vm2092_vm1, %v4483_v40, %v2089_v4  ;;  %v2096_v44 = vmul.f32 %v4485_v38, %v2095_v8  ;;  %2371 = vmatmul.f32.gmra.mxu2 %v2142_v37 }
 0x44d   : > { %v2119_v45 = vmul.f32 %v2093_v46, %v6608_v49 }
 0x44e   : > { %v2097_v1 = vmul.f32 0.5, %v2096_v44 }
 0x44f   : > { %v2131_v30 = vmul.f32 %v6625_v6, %v2119_v45 }
 0x450   : > { %v2098_v20 = vsub.f32 1.5, %v2097_v1 }
 0x451   : > { %v4487_v54 = vpop.eup %4486  ;;  %v2143_v13 = vadd.f32 %v6632_v59, %v2131_v30 }
 0x452   : > { %v2099_v47 = vmul.f32 %v4485_v38, %v2098_v20  ;;  %v2105_v23 = vmul.f32 %v4487_v54, %v2032_v32  ;;  %vm2111_vm5 = vweird.f32 %v4487_v54 }
 0x453   : > { %2251 = vmatmul.f32.gmra.mxu1 %v2143_v13  ;;  %2292 = vmatmul.f32.gmra.mxu0 %v2143_v13  ;;  %vm2112_vm7 = vmor %vm2110_vm6, %vm2111_vm5 }
 0x454   : > { %v2103_v53 = vsel %vm2102_vm4, %v4485_v38, %v2099_v47  ;;  %v2106_v2 = vmul.f32 %v4487_v54, %v2105_v23  ;;  %2374 = vmatmul.f32.gmra.mxu2 %v2143_v13 }
 0x455   : > { %v2120_v49 = vmul.f32 %v2103_v53, %v6613_v35 }
 0x456   : > { %v2107_v19 = vmul.f32 0.5, %v2106_v2 }
 0x457   : > { %v2132_v28 = vmul.f32 %v6625_v6, %v2120_v49 }
 0x458   : > { %v2108_v62 = vsub.f32 1.5, %v2107_v19 }
 0x459   : > { %v2144_v36 = vadd.f32 %v6632_v59, %v2132_v28 }
 0x45a   : > { %v2109_v10 = vmul.f32 %v4487_v54, %v2108_v62 }
 0x45b   : > { %2254 = vmatmul.f32.gmra.mxu1 %v2144_v36  ;;  %2295 = vmatmul.f32.gmra.mxu0 %v2144_v36 }
 0x45c   : > { %v2113_v17 = vsel %vm2112_vm7, %v4487_v54, %v2109_v10  ;;  %2377 = vmatmul.f32.gmra.mxu2 %v2144_v36 }
 0x45d   : > { %v2121_v16 = vmul.f32 %v2113_v17, %v6618_v57  ;;  %v2210_v57 = vld [vmem:[%s8870_s9] sm:$0xf] }
 0x45e   : > { %v6683_v48 = vperm.slane %v2210_v57, 0  ;;  %v6699_v33 = vperm.slane %v2210_v57, 3 }
 0x45f   : > { %v2133_v27 = vmul.f32 %v6625_v6, %v2121_v16  ;;  %v6685_v6 = vperm.slane %v2210_v57, 1 }
 0x461   : > { %v2145_v35 = vadd.f32 %v6632_v59, %v2133_v27  ;;  %v3679_v27 = vld [vmem:[#allocation16 + $0x78] sm:$0xff] }
 0x462   : > { %3732 = vmatpush.msra.mxu3 %v3679_v27  ;;  %v3691_v27 = vld [vmem:[#allocation16 + $0xd8] sm:$0xff] }
 0x463   : > { %2257 = vmatmul.f32.gmra.mxu1 %v2145_v35  ;;  %2298 = vmatmul.f32.gmra.mxu0 %v2145_v35 }
 0x464   : > { %2380 = vmatmul.f32.gmra.mxu2 %v2145_v35 }
 0x46b   : > { %2318 = vmatmul.f32.vlgmr.msrb.gmra.mxu1 %v6635_v22 }
 0x473   : > { %2321 = vmatmul.f32.gmra.mxu1 %v6643_v25 }
 0x47b   : > { %2324 = vmatmul.f32.gmra.mxu1 %v6651_v29 }
 0x483   : > { %2327 = vmatmul.f32.gmra.mxu1 %v6659_v43 }
 0x48b   : > { %2330 = vmatmul.f32.gmra.mxu1 %v2142_v37 }
 0x491   : > { %v2237_v59 = vpop.f32.mrf.mxu1  ;;  %v2278_v18 = vpop.f32.mrf.mxu0 }
 0x492   : > { %v6688_v3 = vadd.f32 %v2237_v59, %v6683_v48  ;;  %v6691_v22 = vadd.f32 %v2278_v18, %v6685_v6 }
 0x493   : > { %2333 = vmatmul.f32.gmra.mxu1 %v2143_v13 }
 0x494   : > { %v6694_v25 = vmul.f32 0.70710677, %v6688_v3  ;;  %v6697_v29 = vmul.f32 0.70710677, %v6691_v22 }
 0x496   : > { %v6702_v43 = vand.u32 2147483647, %v6694_v25  ;;  %v6705_v9 = vand.u32 2147483647, %v6697_v29  ;;  %vm2448_vm4 = vcmp.lt.f32.partialorder %v6694_v25, 0.0  ;;  %vm2449_vm5 = vcmp.lt.f32.partialorder %v6697_v29, 0.0 }
 0x498   : > { %v2544_v41 = vmul.f32 0.3275911, %v6702_v43  ;;  %v2545_v40 = vmul.f32 0.3275911, %v6705_v9  ;;  %v2360_v15 = vpop.f32.mrf.mxu2 }
 0x499   : > { %v6710_v0 = vadd.f32 %v2360_v15, %v6699_v33  ;;  %v3694_v15 = vld [vmem:[#allocation16 + $0xf0] sm:$0xff] }
 0x49a   : > { %v2576_v24 = vadd.f32 1.0, %v2544_v41  ;;  %v2577_v34 = vadd.f32 1.0, %v2545_v40  ;;  %v3678_v40 = vld [vmem:[#allocation16 + $0x70] sm:$0xff] }
 0x49b   : > { %2336 = vmatmul.f32.gmra.mxu1 %v2144_v36  ;;  %v6713_v52 = vmul.f32 0.70710677, %v6710_v0  ;;  %3733 = vmatpush.msra.mxu3 %v3678_v40 }
 0x49c   : > { %4488 = vrcp.f32 %v2576_v24  ;;  %v2619_v38 = vand.u32 2147483648, %v2576_v24  ;;  %v2617_v31 = vand.u32 2147483647, %v2576_v24  ;;  %v2634_v4 = vand.u32 2147483648, %v2577_v34 }
 0x49d   : > { %4490 = vrcp.f32 %v2577_v34  ;;  %v6716_v56 = vand.u32 2147483647, %v6713_v52  ;;  %v2632_v46 = vand.u32 2147483647, %v2577_v34  ;;  %vm2613_vm10 = vweird.f32 %v2576_v24 }
 0x49e   : > { %v2620_v45 = vor.u32 1.1754944e-38, %v2619_v38  ;;  %vm2628_vm12 = vweird.f32 %v2577_v34  ;;  %vm2618_vm13 = vcmp.eq.f32.partialorder %v2617_v31, 8.507059e+37  ;;  %v2635_v13 = vor.u32 1.1754944e-38, %v2634_v4 }
 0x49f   : > { %v2547_v63 = vmul.f32 0.3275911, %v6716_v56  ;;  %vm2633_vm15 = vcmp.eq.f32.partialorder %v2632_v46, 8.507059e+37  ;;  %v3376_v38 = vsub.f32 0.0, %v6702_v43  ;;  %v3377_v4 = vsub.f32 0.0, %v6705_v9  ;;  %v3692_v46 = vld [vmem:[#allocation16 + $0xe0] sm:$0xff] }
 0x4a0   : > { %vm2451_vm6 = vcmp.lt.f32.partialorder %v6713_v52, 0.0  ;;  %v3669_v52 = vld [vmem:[#allocation16 + $0x28] sm:$0xff] }
 0x4a1   : > { %v6719_v51 = vadd.f32 1.0, %v2547_v63 }
 0x4a2   : > { %v4489_v7 = vpop.eup %4488 }
 0x4a3   : > { %v4491_v12 = vpop.eup %4490  ;;  %v2609_v21 = vmul.f32 %v4489_v7, %v2576_v24  ;;  %2339 = vmatmul.f32.gmra.mxu1 %v2145_v35  ;;  %4492 = vrcp.f32 %v6719_v51  ;;  %vm2614_vm8 = vweird.f32 %v4489_v7  ;;  %v2240_v8 = vpop.f32.mrf.mxu1  ;;  %v2664_v17 = vand.u32 2147483648, %v6719_v51  ;;  %v3695_v35 = vld [vmem:[#allocation16 + $0xf8] sm:$0xff] }
 0x4a4   : > { %v2624_v61 = vmul.f32 %v4491_v12, %v2577_v34  ;;  %vm2629_vm9 = vweird.f32 %v4491_v12  ;;  %vm2615_vm11 = vmor %vm2613_vm10, %vm2614_vm8  ;;  %v6723_v30 = vadd.f32 %v2240_v8, %v6683_v48  ;;  %v2281_v2 = vpop.f32.mrf.mxu0  ;;  %v2662_v18 = vand.u32 2147483647, %v6719_v51  ;;  %3773 = vmatpush.msra.mxu0 %v3695_v35 }
 0x4a5   : > { %v2610_v11 = vsub.f32 1.0, %v2609_v21  ;;  %vm2630_vm14 = vmor %vm2628_vm12, %vm2629_vm9  ;;  %v6737_v16 = vadd.f32 %v2281_v2, %v6685_v6  ;;  %vm2658_vm1 = vweird.f32 %v6719_v51 }
 0x4a6   : > { %v2625_v32 = vsub.f32 1.0, %v2624_v61  ;;  %v6733_v36 = vmul.f32 0.70710677, %v6723_v30  ;;  %3774 = vmatpush.msra.mxu0 %v3694_v15  ;;  %vm2663_vm3 = vcmp.eq.f32.partialorder %v2662_v18, 8.507059e+37  ;;  %v3674_v18 = vld [vmem:[#allocation16 + $0x50] sm:$0xff]  ;;  %v3379_v15 = vsub.f32 0.0, %v6716_v56 }
 0x4a7   : > { %v2611_v37 = vmul.f32 %v4489_v7, %v2610_v11  ;;  %v6747_v21 = vmul.f32 0.70710677, %v6737_v16  ;;  %v3677_v11 = vld [vmem:[#allocation16 + $0x68] sm:$0xff] }
 0x4a8   : > { %v2626_v55 = vmul.f32 %v4491_v12, %v2625_v32  ;;  %v6744_v63 = vand.u32 2147483647, %v6733_v36  ;;  %3734 = vmatpush.msra.mxu3 %v3677_v11  ;;  %vm2452_vm7 = vcmp.lt.f32.partialorder %v6733_v36, 0.0 }
 0x4a9   : > { %v2612_v44 = vadd.f32 %v4489_v7, %v2611_v37  ;;  %v4493_v20 = vpop.eup %4492  ;;  %vm2453_vm8 = vcmp.lt.f32.partialorder %v6747_v21, 0.0 }
 0x4aa   : > { %v2627_v1 = vadd.f32 %v4491_v12, %v2626_v55  ;;  %v2654_v53 = vmul.f32 %v4493_v20, %v6719_v51  ;;  %vm2659_vm0 = vweird.f32 %v4493_v20  ;;  %v2363_v61 = vpop.f32.mrf.mxu2  ;;  %v3693_v51 = vld [vmem:[#allocation16 + $0xe8] sm:$0xff]  ;;  %v3676_v55 = vld [vmem:[#allocation16 + $0x60] sm:$0xff] }
 0x4ab   : > { %v2616_v54 = vsel %vm2615_vm11, %v4489_v7, %v2612_v44  ;;  %vm2660_vm2 = vmor %vm2658_vm1, %vm2659_vm0  ;;  %3775 = vmatpush.msra.mxu0 %v3693_v51  ;;  %v6754_v44 = vld [vmem:[#allocation16 + $0x1f8] sm:$0xff]  ;;  %3735 = vmatpush.msra.mxu3 %v3676_v55  ;;  %v3689_v51 = vld [vmem:[#allocation16 + $0xc8] sm:$0xff] }
 0x4ac   : > { %v6725_v47 = vsel %vm2618_vm13, %v2620_v45, %v2616_v54  ;;  %v2631_v23 = vsel %vm2630_vm14, %v4491_v12, %v2627_v1  ;;  %v2655_v62 = vsub.f32 1.0, %v2654_v53  ;;  %v2665_v12 = vor.u32 1.1754944e-38, %v2664_v17  ;;  %3855 = vmatpush.msra.mxu2 %v6754_v44 }
 0x4ad   : > { %v3088_v49 = vmul.f32 1.0614054, %v6725_v47  ;;  %v6729_v19 = vsel %vm2633_vm15, %v2635_v13, %v2631_v23  ;;  %v6760_v54 = vadd.f32 %v2363_v61, %v6699_v33  ;;  %v6764_v23 = vand.u32 2147483647, %v6747_v21  ;;  %3776 = vmatpush.msra.mxu0 %v3692_v46 }
 0x4ae   : > { %v3089_v28 = vmul.f32 1.0614054, %v6729_v19  ;;  %v2656_v59 = vmul.f32 %v4493_v20, %v2655_v62  ;;  %v3408_v53 = vmul.f32 %v3376_v38, %v6702_v43  ;;  %v6769_v62 = vmul.f32 0.5, %v6688_v3  ;;  %v6782_v3 = vld [vmem:[#allocation16 + $0x1f0] sm:$0xff] }
 0x4af   : > { %v3120_v10 = vadd.f32 -1.4531521, %v3088_v49  ;;  %v3409_v17 = vmul.f32 %v3377_v4, %v6705_v9  ;;  %v6780_v43 = vmul.f32 0.70710677, %v6760_v54  ;;  %3777 = vmatpush.msra.mxu0 %v3691_v27  ;;  %3856 = vmatpush.msra.mxu2 %v6782_v3  ;;  %v3672_v4 = vld [vmem:[#allocation16 + $0x40] sm:$0xff]  ;;  %v3687_v27 = vld [vmem:[#allocation16 + $0xb8] sm:$0xff] }
 0x4b0   : > { %v3121_v57 = vadd.f32 -1.4531521, %v3089_v28  ;;  %v2657_v34 = vadd.f32 %v4493_v20, %v2656_v59  ;;  %v3675_v28 = vld [vmem:[#allocation16 + $0x58] sm:$0xff] }
 0x4b1   : > { %v3152_v41 = vmul.f32 %v3120_v10, %v6725_v47  ;;  %v6772_v10 = vmul.f32 0.5, %v6691_v22  ;;  %3736 = vmatpush.msra.mxu3 %v3675_v28  ;;  %v3690_v22 = vld [vmem:[#allocation16 + $0xd0] sm:$0xff]  ;;  %v3442_v38 = vmul.f32 1.442695, %v3409_v17  ;;  %v6812_v55 = vand.u32 2147483647, %v6780_v43 }
 0x4b2   : > { %v3153_v24 = vmul.f32 %v3121_v57, %v6729_v19  ;;  %v2661_v37 = vsel %vm2660_vm2, %v4493_v20, %v2657_v34  ;;  %v2548_v20 = vmul.f32 0.3275911, %v6744_v63  ;;  %v6793_v34 = vld [vmem:[#allocation16 + $0x1e8] sm:$0xff]  ;;  %3778 = vmatpush.msra.mxu0 %v3690_v22  ;;  %v3670_v22 = vld [vmem:[#allocation16 + $0x30] sm:$0xff]  ;;  %vm2455_vm9 = vcmp.lt.f32.partialorder %v6780_v43, 0.0 }
 0x4b3   : > { %v3184_v7 = vadd.f32 1.4214138, %v3152_v41  ;;  %v6752_v8 = vsel %vm2663_vm3, %v2665_v12, %v2661_v37  ;;  %v2243_v59 = vpop.f32.mrf.mxu1  ;;  %v8558_v41 = vmov 1.0   ;;  %3737 = vmatpush.msra.mxu3 %v3674_v18  ;;  %v3440_v12 = vmul.f32 1.442695, %v3408_v53  ;;  %3857 = vmatpush.msra.mxu2 %v6793_v34  ;;  %v2284_v46 = vpop.f32.mrf.mxu0 }
 0x4b4   : > { %v3185_v32 = vadd.f32 1.4214138, %v3153_v24  ;;  %v3091_v1 = vmul.f32 1.0614054, %v6752_v8  ;;  %v6777_v57 = vadd.f32 1.0, %v2548_v20  ;;  %v6787_v9 = vsel %vm2448_vm4, -1.0, %v8558_v41  ;;  %3779 = vmatpush.msra.mxu0 %v3689_v51 }
 0x4b5   : > { %v3216_v31 = vmul.f32 %v3184_v7, %v6725_v47  ;;  %v2549_v24 = vmul.f32 0.3275911, %v6764_v23  ;;  %v3673_v7 = vld [vmem:[#allocation16 + $0x48] sm:$0xff]  ;;  %v6798_v61 = vsel %vm2449_vm5, -1.0, %v8558_v41  ;;  %v6803_v37 = vadd.f32 %v2243_v59, %v6683_v48 }
 0x4b6   : > { %v3217_v45 = vmul.f32 %v3185_v32, %v6729_v19  ;;  %v3123_v49 = vadd.f32 -1.4531521, %v3091_v1  ;;  %v3380_v32 = vsub.f32 0.0, %v6744_v63  ;;  %3738 = vmatpush.msra.mxu3 %v3673_v7  ;;  %4494 = vrcp.f32 %v6777_v57  ;;  %v6814_v1 = vld [vmem:[#allocation16 + $0x1d8] sm:$0xff]  ;;  %v3686_v7 = vld [vmem:[#allocation16 + $0xb0] sm:$0xff] }
 0x4b7   : > { %v3248_v13 = vadd.f32 -0.28449672, %v3216_v31  ;;  %v6806_v31 = vld [vmem:[#allocation16 + $0x1e0] sm:$0xff]  ;;  %v6817_v53 = vadd.f32 1.0, %v2549_v24  ;;  %4496 = vpow2.f32 %v3440_v12  ;;  %v6828_v18 = vadd.f32 %v2284_v46, %v6685_v6  ;;  %v6841_v12 = vld [vmem:[#allocation16 + $0x1c8] sm:$0xff] }
 0x4b8   : > { %v3249_v2 = vadd.f32 -0.28449672, %v3217_v45  ;;  %v3155_v35 = vmul.f32 %v3123_v49, %v6752_v8  ;;  %v3688_v45 = vld [vmem:[#allocation16 + $0xc0] sm:$0xff]  ;;  %3858 = vmatpush.msra.mxu2 %v6806_v31  ;;  %3739 = vmatpush.msra.mxu3 %v3672_v4  ;;  %v3671_v49 = vld [vmem:[#allocation16 + $0x38] sm:$0xff]  ;;  %4498 = vpow2.f32 %v3442_v38  ;;  %v3412_v59 = vmul.f32 %v3380_v32, %v6744_v63  ;;  %v3685_v32 = vld [vmem:[#allocation16 + $0xa8] sm:$0xff] }
 0x4b9   : > { %v3280_v40 = vmul.f32 %v3248_v13, %v6725_v47  ;;  %v3411_v13 = vmul.f32 %v3379_v15, %v6716_v56  ;;  %3780 = vmatpush.msra.mxu0 %v3688_v45  ;;  %v6825_v56 = vmul.f32 0.70710677, %v6803_v37  ;;  %v6837_v15 = vsel %vm2451_vm6, -1.0, %v8558_v41 }
 0x4ba   : > { %v3281_v25 = vmul.f32 %v3249_v2, %v6729_v19  ;;  %v3187_v11 = vadd.f32 1.4214138, %v3155_v35  ;;  %v3381_v2 = vsub.f32 0.0, %v6764_v23  ;;  %v6821_v35 = vld [vmem:[#allocation16 + $0x1d0] sm:$0xff]  ;;  %3859 = vmatpush.msra.mxu2 %v6814_v1  ;;  %3740 = vmatpush.msra.mxu3 %v3671_v49  ;;  %v2551_v24 = vmul.f32 0.3275911, %v6812_v55 }
 0x4bb   : > { %v3312_v20 = vadd.f32 0.2548296, %v3280_v40  ;;  %v6832_v40 = vmul.f32 0.5, %v6710_v0  ;;  %3781 = vmatpush.msra.mxu0 %v3687_v27  ;;  %v6845_v38 = vmul.f32 0.5, %v6723_v30  ;;  %4500 = vrcp.f32 %v6817_v53  ;;  %v2366_v0 = vpop.f32.mrf.mxu2  ;;  %v6855_v30 = vld [vmem:[#allocation16 + $0x1c0] sm:$0xff] }
 0x4bc   : > { %v3219_v29 = vmul.f32 %v3187_v11, %v6752_v8  ;;  %v3313_v28 = vadd.f32 0.2548296, %v3281_v25  ;;  %v3446_v11 = vmul.f32 1.442695, %v3411_v13  ;;  %3860 = vmatpush.msra.mxu2 %v6821_v35  ;;  %3741 = vmatpush.msra.mxu3 %v3670_v22  ;;  %v6849_v51 = vpop.eup %4494  ;;  %v6858_v46 = vand.u32 2147483647, %v6825_v56 }
 0x4bd   : > { %v3344_v25 = vmul.f32 %v3312_v20, %v6725_v47  ;;  %8871 = vst [vmem:[#allocation81_spill] sm:$0xff] %v6845_v38  ;;  %v3413_v47 = vmul.f32 %v3381_v2, %v6764_v23  ;;  %3782 = vmatpush.msra.mxu0 %v3686_v7  ;;  %v6861_v45 = vmul.f32 0.70710677, %v6828_v18  ;;  %v6865_v13 = vmul.f32 0.5, %v6737_v16  ;;  %v6885_v7 = vld [vmem:[#allocation16 + $0x1b8] sm:$0xff] }
 0x4be   : > { %v3251_v17 = vadd.f32 -0.28449672, %v3219_v29  ;;  %v3345_v4 = vmul.f32 %v3313_v28, %v6729_v19  ;;  %v3448_v29 = vmul.f32 1.442695, %v3412_v59  ;;  %3861 = vmatpush.msra.mxu2 %v6841_v12  ;;  %3742 = vmatpush.msra.mxu3 %v3669_v52  ;;  %v4497_v19 = vpop.eup %4496  ;;  %v6867_v49 = vadd.f32 1.0, %v2551_v24  ;;  %v3684_v24 = vld [vmem:[#allocation16 + $0xa0] sm:$0xff] }
 0x4bf   : > { %8872 = vst [vmem:[#allocation39_spill] sm:$0xff] %v6865_v13  ;;  %v6870_v23 = vadd.f32 %v2366_v0, %v6699_v33  ;;  %3783 = vmatpush.msra.mxu0 %v3685_v32  ;;  %v4499_v2 = vpop.eup %4498  ;;  %v3504_v28 = vmul.f32 %v4497_v19, %v3344_v25  ;;  %4502 = vpow2.f32 %v3446_v11  ;;  %v2669_v27 = vmul.f32 %v6849_v51, %v6777_v57  ;;  %v2246_v32 = vpop.f32.mrf.mxu1 }
 0x4c0   : > { %v3283_v63 = vmul.f32 %v3251_v17, %v6752_v8  ;;  %v6875_v17 = vsel %vm2452_vm7, -1.0, %v8558_v41  ;;  %3862 = vmatpush.msra.mxu2 %v6855_v30  ;;  %v3505_v16 = vmul.f32 %v4499_v2, %v3345_v4  ;;  %v6883_v59 = vsel %vm2453_vm8, -1.0, %v8558_v41  ;;  %v3667_v4 = vld [vmem:[#allocation16 + $0x18] sm:$0xff]  ;;  %v2287_v41 = vpop.f32.mrf.mxu0  ;;  %v6913_v2 = vld [vmem:[#allocation16 + $0x1a8] sm:$0xff] }
 0x4c1   : > { %8873 = vst [vmem:[#allocation111_spill] sm:$0xff] %v6883_v59  ;;  %v3450_v22 = vmul.f32 1.442695, %v3413_v47  ;;  %v6887_v25 = vpop.eup %4500  ;;  %4504 = vpow2.f32 %v3448_v29  ;;  %v2552_v11 = vmul.f32 0.3275911, %v6858_v46  ;;  %3784 = vmatpush.msra.mxu0 %v3684_v24  ;;  %v3683_v47 = vld [vmem:[#allocation16 + $0x98] sm:$0xff]  ;;  %vm2673_vm7 = vweird.f32 %v6777_v57 }
 0x4c2   : > { %v3315_v20 = vadd.f32 0.2548296, %v3283_v63  ;;  %v3668_v63 = vld [vmem:[#allocation16 + $0x20] sm:$0xff]  ;;  %v6892_v0 = vand.u32 2147483647, %v6861_v45  ;;  %4506 = vrcp.f32 %v6867_v49  ;;  %3863 = vmatpush.msra.mxu2 %v6885_v7  ;;  %v3536_v29 = vsub.f32 1.0, %v3504_v28 }
 0x4c3   : > { %3743 = vmatpush.msra.mxu3 %v3668_v63  ;;  %v6898_v52 = vmul.f32 0.70710677, %v6870_v23  ;;  %v2670_v19 = vsub.f32 1.0, %v2669_v27  ;;  %v6903_v63 = vmul.f32 0.5, %v6760_v54  ;;  %3785 = vmatpush.msra.mxu0 %v3683_v47  ;;  %v6909_v24 = vmul.f32 %v6887_v25, %v6817_v53  ;;  %v3666_v28 = vld [vmem:[#allocation16 + $0x10] sm:$0xff] }
 0x4c4   : > { %v3347_v21 = vmul.f32 %v3315_v20, %v6752_v8  ;;  %v6905_v8 = vld [vmem:[#allocation16 + $0x1b0] sm:$0xff]  ;;  %v3537_v20 = vsub.f32 1.0, %v3505_v16  ;;  %4508 = vpow2.f32 %v3450_v22  ;;  %v3383_v36 = vsub.f32 0.0, %v6812_v55 }
 0x4c5   : > { %8874 = vst [vmem:[#allocation98_spill] sm:$0xff] %v6903_v63  ;;  %3744 = vmatpush.msra.mxu3 %v3667_v4  ;;  %3864 = vmatpush.msra.mxu2 %v6905_v8  ;;  %v3682_v27 = vld [vmem:[#allocation16 + $0x90] sm:$0xff]  ;;  %v4503_v54 = vpop.eup %4502  ;;  %v8875_v4 = vmov 1.0   ;;  %v6920_v16 = vadd.f32 1.0, %v2552_v11  ;;  %v2553_v14 = vmul.f32 0.3275911, %v6892_v0  ;;  %v6924_v22 = vadd.f32 %v2246_v32, %v6683_v48 }
 0x4c6   : > { %v6918_v47 = vsel %vm2455_vm9, -1.0, %v8875_v4  ;;  %3786 = vmatpush.msra.mxu0 %v3682_v27  ;;  %v3507_v58 = vmul.f32 %v4503_v54, %v3347_v21  ;;  %v6927_v50 = vmul.f32 0.5, %v6803_v37  ;;  %vm2456_vm10 = vcmp.lt.f32.partialorder %v6825_v56, 0.0 }
 0x4c7   : > { %8876 = vst [vmem:[#allocation62_spill] sm:$0xff] %v6918_v47  ;;  %3745 = vmatpush.msra.mxu3 %v3666_v28  ;;  %v6931_v42 = vand.u32 2147483647, %v6898_v52  ;;  %3865 = vmatpush.msra.mxu2 %v6913_v2  ;;  %v6934_v43 = vpop.eup %4504  ;;  %v3568_v11 = vmul.f32 %v3536_v29, %v6787_v9  ;;  %v6938_v32 = vmul.f32 %v6849_v51, %v2670_v19  ;;  %v3384_v28 = vsub.f32 0.0, %v6858_v46  ;;  %v3681_v9 = vld [vmem:[#allocation16 + $0x88] sm:$0xff]  ;;  %v6950_v29 = vld [vmem:[#allocation16 + $0x1a0] sm:$0xff] }
 0x4c8   : > { %8877 = vst [vmem:[#allocation70_spill] sm:$0xff] %v6927_v50  ;;  %v6942_v21 = vadd.f32 %v2287_v41, %v6685_v6  ;;  %v6944_v37 = vpop.eup %4506  ;;  %v3569_v27 = vmul.f32 %v3537_v20, %v6798_v61  ;;  %v2685_v54 = vsub.f32 1.0, %v6909_v24  ;;  %v3415_v39 = vmul.f32 %v3383_v36, %v6812_v55  ;;  %v2369_v20 = vpop.f32.mrf.mxu2  ;;  %3787 = vmatpush.msra.mxu0 %v3681_v9 }
 0x4c9   : > { %v3385_v5 = vsub.f32 0.0, %v6892_v0  ;;  %v6955_v19 = vsel %vm2456_vm10, -1.0, %v8875_v4  ;;  %4510 = vrcp.f32 %v6920_v16  ;;  %v6958_v41 = vadd.f32 1.0, %v2553_v14  ;;  %3746 = vmatpush.msra.mxu3 %v3665_v60  ;;  %3866 = vmatpush.msra.mxu2 %v6950_v29 }
 0x4ca   : > { %8878 = vst [vmem:[#allocation36_spill] sm:$0xff] %v6955_v19  ;;  %v6961_v61 = vmul.f32 0.70710677, %v6924_v22  ;;  %v6963_v55 = vpop.eup %4508  ;;  %v3539_v36 = vsub.f32 1.0, %v3507_v58  ;;  %vm2457_vm11 = vcmp.lt.f32.partialorder %v6861_v45, 0.0  ;;  %v3600_v26 = vadd.f32 1.0, %v3568_v11 }
 0x4cb   : > { %8879 = vst [vmem:[#allocation108_spill] sm:$0xff] %v6963_v55  ;;  %v2555_v56 = vmul.f32 0.3275911, %v6931_v42  ;;  %v2714_v14 = vmul.f32 %v6944_v37, %v6867_v49  ;;  %v3416_v50 = vmul.f32 %v3384_v28, %v6858_v46  ;;  %v6973_v60 = vmul.f32 0.70710677, %v6942_v21  ;;  %v2249_v28 = vpop.f32.mrf.mxu1 }
 0x4cc   : > { %v3601_v9 = vadd.f32 1.0, %v3569_v27  ;;  %v3454_v19 = vmul.f32 1.442695, %v3415_v39  ;;  %v3417_v58 = vmul.f32 %v3385_v5, %v6892_v0  ;;  %v6977_v24 = vadd.f32 %v2369_v20, %v6699_v33  ;;  %v7028_v39 = vld [vmem:[#allocation16 + $0x190] sm:$0xff] }
 0x4cd   : > { %v6980_v45 = vmul.f32 0.5, %v6828_v18  ;;  %v6983_v11 = vsel %vm2457_vm11, -1.0, %v8875_v4  ;;  %4512 = vrcp.f32 %v6958_v41  ;;  %v6987_v46 = vand.u32 2147483647, %v6961_v61 }
 0x4ce   : > { %8881 = vst [vmem:[#allocation114_spill] sm:$0xff] %v6983_v11  ;;  %v3571_v27 = vmul.f32 %v3539_v36, %v6837_v15  ;;  %v6992_v5 = vmul.f32 0.5, %v6870_v23  ;;  %v6994_v0 = vadd.f32 1.0, %v2555_v56  ;;  %v3632_v20 = vmul.f32 %v3600_v26, %v6769_v62  ;;  %v3680_v62 = vld [vmem:[#allocation16 + $0x80] sm:$0xff]  ;;  %v7014_v56 = vld [vmem:[#allocation16 + $0x198] sm:$0xff] }
 0x4cf   : > { %8880 = vst [vmem:[#allocation65_spill] sm:$0xff] %v6980_v45  ;;  %v6996_v18 = vpop.eup %4510  ;;  %v2715_v45 = vsub.f32 1.0, %v2714_v14  ;;  %v3456_v11 = vmul.f32 1.442695, %v3416_v50  ;;  %v7000_v63 = vand.u32 2147483647, %v6973_v60  ;;  %v3633_v47 = vmul.f32 %v3601_v9, %v6772_v10  ;;  %3788 = vmatpush.msra.mxu0 %v3680_v62  ;;  %3867 = vmatpush.msra.mxu2 %v7014_v56 }
 0x4d0   : > { %8882 = vst [vmem:[#allocation61_spill] sm:$0xff] %v6992_v5  ;;  %v3458_v13 = vmul.f32 1.442695, %v3417_v58  ;;  %v7004_v15 = vmul.f32 0.70710677, %v6977_v24  ;;  %v7007_v23 = vadd.f32 %v2249_v28, %v6683_v48  ;;  %v7010_v36 = vmul.f32 %v6887_v25, %v2685_v54  ;;  %v3664_v50 = vld [vmem:[#allocation16] sm:$0xff]  ;;  %v2290_v58 = vpop.f32.mrf.mxu0 }
 0x4d1   : > { %4514 = vpow2.f32 %v3454_v19  ;;  %vm2459_vm12 = vcmp.lt.f32.partialorder %v6898_v52, 0.0  ;;  %v2556_v26 = vmul.f32 0.3275911, %v6987_v46  ;;  %v3603_v10 = vadd.f32 1.0, %v3571_v27  ;;  %3747 = vmatpush.msra.mxu3 %v3664_v50  ;;  %3789 = vmatmul.f32.vlgmr.msra.gmra.mxu0 %v3633_v47  ;;  %v2372_v52 = vpop.f32.mrf.mxu2 }
 0x4d2   : > { %v2729_v14 = vmul.f32 %v6996_v18, %v6920_v16  ;;  %4516 = vrcp.f32 %v6994_v0  ;;  %v3387_v9 = vsub.f32 0.0, %v6931_v42  ;;  %v7023_v19 = vmul.f32 %v6944_v37, %v2715_v45  ;;  %3748 = vmatmul.f32.vlgmr.msra.gmra.mxu3 %v3632_v20  ;;  %3868 = vmatpush.msra.mxu2 %v7028_v39 }
 0x4d3   : > { %v7020_v54 = vpop.eup %4512  ;;  %4518 = vpow2.f32 %v3456_v11  ;;  %v2557_v27 = vmul.f32 0.3275911, %v7000_v63  ;;  %v7033_v50 = vsel %vm2459_vm12, -1.0, %v8875_v4  ;;  %v2527_v62 = vand.u32 2147483647, %v7004_v15  ;;  %4157 = vmatpush.msrb.mxu3 %v6754_v44  ;;  %v7066_v44 = vld [vmem:[#allocation16 + $0x180] sm:$0xff] }
 0x4d4   : > { %4520 = vpow2.f32 %v3458_v13  ;;  %8883 = vst [vmem:[#allocation59_spill] sm:$0xff] %v7033_v50  ;;  %v7037_v45 = vmul.f32 0.70710677, %v7007_v23  ;;  %v7040_v11 = vmul.f32 0.5, %v6924_v22  ;;  %v7042_v28 = vadd.f32 1.0, %v2556_v26  ;;  %v7049_v50 = vld [vmem:[#allocation16 + $0x188] sm:$0xff] }
 0x4d5   : > { %v3388_v5 = vsub.f32 0.0, %v6987_v46  ;;  %v7046_v13 = vadd.f32 %v2290_v58, %v6685_v6  ;;  %v3635_v20 = vmul.f32 %v3603_v10, %v6832_v40  ;;  %v2730_v47 = vsub.f32 1.0, %v2729_v14  ;;  %3869 = vmatpush.msra.mxu2 %v7049_v50  ;;  %4158 = vmatpush.msrb.mxu3 %v6782_v3 }
 0x4d6   : > { %8884 = vst [vmem:[#allocation52_spill] sm:$0xff] %v7040_v11  ;;  %v2744_v22 = vmul.f32 %v7020_v54, %v6958_v41  ;;  %v3419_v26 = vmul.f32 %v3387_v9, %v6931_v42  ;;  %vm2460_vm13 = vcmp.lt.f32.partialorder %v6961_v61, 0.0  ;;  %v7060_v58 = vmul.f32 0.5, %v6942_v21 }
 0x4d7   : > { %8885 = vst [vmem:[#allocation80_spill] sm:$0xff] %v7042_v28  ;;  %v7056_v11 = vpop.eup %4514  ;;  %v7062_v59 = vadd.f32 1.0, %v2557_v27  ;;  %v3389_v38 = vsub.f32 0.0, %v7000_v63  ;;  %v7072_v42 = vmul.f32 0.5, %v6977_v24  ;;  %v2559_v10 = vmul.f32 0.3275911, %v2527_v62  ;;  %3870 = vmatpush.msra.mxu2 %v7066_v44  ;;  %4159 = vmatpush.msrb.mxu3 %v6793_v34 }
 0x4d8   : > { %8886 = vst [vmem:[#allocation92_spill] sm:$0xff] %v7056_v11  ;;  %v7069_v40 = vpop.eup %4516  ;;  %v7075_v14 = vand.u32 2147483647, %v7037_v45  ;;  %v7078_v21 = vadd.f32 %v2372_v52, %v6699_v33  ;;  %4522 = vrcp.f32 %v7042_v28  ;;  %v3420_v27 = vmul.f32 %v3388_v5, %v6987_v46  ;;  %v2252_v11 = vpop.f32.mrf.mxu1  ;;  %3871 = vmatmul.f32.vlgmr.msra.gmra.mxu2 %v3635_v20 }
 0x4d9   : > { %8887 = vst [vmem:[#allocation40_spill] sm:$0xff] %v7060_v58  ;;  %v7080_v9 = vpop.eup %4518  ;;  %v3391_v58 = vsub.f32 0.0, %v2527_v62  ;;  %v7085_v3 = vmul.f32 0.70710677, %v7046_v13  ;;  %v7092_v52 = vmul.f32 %v6996_v18, %v2730_v47  ;;  %v3462_v55 = vmul.f32 1.442695, %v3419_v26  ;;  %4160 = vmatpush.msrb.mxu3 %v6806_v31  ;;  %v2293_v26 = vpop.f32.mrf.mxu0 }
 0x4da   : > { %8888 = vst [vmem:[#allocation41_spill] sm:$0xff] %v7062_v59  ;;  %v7089_v24 = vpop.eup %4520  ;;  %v2774_v46 = vmul.f32 %v7069_v40, %v6994_v0  ;;  %vm2461_vm14 = vcmp.lt.f32.partialorder %v6973_v60, 0.0  ;;  %4524 = vrcp.f32 %v7062_v59  ;;  %v3421_v5 = vmul.f32 %v3389_v38, %v7000_v63 }
 0x4db   : > { %8889 = vst [vmem:[#allocation48_spill] sm:$0xff] %v7069_v40  ;;  %v7101_v34 = vadd.f32 1.0, %v2559_v10  ;;  %v2560_v47 = vmul.f32 0.3275911, %v7075_v14  ;;  %v7108_v20 = vadd.f32 %v2252_v11, %v6683_v48  ;;  %v3423_v38 = vmul.f32 %v3391_v58, %v2527_v62  ;;  %4161 = vmatpush.msrb.mxu3 %v6814_v1 }
 0x4dc   : > { %8890 = vst [vmem:[#allocation109_spill] sm:$0xff] %v7072_v42  ;;  %v2745_v42 = vsub.f32 1.0, %v2744_v22  ;;  %v7105_v22 = vmul.f32 0.70710677, %v7078_v21  ;;  %v7116_v31 = vand.u32 2147483647, %v7085_v3  ;;  %4526 = vpow2.f32 %v3462_v55 }
 0x4dd   : > { %8891 = vst [vmem:[#allocation83_spill] sm:$0xff] %v7080_v9  ;;  %v7113_v9 = vsel %vm2460_vm13, -1.0, %v8875_v4  ;;  %v7125_v11 = vsel %vm2461_vm14, -1.0, %v8875_v4  ;;  %vm2463_vm15 = vcmp.lt.f32.partialorder %v7004_v15, 0.0  ;;  %v2775_v10 = vsub.f32 1.0, %v2774_v46  ;;  %4162 = vmatpush.msrb.mxu3 %v6821_v35 }
 0x4de   : > { %8892 = vst [vmem:[#allocation101_spill] sm:$0xff] %v7089_v24  ;;  %v3464_v24 = vmul.f32 1.442695, %v3420_v27  ;;  %v7120_v63 = vmul.f32 %v7020_v54, %v2745_v42  ;;  %v7128_v61 = vpop.eup %4522  ;;  %v3466_v58 = vmul.f32 1.442695, %v3421_v5  ;;  %v7132_v27 = vadd.f32 %v2293_v26, %v6685_v6 }
 0x4df   : > { %8893 = vst [vmem:[#allocation50_spill] sm:$0xff] %v7113_v9  ;;  %4528 = vrcp.f32 %v7101_v34  ;;  %v7136_v1 = vadd.f32 1.0, %v2560_v47  ;;  %v7139_v55 = vand.u32 2147483647, %v7105_v22  ;;  %v7142_v60 = vmul.f32 0.70710677, %v7108_v20  ;;  %4163 = vmatpush.msrb.mxu3 %v6841_v12  ;;  %v2375_v12 = vpop.f32.mrf.mxu2 }
 0x4e0   : > { %8894 = vst [vmem:[#allocation67_spill] sm:$0xff] %v7125_v11  ;;  %v7144_v15 = vpop.eup %4524  ;;  %4530 = vpow2.f32 %v3464_v24  ;;  %v7147_v42 = vsel %vm2463_vm15, -1.0, %v8875_v4  ;;  %v3470_v46 = vmul.f32 1.442695, %v3423_v38  ;;  %v2561_v5 = vmul.f32 0.3275911, %v7116_v31 }
 0x4e1   : > { %8895 = vst [vmem:[#allocation82_spill] sm:$0xff] %v7147_v42  ;;  %v2789_v35 = vmul.f32 %v7128_v61, %v7042_v28  ;;  %v7154_v47 = vmul.f32 0.5, %v7007_v23  ;;  %v3392_v26 = vsub.f32 0.0, %v7075_v14  ;;  %v7158_v62 = vmul.f32 0.70710677, %v7132_v27  ;;  %4164 = vmatpush.msrb.mxu3 %v6855_v30 }
 0x4e2   : > { %v7161_v24 = vmul.f32 %v7069_v40, %v2775_v10  ;;  %4532 = vpow2.f32 %v3466_v58  ;;  %v7165_v42 = vand.u32 2147483647, %v7142_v60  ;;  %v7168_v11 = vpop.eup %4526  ;;  %vm2464_vm0 = vcmp.lt.f32.partialorder %v7037_v45, 0.0 }
 0x4e3   : > { %8896 = vst [vmem:[#allocation93_spill] sm:$0xff] %v7154_v47  ;;  %4534 = vrcp.f32 %v7136_v1  ;;  %v2563_v10 = vmul.f32 0.3275911, %v7139_v55  ;;  %v2255_v47 = vpop.f32.mrf.mxu1  ;;  %v2804_v58 = vmul.f32 %v7144_v15, %v7062_v59  ;;  %v7176_v38 = vadd.f32 1.0, %v2561_v5  ;;  %4165 = vmatpush.msrb.mxu3 %v6885_v7 }
 0x4e4   : > { %8897 = vst [vmem:[#allocation53_spill] sm:$0xff] %v7168_v11  ;;  %4536 = vpow2.f32 %v3470_v46  ;;  %v7179_v9 = vand.u32 2147483647, %v7158_v62  ;;  %v2790_v23 = vsub.f32 1.0, %v2789_v35  ;;  %v3424_v45 = vmul.f32 %v3392_v26, %v7075_v14 }
 0x4e5   : > { %v7182_v30 = vpop.eup %4528  ;;  %v3393_v11 = vsub.f32 0.0, %v7116_v31  ;;  %v7187_v28 = vadd.f32 %v2375_v12, %v6699_v33  ;;  %v7192_v46 = vsel %vm2464_vm0, -1.0, %v8875_v4  ;;  %v7195_v5 = vmul.f32 0.5, %v7046_v13  ;;  %4166 = vmatpush.msrb.mxu3 %v6905_v8 }
 0x4e6   : > { %v7189_v40 = vpop.eup %4530  ;;  %8899 = vst [vmem:[#allocation86_spill] sm:$0xff] %v7192_v46  ;;  %v2564_v7 = vmul.f32 0.3275911, %v7165_v42  ;;  %v7199_v59 = vadd.f32 %v2255_v47, %v6683_v48  ;;  %vm2465_vm1 = vcmp.lt.f32.partialorder %v7085_v3, 0.0  ;;  %v7204_v14 = vmul.f32 0.5, %v7078_v21 }
 0x4e7   : > { %8898 = vst [vmem:[#allocation54_spill] sm:$0xff] %v7189_v40  ;;  %v7206_v35 = vadd.f32 1.0, %v2563_v10  ;;  %v3395_v26 = vsub.f32 0.0, %v7139_v55  ;;  %v2805_v13 = vsub.f32 1.0, %v2804_v58  ;;  %4538 = vrcp.f32 %v7176_v38  ;;  %4167 = vmatpush.msrb.mxu3 %v6913_v2 }
 0x4e8   : > { %8900 = vst [vmem:[#allocation42_spill] sm:$0xff] %v7195_v5  ;;  %v7209_v12 = vpop.eup %4532  ;;  %v2834_v5 = vmul.f32 %v7182_v30, %v7101_v34  ;;  %v2565_v47 = vmul.f32 0.3275911, %v7179_v9  ;;  %v7219_v21 = vmul.f32 %v7128_v61, %v2790_v23  ;;  %v3472_v10 = vmul.f32 1.442695, %v3424_v45 }
 0x4e9   : > { %8901 = vst [vmem:[#allocation43_spill] sm:$0xff] %v7204_v14  ;;  %v7216_v8 = vpop.eup %4534  ;;  %v3425_v14 = vmul.f32 %v3393_v11, %v7116_v31  ;;  %v7223_v46 = vmul.f32 0.70710677, %v7187_v28  ;;  %vm2467_vm2 = vcmp.lt.f32.partialorder %v7105_v22, 0.0  ;;  %v7233_v2 = vadd.f32 1.0, %v2564_v7  ;;  %4168 = vmatpush.msrb.mxu3 %v6950_v29 }
 0x4ea   : > { %8902 = vst [vmem:[#allocation75_spill] sm:$0xff] %v7206_v35  ;;  %v7225_v58 = vpop.eup %4536  ;;  %v7236_v23 = vmul.f32 0.70710677, %v7199_v59  ;;  %4540 = vrcp.f32 %v7206_v35  ;;  %v3427_v11 = vmul.f32 %v3395_v26, %v7139_v55  ;;  %v3396_v45 = vsub.f32 0.0, %v7165_v42  ;;  %v2378_v26 = vpop.f32.mrf.mxu2 }
 0x4eb   : > { %8903 = vst [vmem:[#allocation103_spill] sm:$0xff] %v7209_v12  ;;  %v7230_v12 = vsel %vm2465_vm1, -1.0, %v8875_v4  ;;  %v7244_v3 = vmul.f32 %v7144_v15, %v2805_v13  ;;  %v2849_v22 = vmul.f32 %v7216_v8, %v7136_v1  ;;  %v7248_v7 = vadd.f32 1.0, %v2565_v47  ;;  %4169 = vmatpush.msrb.mxu3 %v7014_v56 }
 0x4ec   : > { %8904 = vst [vmem:[#allocation110_spill] sm:$0xff] %v7216_v8  ;;  %4542 = vpow2.f32 %v3472_v10  ;;  %v3474_v29 = vmul.f32 1.442695, %v3425_v14  ;;  %v7252_v31 = vsel %vm2467_vm2, -1.0, %v8875_v4  ;;  %v2535_v55 = vand.u32 2147483647, %v7223_v46 }
 0x4ed   : > { %8905 = vst [vmem:[#allocation72_spill] sm:$0xff] %v7225_v58  ;;  %v7255_v58 = vpop.eup %4538  ;;  %4544 = vrcp.f32 %v7233_v2  ;;  %v2536_v47 = vand.u32 2147483647, %v7236_v23  ;;  %4170 = vmatpush.msrb.mxu3 %v7028_v39  ;;  %v3478_v56 = vmul.f32 1.442695, %v3427_v11  ;;  %vm2468_vm3 = vcmp.lt.f32.partialorder %v7142_v60, 0.0 }
 0x4ee   : > { %8906 = vst [vmem:[#allocation55_spill] sm:$0xff] %v7230_v12  ;;  %v2835_v12 = vsub.f32 1.0, %v2834_v5  ;;  %v7259_v5 = vmul.f32 0.5, %v7108_v20  ;;  %v3428_v14 = vmul.f32 %v3396_v45, %v7165_v42  ;;  %v3397_v10 = vsub.f32 0.0, %v7179_v9  ;;  %v2296_v20 = vpop.f32.mrf.mxu0 }
 0x4ef   : > { %8907 = vst [vmem:[#allocation49_spill] sm:$0xff] %v7233_v2  ;;  %v2850_v13 = vsub.f32 1.0, %v2849_v22  ;;  %4546 = vrcp.f32 %v7248_v7  ;;  %4171 = vmatpush.msrb.mxu3 %v7049_v50  ;;  %v2864_v60 = vmul.f32 %v7255_v58, %v7176_v38  ;;  %v7280_v42 = vmul.f32 0.5, %v7132_v27 }
 0x4f0   : > { %8908 = vst [vmem:[#allocation64_spill] sm:$0xff] %v7252_v31  ;;  %v7268_v31 = vmul.f32 %v7182_v30, %v2835_v12  ;;  %v7275_v39 = vpop.eup %4540  ;;  %4548 = vpow2.f32 %v3474_v29  ;;  %v2567_v12 = vmul.f32 0.3275911, %v2535_v55  ;;  %v7284_v45 = vsel %vm2468_vm3, -1.0, %v8875_v4 }
 0x4f1   : > { %8909 = vst [vmem:[#allocation99_spill] sm:$0xff] %v7259_v5  ;;  %v7272_v5 = vadd.f32 %v2378_v26, %v6699_v33  ;;  %vm2469_vm4 = vcmp.lt.f32.partialorder %v7158_v62, 0.0  ;;  %v2568_v22 = vmul.f32 0.3275911, %v2536_v47  ;;  %4172 = vmatpush.msrb.mxu3 %v7066_v44  ;;  %4550 = vpow2.f32 %v3478_v56 }
 0x4f2   : > { %8910 = vst [vmem:[#allocation100_spill] sm:$0xff] %v7280_v42  ;;  %v7288_v50 = vpop.eup %4542  ;;  %v3480_v26 = vmul.f32 1.442695, %v3428_v14  ;;  %v3429_v29 = vmul.f32 %v3397_v10, %v7179_v9  ;;  %v2297_v27 = vadd.f32 %v2296_v20, %v6685_v6  ;;  %v7295_v11 = vmul.f32 %v7216_v8, %v2850_v13 }
 0x4f3   : > { %8911 = vst [vmem:[#allocation84_spill] sm:$0xff] %v7284_v45  ;;  %v7292_v42 = vpop.eup %4544  ;;  %v2894_v45 = vmul.f32 %v7275_v39, %v7206_v35  ;;  %v3399_v62 = vsub.f32 0.0, %v2535_v55  ;;  %v7300_v40 = vmul.f32 0.70710677, %v7272_v5  ;;  %v2865_v44 = vsub.f32 1.0, %v2864_v60 }
 0x4f4   : > { %8912 = vst [vmem:[#allocation96_spill] sm:$0xff] %v7288_v50  ;;  %v7303_v56 = vsel %vm2469_vm4, -1.0, %v8875_v4  ;;  %v7305_v14 = vadd.f32 1.0, %v2567_v12  ;;  %v3400_v9 = vsub.f32 0.0, %v2536_v47  ;;  %v7311_v13 = vmul.f32 0.5, %v7187_v28 }
 0x4f5   : > { %8913 = vst [vmem:[#allocation57_spill] sm:$0xff] %v7295_v11  ;;  %v7307_v10 = vpop.eup %4546  ;;  %v7313_v50 = vadd.f32 1.0, %v2568_v22  ;;  %v7316_v35 = vand.u32 2147483647, %v7300_v40  ;;  %v2909_v60 = vmul.f32 %v7292_v42, %v7233_v2  ;;  %4552 = vpow2.f32 %v3480_v26  ;;  %v2258_v2 = vpop.f32.mrf.mxu1 }
 0x4f6   : > { %8914 = vst [vmem:[#allocation115_spill] sm:$0xff] %v7303_v56  ;;  %v7318_v8 = vpop.eup %4548  ;;  %v3482_v12 = vmul.f32 1.442695, %v3429_v29  ;;  %v2441_v56 = vmul.f32 0.70710677, %v2297_v27  ;;  %v2895_v11 = vsub.f32 1.0, %v2894_v45  ;;  %v3431_v20 = vmul.f32 %v3399_v62, %v2535_v55 }
 0x4f7   : > { %8915 = vst [vmem:[#allocation88_spill] sm:$0xff] %v7305_v14  ;;  %vm2471_vm5 = vcmp.lt.f32.partialorder %v7223_v46, 0.0  ;;  %v2571_v28 = vmul.f32 0.3275911, %v7316_v35  ;;  %v2924_v22 = vmul.f32 %v7307_v10, %v7248_v7  ;;  %4554 = vrcp.f32 %v7305_v14 }
 0x4f8   : > { %8916 = vst [vmem:[#allocation44_spill] sm:$0xff] %v7307_v10  ;;  %vm2472_vm6 = vcmp.lt.f32.partialorder %v7236_v23, 0.0  ;;  %v7332_v45 = vmul.f32 %v7255_v58, %v2865_v44  ;;  %v7336_v26 = vmul.f32 0.5, %v7199_v59  ;;  %4556 = vrcp.f32 %v7313_v50 }
 0x4f9   : > { %8917 = vst [vmem:[#allocation45_spill] sm:$0xff] %v7311_v13  ;;  %v7324_v13 = vpop.eup %4550  ;;  %v2910_v29 = vsub.f32 1.0, %v2909_v60  ;;  %4558 = vpow2.f32 %v3482_v12  ;;  %v2537_v62 = vand.u32 2147483647, %v2441_v56  ;;  %v7344_v23 = vsel %vm2471_vm5, -1.0, %v8875_v4 }
 0x4fa   : > { %8918 = vst [vmem:[#allocation89_spill] sm:$0xff] %v7313_v50  ;;  %v7347_v44 = vsel %vm2472_vm6, -1.0, %v8875_v4  ;;  %v7353_v55 = vmul.f32 %v7275_v39, %v2895_v11  ;;  %v2925_v60 = vsub.f32 1.0, %v2924_v22  ;;  %vm2473_vm8 = vcmp.lt.f32.partialorder %v2441_v56, 0.0 }
 0x4fb   : > { %8919 = vst [vmem:[#allocation104_spill] sm:$0xff] %v7318_v8  ;;  %v3432_v8 = vmul.f32 %v3400_v9, %v2536_v47  ;;  %v3486_v47 = vmul.f32 1.442695, %v3431_v20  ;;  %v2259_v9 = vadd.f32 %v2258_v2, %v6683_v48  ;;  %v7350_v59 = vpop.eup %4552  ;;  %v7359_v46 = vmul.f32 0.5, %v7272_v5  ;;  %v2299_v20 = vpop.f32.mrf.mxu0 }
 0x4fc   : > { %8920 = vst [vmem:[#allocation58_spill] sm:$0xff] %v7324_v13  ;;  %v7339_v13 = vadd.f32 1.0, %v2571_v28  ;;  %vm2688_vm9 = vweird.f32 %v6817_v53  ;;  %v7366_v48 = vmul.f32 %v7292_v42, %v2910_v29  ;;  %v2569_v2 = vmul.f32 0.3275911, %v2537_v62 }
 0x4fd   : > { %8921 = vst [vmem:[#allocation38_spill] sm:$0xff] %v7336_v26  ;;  %v3488_v12 = vmul.f32 1.442695, %v3432_v8  ;;  %v7356_v26 = vmul.f32 0.5, %v2297_v27  ;;  %vm2475_vm10 = vcmp.lt.f32.partialorder %v7300_v40, 0.0  ;;  %v7373_v5 = vsel %vm2473_vm8, -1.0, %v8875_v4 }
 0x4fe   : > { %8922 = vst [vmem:[#allocation68_spill] sm:$0xff] %v7344_v23  ;;  %4560 = vrcp.f32 %v7339_v13  ;;  %v7375_v27 = vmul.f32 0.70710677, %v2259_v9  ;;  %v2672_v56 = vadd.f32 %v6849_v51, %v6938_v32  ;;  %v7382_v29 = vmul.f32 %v7307_v10, %v2925_v60 }
 0x4ff   : > { %8923 = vst [vmem:[#allocation112_spill] sm:$0xff] %v7347_v44  ;;  %v7362_v44 = vpop.eup %4554  ;;  %4562 = vpow2.f32 %v3486_v47  ;;  %v3401_v8 = vsub.f32 0.0, %v2537_v62  ;;  %v2300_v40 = vadd.f32 %v2299_v20, %v6685_v6  ;;  %v7386_v28 = vsel %vm2475_vm10, -1.0, %v8875_v4 }
 0x500   : > { %8924 = vst [vmem:[#allocation113_spill] sm:$0xff] %v7350_v59  ;;  %v7370_v11 = vpop.eup %4556  ;;  %4564 = vpow2.f32 %v3488_v12  ;;  %v7388_v47 = vmul.f32 0.5, %v2259_v9  ;;  %vm2674_vm11 = vweird.f32 %v6849_v51  ;;  %v2954_v32 = vmul.f32 %v7362_v44, %v7305_v14 }
 0x501   : > { %8925 = vst [vmem:[#allocation87_spill] sm:$0xff] %v7356_v26  ;;  %v7379_v22 = vpop.eup %4558  ;;  %v2677_v26 = vand.u32 2147483647, %v6777_v57  ;;  %v2969_v60 = vmul.f32 %v7370_v11, %v7313_v50  ;;  %vm2675_vm12 = vmor %vm2673_vm7, %vm2674_vm11  ;;  %v8933_v6 = vand.u32 2147483648, %v6777_v57  ;;  %v3403_v20 = vsub.f32 0.0, %v7316_v35 }
 0x502   : > { %8926 = vst [vmem:[#allocation60_spill] sm:$0xff] %v7362_v44  ;;  %v2676_v23 = vsel %vm2675_vm12, %v6849_v51, %v2672_v56  ;;  %v2687_v57 = vadd.f32 %v6887_v25, %v7010_v36  ;;  %v3433_v50 = vmul.f32 %v3401_v8, %v2537_v62  ;;  %vm2476_vm14 = vcmp.lt.f32.partialorder %v7375_v27, 0.0 }
 0x503   : > { %8927 = vst [vmem:[#allocation97_spill] sm:$0xff] %v7370_v11  ;;  %v2680_v12 = vor.u32 1.1754944e-38, %v8933_v6  ;;  %vm2678_vm13 = vcmp.eq.f32.partialorder %v2677_v26, 8.507059e+37  ;;  %vm2689_vm15 = vweird.f32 %v6887_v25  ;;  %v2955_v26 = vsub.f32 1.0, %v2954_v32 }
 0x504   : > { %8928 = vst [vmem:[#allocation37_spill] sm:$0xff] %v7373_v5  ;;  %v7396_v5 = vadd.f32 1.0, %v2569_v2  ;;  %v7402_v9 = vpop.eup %4560  ;;  %v7409_v2 = vmul.f32 0.5, %v2300_v40  ;;  %vm2690_vm0 = vmor %vm2688_vm9, %vm2689_vm15  ;;  %v8937_v32 = vand.u32 2147483648, %v6817_v53  ;;  %vm3018_vm3 = vweird.f32 %v7339_v13 }
 0x505   : > { %8929 = vst [vmem:[#allocation46_spill] sm:$0xff] %v7379_v22  ;;  %v3014_v22 = vmul.f32 %v7402_v9, %v7339_v13  ;;  %v7411_v59 = vsel %vm2678_vm13, %v2680_v12, %v2676_v23  ;;  %v7415_v6 = vpop.eup %4562  ;;  %v2692_v23 = vand.u32 2147483647, %v6817_v53  ;;  %v2970_v12 = vsub.f32 1.0, %v2969_v60  ;;  %v2319_v53 = vpop.f32.mrf.mxu1 }
 0x506   : > { %8930 = vst [vmem:[#allocation47_spill] sm:$0xff] %v7382_v29  ;;  %v3092_v10 = vmul.f32 1.0614054, %v7411_v59  ;;  %v7420_v51 = vpop.eup %4564  ;;  %4566 = vrcp.f32 %v7396_v5  ;;  %v2695_v29 = vor.u32 1.1754944e-38, %v8937_v32  ;;  %vm3019_vm1 = vweird.f32 %v7402_v9 }
 0x507   : > { %8931 = vst [vmem:[#allocation106_spill] sm:$0xff] %v7388_v47  ;;  %v2540_v47 = vand.u32 2147483647, %v7375_v27  ;;  %v3015_v56 = vsub.f32 1.0, %v3014_v22  ;;  %v2445_v22 = vmul.f32 0.70710677, %v2300_v40  ;;  %vm2718_vm4 = vweird.f32 %v6867_v49  ;;  %vm7456_vm5 = vmor %vm3018_vm3, %vm3019_vm1 }
 0x508   : > { %8932 = vst [vmem:[#allocation91_spill] sm:$0xff] %v7396_v5  ;;  %vm2693_vm2 = vcmp.eq.f32.partialorder %v2692_v23, 8.507059e+37  ;;  %v3022_v40 = vand.u32 2147483647, %v7339_v13  ;;  %vm2719_vm8 = vweird.f32 %v6944_v37  ;;  %vm2733_vm9 = vweird.f32 %v6920_v16 }
 0x509   : > { %8934 = vst [vmem:[#allocation105_spill] sm:$0xff] %v7409_v2  ;;  %v3435_v2 = vmul.f32 %v3403_v20, %v7316_v35  ;;  %v2572_v62 = vmul.f32 0.3275911, %v2540_v47  ;;  %v3016_v8 = vmul.f32 %v7402_v9, %v3015_v56  ;;  %v4616_v35 = vld [vmem:[%s8870_s9] sm:$0xf]  ;;  %v3024_v56 = vand.u32 2147483648, %v7339_v13  ;;  %vm7506_vm10 = vmor %vm2718_vm4, %vm2719_vm8 }
 0x50a   : > { %8935 = vst [vmem:[#allocation66_spill] sm:$0xff] %v7415_v6  ;;  %v3124_v6 = vadd.f32 -1.4531521, %v3092_v10  ;;  %v7436_v60 = vperm.slane %v4616_v35, 2  ;;  %v3490_v35 = vmul.f32 1.442695, %v3433_v50  ;;  %vm2734_vm12 = vweird.f32 %v6996_v18 }
 0x50b   : > { %8936 = vst [vmem:[#allocation63_spill] sm:$0xff] %v7420_v51  ;;  %v2691_v51 = vsel %vm2690_vm0, %v6887_v25, %v2687_v57  ;;  %v3017_v20 = vadd.f32 %v7402_v9, %v3016_v8  ;;  %v7445_v57 = vadd.f32 1.0, %v2572_v62  ;;  %v7452_v8 = vmul.f32 %v7362_v44, %v2955_v26 }
 0x50c   : > { %v3156_v10 = vmul.f32 %v3124_v6, %v7411_v59  ;;  %v7441_v25 = vsel %vm2693_vm2, %v2695_v29, %v2691_v51  ;;  %v7448_v32 = vpop.eup %4566  ;;  %v3404_v6 = vsub.f32 0.0, %v2540_v47  ;;  %v2541_v62 = vand.u32 2147483647, %v2445_v22 }
 0x50d   : > { %v3093_v23 = vmul.f32 1.0614054, %v7441_v25  ;;  %8938 = vst [vmem:[#allocation90_spill] sm:$0xff] %v7452_v8  ;;  %v3021_v51 = vsel %vm7456_vm5, %v7402_v9, %v3017_v20  ;;  %v7464_v14 = vadd.f32 %v2319_v53, %v7436_v60  ;;  %v7467_v26 = vmul.f32 %v7370_v11, %v2970_v12 }
 0x50e   : > { %v3188_v13 = vadd.f32 1.4214138, %v3156_v10  ;;  %v3025_v50 = vor.u32 1.1754944e-38, %v3024_v56  ;;  %v7472_v44 = vsel %vm2476_vm14, -1.0, %v8875_v4  ;;  %vm3023_vm6 = vcmp.eq.f32.partialorder %v3022_v40, 8.507059e+37  ;;  %vm7549_vm14 = vmor %vm2733_vm9, %vm2734_vm12 }
 0x50f   : > { %v3125_v36 = vadd.f32 -1.4531521, %v3093_v23  ;;  %8941 = vst [vmem:[#allocation102_spill] sm:$0xff] %v7472_v44  ;;  %v3494_v8 = vmul.f32 1.442695, %v3435_v2  ;;  %4568 = vrcp.f32 %v7445_v57  ;;  %v3436_v53 = vmul.f32 %v3404_v6, %v2540_v47 }
 0x510   : > { %v3220_v10 = vmul.f32 %v3188_v13, %v7411_v59  ;;  %v7477_v20 = vsel %vm3023_vm6, %v3025_v50, %v3021_v51  ;;  %vm2477_vm7 = vcmp.lt.f32.partialorder %v2445_v22, 0.0  ;;  %v2984_v56 = vmul.f32 %v7448_v32, %v7396_v5 }
 0x511   : > { %v3157_v9 = vmul.f32 %v3125_v36, %v7441_v25  ;;  %v2573_v23 = vmul.f32 0.3275911, %v2541_v62  ;;  %v7482_v29 = vmul.f32 0.70710677, %v7464_v14  ;;  %v3405_v13 = vsub.f32 0.0, %v2541_v62  ;;  %v2381_v36 = vpop.f32.mrf.mxu2 }
 0x512   : > { %v3252_v12 = vadd.f32 -0.28449672, %v3220_v10  ;;  %v2717_v40 = vadd.f32 %v6944_v37, %v7023_v19  ;;  %4570 = vpow2.f32 %v3490_v35  ;;  %v3115_v47 = vmul.f32 1.0614054, %v7477_v20 }
 0x513   : > { %v3189_v27 = vadd.f32 1.4214138, %v3157_v9  ;;  %4572 = vpow2.f32 %v3494_v8  ;;  %v3496_v51 = vmul.f32 1.442695, %v3436_v53  ;;  %v2722_v10 = vand.u32 2147483647, %v6867_v49 }
 0x514   : > { %v3284_v2 = vmul.f32 %v3252_v12, %v7411_v59  ;;  %v2985_v12 = vsub.f32 1.0, %v2984_v56  ;;  %v7497_v19 = vsel %vm2477_vm7, -1.0, %v8875_v4  ;;  %v7500_v35 = vand.u32 2147483647, %v7482_v29 }
 0x515   : > { %v3221_v6 = vmul.f32 %v3189_v27, %v7441_v25  ;;  %v7493_v9 = vpop.eup %4568  ;;  %8942 = vst [vmem:[#allocation51_spill] sm:$0xff] %v7497_v19  ;;  %v7510_v53 = vadd.f32 1.0, %v2573_v23  ;;  %v3437_v27 = vmul.f32 %v3405_v13, %v2541_v62  ;;  %v2721_v22 = vsel %vm7506_vm10, %v6944_v37, %v2717_v40 }
 0x516   : > { %v3316_v50 = vadd.f32 0.2548296, %v3284_v2  ;;  %v3147_v2 = vadd.f32 -1.4531521, %v3115_v47  ;;  %v2546_v19 = vmul.f32 0.3275911, %v7500_v35  ;;  %v3029_v23 = vmul.f32 %v7493_v9, %v7445_v57 }
 0x517   : > { %v3253_v44 = vadd.f32 -0.28449672, %v3221_v6  ;;  %v8945_v5 = vand.u32 2147483648, %v6867_v49  ;;  %vm2723_vm11 = vcmp.eq.f32.partialorder %v2722_v10, 8.507059e+37  ;;  %4574 = vpow2.f32 %v3496_v51 }
 0x518   : > { %v3348_v56 = vmul.f32 %v3316_v50, %v7411_v59  ;;  %v2732_v59 = vadd.f32 %v6996_v18, %v7092_v52  ;;  %v7525_v13 = vpop.eup %4570  ;;  %v7527_v40 = vadd.f32 1.0, %v2546_v19  ;;  %v2382_v47 = vadd.f32 %v2381_v36, %v6699_v33  ;;  %v8953_v33 = vld [vmem:[#allocation111_spill] sm:$0xff] }
 0x519   : > { %v3285_v6 = vmul.f32 %v3253_v44, %v7441_v25  ;;  %v2725_v11 = vor.u32 1.1754944e-38, %v8945_v5  ;;  %8946 = vst [vmem:[#allocation94_spill] sm:$0xff] %v7525_v13  ;;  %v7532_v49 = vpop.eup %4572  ;;  %vm2748_vm13 = vweird.f32 %v6958_v41  ;;  %v3179_v52 = vmul.f32 %v3147_v2, %v7477_v20 }
 0x51a   : > { %v3508_v62 = vmul.f32 %v6934_v43, %v3348_v56  ;;  %4576 = vrcp.f32 %v7527_v40  ;;  %v7542_v10 = vmul.f32 %v7448_v32, %v2985_v12  ;;  %v3030_v19 = vsub.f32 1.0, %v3029_v23 }
 0x51b   : > { %v3317_v37 = vadd.f32 0.2548296, %v3285_v6  ;;  %v7529_v44 = vsel %vm2723_vm11, %v2725_v11, %v2721_v22  ;;  %v2737_v11 = vand.u32 2147483647, %v6920_v16  ;;  %v3498_v51 = vmul.f32 1.442695, %v3437_v27 }
 0x51c   : > { %v3540_v5 = vsub.f32 1.0, %v3508_v62  ;;  %v3095_v43 = vmul.f32 1.0614054, %v7529_v44  ;;  %4578 = vrcp.f32 %v7510_v53  ;;  %v2736_v12 = vsel %vm7549_vm14, %v6996_v18, %v2732_v59  ;;  %v8952_v18 = vld [vmem:[#allocation81_spill] sm:$0xff] }
 0x51d   : > { %v3349_v50 = vmul.f32 %v3317_v37, %v7441_v25  ;;  %v8949_v25 = vld [vmem:[#allocation108_spill] sm:$0xff]  ;;  %v7559_v22 = vmul.f32 0.70710677, %v2382_v47  ;;  %v8950_v2 = vand.u32 2147483648, %v6920_v16  ;;  %v3211_v23 = vadd.f32 1.4214138, %v3179_v52 }
 0x51e   : > { %v3572_v8 = vmul.f32 %v3540_v5, %v6875_v17  ;;  %v3127_v56 = vadd.f32 -1.4531521, %v3095_v43  ;;  %vm2738_vm15 = vcmp.eq.f32.partialorder %v2737_v11, 8.507059e+37  ;;  %v7564_v5 = vpop.eup %4574  ;;  %v7567_v43 = vmul.f32 %v7493_v9, %v3030_v19 }
 0x51f   : > { %v3509_v36 = vmul.f32 %v8949_v25, %v3349_v50  ;;  %v2740_v6 = vor.u32 1.1754944e-38, %v8950_v2  ;;  %8951 = vst [vmem:[#allocation107_spill] sm:$0xff] %v7564_v5  ;;  %4580 = vpow2.f32 %v3498_v51  ;;  %vm2778_vm0 = vweird.f32 %v6994_v0 }
 0x520   : > { %v3604_v17 = vadd.f32 1.0, %v3572_v8  ;;  %v3159_v37 = vmul.f32 %v3127_v56, %v7529_v44  ;;  %v4577_v8 = vpop.eup %4576  ;;  %v7577_v11 = vmul.f32 0.5, %v2382_v47  ;;  %v7580_v19 = vand.u32 2147483647, %v7559_v22 }
 0x521   : > { %v3541_v62 = vsub.f32 1.0, %v3509_v36  ;;  %v7570_v50 = vsel %vm2738_vm15, %v2740_v6, %v2736_v12  ;;  %v2747_v36 = vadd.f32 %v7020_v54, %v7120_v63  ;;  %v2639_v51 = vmul.f32 %v4577_v8, %v7527_v40 }
 0x522   : > { %v3636_v59 = vmul.f32 %v3604_v17, %v8952_v18  ;;  %v3191_v16 = vadd.f32 1.4214138, %v3159_v37  ;;  %v3096_v52 = vmul.f32 1.0614054, %v7570_v50  ;;  %8954 = vst [vmem:[#allocation76_spill] sm:$0xff] %v7577_v11  ;;  %vm2749_vm1 = vweird.f32 %v7020_v54  ;;  %v7584_v56 = vpop.eup %4578 }
 0x523   : > { %v3573_v25 = vmul.f32 %v3541_v62, %v8953_v33  ;;  %v3243_v12 = vmul.f32 %v3211_v23, %v7477_v20  ;;  %v2640_v6 = vsub.f32 1.0, %v2639_v51  ;;  %v2649_v62 = vand.u32 2147483648, %v7527_v40  ;;  %vm7591_vm2 = vmor %vm2748_vm13, %vm2749_vm1  ;;  %v8958_v33 = vld [vmem:[#allocation39_spill] sm:$0xff] }
 0x524   : > { %3751 = vmatmul.f32.gmra.mxu3 %v3636_v59  ;;  %v3223_v2 = vmul.f32 %v3191_v16, %v7529_v44  ;;  %v3128_v63 = vadd.f32 -1.4531521, %v3096_v52  ;;  %v2752_v37 = vand.u32 2147483647, %v6958_v41  ;;  %v8957_v18 = vand.u32 2147483648, %v6958_v41  ;;  %v3711_v41 = vld [vmem:[#allocation16 + $0x178] sm:$0xff] }
 0x525   : > { %v3605_v17 = vadd.f32 1.0, %v3573_v25  ;;  %vm2479_vm3 = vcmp.lt.f32.partialorder %v7559_v22, 0.0  ;;  %v2751_v52 = vsel %vm7591_vm2, %v7020_v54, %v2747_v36  ;;  %v7604_v51 = vpop.eup %4580  ;;  %v2641_v27 = vmul.f32 %v4577_v8, %v2640_v6  ;;  %4141 = vmatpush.msra.mxu1 %v3711_v41  ;;  %v8960_v36 = vld [vmem:[#allocation48_spill] sm:$0xff]  ;;  %3814 = vmatpush.msrb.mxu0 %v3711_v41 }
 0x526   : > { %v2755_v59 = vor.u32 1.1754944e-38, %v8957_v18  ;;  %v3255_v25 = vadd.f32 -0.28449672, %v3223_v2  ;;  %v3160_v16 = vmul.f32 %v3128_v63, %v7570_v50  ;;  %8959 = vst [vmem:[#allocation69_spill] sm:$0xff] %v7604_v51  ;;  %vm2644_vm4 = vweird.f32 %v4577_v8 }
 0x527   : > { %v3637_v23 = vmul.f32 %v3605_v17, %v8958_v33  ;;  %v2647_v11 = vand.u32 2147483647, %v7527_v40  ;;  %vm2753_vm5 = vcmp.eq.f32.partialorder %v2752_v37, 8.507059e+37  ;;  %vm2643_vm6 = vweird.f32 %v7527_v40 }
 0x528   : > { %v3287_v17 = vmul.f32 %v3255_v25, %v7529_v44  ;;  %v3192_v2 = vadd.f32 1.4214138, %v3160_v16  ;;  %v7609_v18 = vsel %vm2753_vm5, %v2755_v59, %v2751_v52  ;;  %v2642_v63 = vadd.f32 %v4577_v8, %v2641_v27  ;;  %vm2645_vm8 = vmor %vm2643_vm6, %vm2644_vm4  ;;  %v8961_v25 = vld [vmem:[#allocation80_spill] sm:$0xff] }
 0x529   : > { %3792 = vmatmul.f32.gmra.mxu0 %v3637_v23  ;;  %v3097_v54 = vmul.f32 1.0614054, %v7609_v18  ;;  %v2777_v6 = vadd.f32 %v8960_v36, %v7161_v24  ;;  %vm2779_vm7 = vweird.f32 %v8960_v36  ;;  %v2575_v47 = vmul.f32 0.3275911, %v7580_v19 }
 0x52a   : > { %v2650_v40 = vor.u32 1.1754944e-38, %v2649_v62  ;;  %v3319_v37 = vadd.f32 0.2548296, %v3287_v17  ;;  %v3224_v33 = vmul.f32 %v3192_v2, %v7570_v50  ;;  %v2646_v59 = vsel %vm2645_vm8, %v4577_v8, %v2642_v63  ;;  %vm7627_vm11 = vmor %vm2778_vm0, %vm2779_vm7  ;;  %v8964_v2 = vld [vmem:[#allocation92_spill] sm:$0xff] }
 0x52b   : > { %vm2648_vm9 = vcmp.eq.f32.partialorder %v2647_v11, 8.507059e+37  ;;  %v3129_v23 = vadd.f32 -1.4531521, %v3097_v54  ;;  %v2782_v27 = vand.u32 2147483647, %v6994_v0  ;;  %vm2793_vm10 = vweird.f32 %v8961_v25 }
 0x52c   : > { %v3275_v16 = vadd.f32 -0.28449672, %v3243_v12  ;;  %v7620_v24 = vsel %vm2648_vm9, %v2650_v40, %v2646_v59  ;;  %v3351_v52 = vmul.f32 %v3319_v37, %v7529_v44  ;;  %v3256_v41 = vadd.f32 -0.28449672, %v3224_v33 }
 0x52d   : > { %v7633_v8 = vmul.f32 %v7584_v56, %v7510_v53  ;;  %v3090_v11 = vmul.f32 1.0614054, %v7620_v24  ;;  %v3161_v12 = vmul.f32 %v3129_v23, %v7609_v18  ;;  %v2781_v44 = vsel %vm7627_vm11, %v8960_v36, %v2777_v6  ;;  %v8966_v36 = vld [vmem:[#allocation41_spill] sm:$0xff] }
 0x52e   : > { %v3407_v17 = vsub.f32 0.0, %v7580_v19  ;;  %v3511_v63 = vmul.f32 %v8964_v2, %v3351_v52  ;;  %v3288_v54 = vmul.f32 %v3256_v41, %v7570_v50  ;;  %v8965_v40 = vand.u32 2147483648, %v6994_v0  ;;  %v2322_v52 = vpop.f32.mrf.mxu1  ;;  %v8967_v41 = vld [vmem:[#allocation62_spill] sm:$0xff] }
 0x52f   : > { %v7645_v33 = vadd.f32 1.0, %v2575_v47  ;;  %v3122_v59 = vadd.f32 -1.4531521, %v3090_v11  ;;  %v3193_v51 = vadd.f32 1.4214138, %v3161_v12  ;;  %vm2783_vm12 = vcmp.eq.f32.partialorder %v2782_v27, 8.507059e+37 }
 0x530   : > { %v2785_v37 = vor.u32 1.1754944e-38, %v8965_v40  ;;  %v3307_v23 = vmul.f32 %v3275_v16, %v7477_v20  ;;  %v3543_v5 = vsub.f32 1.0, %v3511_v63  ;;  %v3320_v13 = vadd.f32 0.2548296, %v3288_v54 }
 0x531   : > { %vm2808_vm13 = vweird.f32 %v8966_v36  ;;  %v7654_v6 = vsel %vm2479_vm3, -1.0, %v8875_v4  ;;  %v3154_v0 = vmul.f32 %v3122_v59, %v7620_v24  ;;  %v3225_v47 = vmul.f32 %v3193_v51, %v7609_v18 }
 0x532   : > { %v7648_v62 = vsel %vm2783_vm12, %v2785_v37, %v2781_v44  ;;  %v3575_v16 = vmul.f32 %v3543_v5, %v8967_v41  ;;  %v3352_v11 = vmul.f32 %v3320_v13, %v7570_v50  ;;  %v2792_v12 = vadd.f32 %v7128_v61, %v7219_v21  ;;  %v8968_v5 = vld [vmem:[#allocation83_spill] sm:$0xff] }
 0x533   : > { %v3099_v27 = vmul.f32 1.0614054, %v7648_v62  ;;  %vm2794_vm14 = vweird.f32 %v7128_v61  ;;  %v3045_v22 = vsub.f32 1.0, %v7633_v8  ;;  %v3439_v44 = vmul.f32 %v3407_v17, %v7580_v19 }
 0x534   : > { %v7667_v2 = vmul.f32 0.5, %v7464_v14  ;;  %v3257_v51 = vadd.f32 -0.28449672, %v3225_v47  ;;  %v3339_v63 = vadd.f32 0.2548296, %v3307_v23  ;;  %4582 = vrcp.f32 %v7645_v33  ;;  %vm7675_vm15 = vmor %vm2793_vm10, %vm2794_vm14  ;;  %v8971_v14 = vld [vmem:[#allocation98_spill] sm:$0xff] }
 0x535   : > { %v3607_v54 = vadd.f32 1.0, %v3575_v16  ;;  %v3512_v40 = vmul.f32 %v8968_v5, %v3352_v11  ;;  %v3186_v13 = vadd.f32 1.4214138, %v3154_v0  ;;  %v3378_v50 = vsub.f32 0.0, %v7500_v35 }
 0x536   : > { %v3289_v21 = vmul.f32 %v3257_v51, %v7609_v18  ;;  %v3131_v37 = vadd.f32 -1.4531521, %v3099_v27  ;;  %v2796_v23 = vsel %vm7675_vm15, %v7128_v61, %v2792_v12  ;;  %v2797_v0 = vand.u32 2147483647, %v8961_v25  ;;  %v8973_v51 = vld [vmem:[#allocation36_spill] sm:$0xff] }
 0x537   : > { %v3639_v17 = vmul.f32 %v3607_v54, %v8971_v14  ;;  %v3544_v59 = vsub.f32 1.0, %v3512_v40  ;;  %v7685_v41 = vadd.f32 %v2322_v52, %v7436_v60  ;;  %v8972_v16 = vand.u32 2147483648, %v8961_v25 }
 0x538   : > { %v3321_v47 = vadd.f32 0.2548296, %v3289_v21  ;;  %v3163_v27 = vmul.f32 %v3131_v37, %v7648_v62  ;;  %vm2798_vm0 = vcmp.eq.f32.partialorder %v2797_v0, 8.507059e+37  ;;  %v2807_v54 = vadd.f32 %v7144_v15, %v7244_v3 }
 0x539   : > { %v2800_v11 = vor.u32 1.1754944e-38, %v8972_v16  ;;  %3874 = vmatmul.f32.gmra.mxu2 %v3639_v17  ;;  %v3576_v5 = vmul.f32 %v3544_v59, %v8973_v51  ;;  %vm2809_vm1 = vweird.f32 %v7144_v15  ;;  %v3371_v61 = vmul.f32 %v3339_v63, %v7477_v20  ;;  %v8976_v20 = vld [vmem:[#allocation101_spill] sm:$0xff]  ;;  %v8977_v59 = vld [vmem:[#allocation70_spill] sm:$0xff] }
 0x53a   : > { %v3353_v12 = vmul.f32 %v3321_v47, %v7609_v18  ;;  %v3195_v52 = vadd.f32 1.4214138, %v3163_v27  ;;  %v7698_v21 = vpop.eup %4582  ;;  %v3218_v25 = vmul.f32 %v3186_v13, %v7620_v24  ;;  %v3410_v37 = vmul.f32 %v3378_v50, %v7500_v35  ;;  %vm7705_vm2 = vmor %vm2808_vm13, %vm2809_vm1  ;;  %v3710_v35 = vld [vmem:[#allocation16 + $0x170] sm:$0xff]  ;;  %v2325_v50 = vpop.f32.mrf.mxu1 }
 0x53b   : > { %v7696_v40 = vsel %vm2798_vm0, %v2800_v11, %v2796_v23  ;;  %v3608_v19 = vadd.f32 1.0, %v3576_v5  ;;  %v2811_v17 = vsel %vm7705_vm2, %v7144_v15, %v2807_v54  ;;  %v2812_v13 = vand.u32 2147483647, %v8966_v36  ;;  %4142 = vmatpush.msra.mxu1 %v3710_v35  ;;  %3815 = vmatpush.msrb.mxu0 %v3710_v35 }
 0x53c   : > { %v3100_v14 = vmul.f32 1.0614054, %v7696_v40  ;;  %v3513_v18 = vmul.f32 %v8976_v20, %v3353_v12  ;;  %v3227_v63 = vmul.f32 %v3195_v52, %v7648_v62  ;;  %v7717_v0 = vmul.f32 0.70710677, %v7685_v41 }
 0x53d   : > { %v3640_v23 = vmul.f32 %v3608_v19, %v8977_v59  ;;  %v8978_v27 = vand.u32 2147483648, %v8966_v36  ;;  %vm2838_vm3 = vweird.f32 %v7101_v34  ;;  %v7722_v11 = vmul.f32 1.442695, %v3439_v44  ;;  %v8979_v19 = vld [vmem:[#allocation114_spill] sm:$0xff] }
 0x53e   : > { %v3132_v47 = vadd.f32 -1.4531521, %v3100_v14  ;;  %v3545_v15 = vsub.f32 1.0, %v3513_v18  ;;  %v3259_v51 = vadd.f32 -0.28449672, %v3227_v63  ;;  %vm2813_vm4 = vcmp.eq.f32.partialorder %v2812_v13, 8.507059e+37 }
 0x53f   : > { %v2815_v16 = vor.u32 1.1754944e-38, %v8978_v27  ;;  %v3250_v5 = vadd.f32 -0.28449672, %v3218_v25  ;;  %3754 = vmatmul.f32.gmra.mxu3 %v3640_v23  ;;  %v7728_v52 = vadd.f32 %v2325_v50, %v7436_v60  ;;  %v3444_v36 = vmul.f32 1.442695, %v3410_v37  ;;  %v8980_v23 = vld [vmem:[#allocation65_spill] sm:$0xff] }
 0x540   : > { %v3164_v54 = vmul.f32 %v3132_v47, %v7696_v40  ;;  %v3577_v14 = vmul.f32 %v3545_v15, %v8979_v19  ;;  %v3291_v3 = vmul.f32 %v3259_v51, %v7648_v62  ;;  %v3531_v20 = vmul.f32 %v7532_v49, %v3371_v61 }
 0x541   : > { %v7725_v12 = vsel %vm2813_vm4, %v2815_v16, %v2811_v17  ;;  %v7735_v18 = vand.u32 2147483647, %v7717_v0  ;;  %v7738_v63 = vmul.f32 0.70710677, %v7728_v52  ;;  %v7743_v17 = vmul.f32 %v7584_v56, %v3045_v22 }
 0x542   : > { %v3101_v44 = vmul.f32 1.0614054, %v7725_v12  ;;  %v3196_v25 = vadd.f32 1.4214138, %v3164_v54  ;;  %v3609_v37 = vadd.f32 1.0, %v3577_v14  ;;  %v3282_v50 = vmul.f32 %v3250_v5, %v7620_v24 }
 0x543   : > { %v3323_v13 = vadd.f32 0.2548296, %v3291_v3  ;;  %v7748_v49 = vand.u32 2147483647, %v7738_v63  ;;  %v2837_v61 = vadd.f32 %v7182_v30, %v7268_v31  ;;  %vm2853_vm5 = vweird.f32 %v7136_v1  ;;  %v8981_v31 = vld [vmem:[#allocation53_spill] sm:$0xff] }
 0x544   : > { %v3133_v35 = vadd.f32 -1.4531521, %v3101_v44  ;;  %v3228_v59 = vmul.f32 %v3196_v25, %v7696_v40  ;;  %v3641_v8 = vmul.f32 %v3609_v37, %v8980_v23  ;;  %vm2839_vm6 = vweird.f32 %v7182_v30 }
 0x545   : > { %v3355_v22 = vmul.f32 %v3323_v13, %v7648_v62  ;;  %v3563_v27 = vsub.f32 1.0, %v3531_v20  ;;  %v2554_v51 = vmul.f32 0.3275911, %v7748_v49  ;;  %v7761_v5 = vmul.f32 %v7698_v21, %v7645_v33  ;;  %vm7771_vm7 = vmor %vm2838_vm3, %vm2839_vm6 }
 0x546   : > { %v3165_v47 = vmul.f32 %v3133_v35, %v7725_v12  ;;  %v3260_v15 = vadd.f32 -0.28449672, %v3228_v59  ;;  %3795 = vmatmul.f32.gmra.mxu0 %v3641_v8  ;;  %v2842_v62 = vand.u32 2147483647, %v7101_v34  ;;  %4584 = vpow2.f32 %v3444_v36 }
 0x547   : > { %v3515_v54 = vmul.f32 %v8981_v31, %v3355_v22  ;;  %v2550_v14 = vmul.f32 0.3275911, %v7735_v18  ;;  %v7767_v44 = vadd.f32 1.0, %v2554_v51  ;;  %v3314_v25 = vadd.f32 0.2548296, %v3282_v50  ;;  %v8985_v22 = vld [vmem:[#allocation59_spill] sm:$0xff] }
 0x548   : > { %v3197_v19 = vadd.f32 1.4214138, %v3165_v47  ;;  %v3292_v3 = vmul.f32 %v3260_v15, %v7696_v40  ;;  %v2841_v36 = vsel %vm7771_vm7, %v7182_v30, %v2837_v61  ;;  %vm2868_vm8 = vweird.f32 %v7176_v38  ;;  %v8986_v15 = vld [vmem:[#allocation57_spill] sm:$0xff]  ;;  %v8987_v51 = vld [vmem:[#allocation110_spill] sm:$0xff] }
 0x549   : > { %v3547_v37 = vsub.f32 1.0, %v3515_v54  ;;  %v7781_v35 = vmul.f32 %v3563_v27, %v7386_v28  ;;  %4586 = vrcp.f32 %v7767_v44  ;;  %v8984_v23 = vand.u32 2147483648, %v7101_v34 }
 0x54a   : > { %v3229_v13 = vmul.f32 %v3197_v19, %v7725_v12  ;;  %v3324_v59 = vadd.f32 0.2548296, %v3292_v3  ;;  %vm2843_vm9 = vcmp.eq.f32.partialorder %v2842_v62, 8.507059e+37  ;;  %v2852_v31 = vadd.f32 %v8987_v51, %v8986_v15  ;;  %v8988_v3 = vld [vmem:[#allocation54_spill] sm:$0xff] }
 0x54b   : > { %v2845_v8 = vor.u32 1.1754944e-38, %v8984_v23  ;;  %v3579_v50 = vmul.f32 %v3547_v37, %v8985_v22  ;;  %v3382_v30 = vsub.f32 0.0, %v7735_v18  ;;  %vm2854_vm10 = vweird.f32 %v8987_v51 }
 0x54c   : > { %v3261_v47 = vadd.f32 -0.28449672, %v3229_v13  ;;  %v3356_v61 = vmul.f32 %v3324_v59, %v7696_v40  ;;  %v7795_v28 = vmul.f32 %v3314_v25, %v7620_v24  ;;  %v7797_v34 = vadd.f32 1.0, %v2550_v14  ;;  %v7800_v62 = vpop.eup %4584  ;;  %vm7807_vm11 = vmor %vm2853_vm5, %vm2854_vm10  ;;  %v8991_v14 = vld [vmem:[#allocation61_spill] sm:$0xff] }
 0x54d   : > { %v7791_v54 = vsel %vm2843_vm9, %v2845_v8, %v2841_v36  ;;  %v3611_v27 = vadd.f32 1.0, %v3579_v50  ;;  %v2767_v37 = vand.u32 2147483647, %v7767_v44  ;;  %v2857_v24 = vand.u32 2147483647, %v7136_v1 }
 0x54e   : > { %v3293_v19 = vmul.f32 %v3261_v47, %v7725_v12  ;;  %v3516_v20 = vmul.f32 %v8988_v3, %v3356_v61  ;;  %v3103_v40 = vmul.f32 1.0614054, %v7791_v54  ;;  %v2769_v59 = vand.u32 2147483648, %v7767_v44 }
 0x54f   : > { %v3643_v25 = vmul.f32 %v3611_v27, %v8991_v14  ;;  %v2856_v23 = vsel %vm7807_vm11, %v8987_v51, %v2852_v31  ;;  %v4587_v8 = vpop.eup %4586  ;;  %v8992_v47 = vand.u32 2147483648, %v7136_v1  ;;  %v2867_v61 = vadd.f32 %v7255_v58, %v7332_v45  ;;  %v8994_v1 = vld [vmem:[#allocation103_spill] sm:$0xff] }
 0x550   : > { %v3325_v36 = vadd.f32 0.2548296, %v3293_v19  ;;  %v3548_v22 = vsub.f32 1.0, %v3516_v20  ;;  %v3135_v50 = vadd.f32 -1.4531521, %v3103_v40  ;;  %v2759_v27 = vmul.f32 %v4587_v8, %v7767_v44  ;;  %v8993_v19 = vld [vmem:[#allocation50_spill] sm:$0xff] }
 0x551   : > { %v2860_v15 = vor.u32 1.1754944e-38, %v8992_v47  ;;  %3877 = vmatmul.f32.gmra.mxu2 %v3643_v25  ;;  %vm2764_vm12 = vweird.f32 %v4587_v8  ;;  %vm2858_vm13 = vcmp.eq.f32.partialorder %v2857_v24, 8.507059e+37  ;;  %vm2450_vm14 = vcmp.lt.f32.partialorder %v7482_v29, 0.0 }
 0x552   : > { %v3357_v3 = vmul.f32 %v3325_v36, %v7725_v12  ;;  %v3580_v51 = vmul.f32 %v3548_v22, %v8993_v19  ;;  %v3167_v31 = vmul.f32 %v3135_v50, %v7791_v54  ;;  %vm2869_vm15 = vweird.f32 %v7255_v58  ;;  %v8999_v12 = vld [vmem:[#allocation75_spill] sm:$0xff] }
 0x553   : > { %v7826_v20 = vsel %vm2858_vm13, %v2860_v15, %v2856_v23  ;;  %v2760_v45 = vsub.f32 1.0, %v2759_v27  ;;  %vm7833_vm0 = vmor %vm2868_vm8, %vm2869_vm15  ;;  %v2872_v24 = vand.u32 2147483647, %v7176_v38  ;;  %v8997_v23 = vand.u32 2147483648, %v7176_v38  ;;  %v3709_v15 = vld [vmem:[#allocation16 + $0x168] sm:$0xff]  ;;  %v8998_v27 = vld [vmem:[#allocation52_spill] sm:$0xff] }
 0x554   : > { %v3517_v40 = vmul.f32 %v8994_v1, %v3357_v3  ;;  %v3104_v13 = vmul.f32 1.0614054, %v7826_v20  ;;  %v3612_v14 = vadd.f32 1.0, %v3580_v51  ;;  %v3199_v25 = vadd.f32 1.4214138, %v3167_v31  ;;  %4143 = vmatpush.msra.mxu1 %v3709_v15  ;;  %v3708_v31 = vld [vmem:[#allocation16 + $0x160] sm:$0xff]  ;;  %3816 = vmatpush.msrb.mxu0 %v3709_v15 }
 0x555   : > { %v2871_v36 = vsel %vm7833_vm0, %v7255_v58, %v2867_v61  ;;  %v2875_v22 = vor.u32 1.1754944e-38, %v8997_v23  ;;  %v2761_v47 = vmul.f32 %v4587_v8, %v2760_v45  ;;  %vm2873_vm1 = vcmp.eq.f32.partialorder %v2872_v24, 8.507059e+37  ;;  %v9000_v58 = vld [vmem:[#allocation67_spill] sm:$0xff] }
 0x556   : > { %v3549_v50 = vsub.f32 1.0, %v3517_v40  ;;  %v3136_v3 = vadd.f32 -1.4531521, %v3104_v13  ;;  %v3644_v19 = vmul.f32 %v3612_v14, %v8998_v27  ;;  %vm2763_vm2 = vweird.f32 %v7767_v44  ;;  %4144 = vmatpush.msra.mxu1 %v3708_v31  ;;  %v3707_v24 = vld [vmem:[#allocation16 + $0x158] sm:$0xff]  ;;  %3817 = vmatpush.msrb.mxu0 %v3708_v31 }
 0x557   : > { %v3231_v51 = vmul.f32 %v3199_v25, %v7791_v54  ;;  %v7846_v1 = vsel %vm2873_vm1, %v2875_v22, %v2871_v36  ;;  %vm2898_vm3 = vweird.f32 %v8999_v12  ;;  %v2762_v61 = vadd.f32 %v4587_v8, %v2761_v47  ;;  %vm2765_vm4 = vmor %vm2763_vm2, %vm2764_vm12 }
 0x558   : > { %v3581_v38 = vmul.f32 %v3549_v50, %v9000_v58  ;;  %v3168_v40 = vmul.f32 %v3136_v3, %v7826_v20  ;;  %v3105_v45 = vmul.f32 1.0614054, %v7846_v1  ;;  %4588 = vrcp.f32 %v7797_v34  ;;  %3757 = vmatmul.f32.gmra.mxu3 %v3644_v19  ;;  %4145 = vmatpush.msra.mxu1 %v3707_v24  ;;  %v3706_v19 = vld [vmem:[#allocation16 + $0x150] sm:$0xff] }
 0x559   : > { %vm2768_vm5 = vcmp.eq.f32.partialorder %v2767_v37, 8.507059e+37  ;;  %v2770_v44 = vor.u32 1.1754944e-38, %v2769_v59  ;;  %v3263_v13 = vadd.f32 -0.28449672, %v3231_v51  ;;  %v2766_v25 = vsel %vm2765_vm4, %v4587_v8, %v2762_v61  ;;  %v9001_v59 = vld [vmem:[#allocation40_spill] sm:$0xff]  ;;  %3818 = vmatpush.msrb.mxu0 %v3707_v24 }
 0x55a   : > { %v3613_v14 = vadd.f32 1.0, %v3581_v38  ;;  %v3200_v36 = vadd.f32 1.4214138, %v3168_v40  ;;  %v3137_v23 = vadd.f32 -1.4531521, %v3105_v45  ;;  %v3075_v22 = vsub.f32 1.0, %v7761_v5  ;;  %4146 = vmatpush.msra.mxu1 %v3706_v19  ;;  %v2328_v38 = vpop.f32.mrf.mxu1 }
 0x55b   : > { %v3506_v50 = vmul.f32 %v7800_v62, %v7795_v28  ;;  %v7857_v47 = vsel %vm2768_vm5, %v2770_v44, %v2766_v25  ;;  %v3295_v15 = vmul.f32 %v3263_v13, %v7791_v54  ;;  %v3627_v37 = vadd.f32 1.0, %v7781_v35  ;;  %3819 = vmatpush.msrb.mxu0 %v3706_v19  ;;  %v9002_v24 = vld [vmem:[#allocation72_spill] sm:$0xff] }
 0x55c   : > { %v3645_v3 = vmul.f32 %v3613_v14, %v9001_v59  ;;  %v3098_v27 = vmul.f32 1.0614054, %v7857_v47  ;;  %v3232_v8 = vmul.f32 %v3200_v36, %v7826_v20  ;;  %4590 = vpow2.f32 %v7722_v11 }
 0x55d   : > { %v3414_v5 = vmul.f32 %v3382_v30, %v7735_v18  ;;  %v3327_v28 = vadd.f32 0.2548296, %v3295_v15  ;;  %v3169_v62 = vmul.f32 %v3137_v23, %v7846_v1  ;;  %v2482_v35 = vsel %vm2450_vm14, -1.0, %v8875_v4 }
 0x55e   : > { %3798 = vmatmul.f32.gmra.mxu0 %v3645_v3  ;;  %v3264_v51 = vadd.f32 -0.28449672, %v3232_v8  ;;  %v2897_v31 = vadd.f32 %v7275_v39, %v7353_v55  ;;  %vm2899_vm6 = vweird.f32 %v7275_v39  ;;  %v7875_v11 = vpop.eup %4588  ;;  %v7878_v58 = vmul.f32 %v7698_v21, %v3075_v22  ;;  %v9005_v22 = vld [vmem:[#allocation49_spill] sm:$0xff] }
 0x55f   : > { %v3538_v18 = vsub.f32 1.0, %v3506_v50  ;;  %v3359_v30 = vmul.f32 %v3327_v28, %v7791_v54  ;;  %v3201_v61 = vadd.f32 1.4214138, %v3169_v62  ;;  %v7882_v29 = vmul.f32 %v3627_v37, %v7359_v46  ;;  %vm7895_vm8 = vmor %vm2898_vm3, %vm2899_vm6  ;;  %v9007_v28 = vld [vmem:[#allocation82_spill] sm:$0xff] }
 0x560   : > { %v3130_v40 = vadd.f32 -1.4531521, %v3098_v27  ;;  %v3296_v45 = vmul.f32 %v3264_v51, %v7826_v20  ;;  %v2902_v55 = vand.u32 2147483647, %v8999_v12  ;;  %v7887_v44 = vmul.f32 0.5, %v7685_v41 }
 0x561   : > { %vm2454_vm7 = vcmp.lt.f32.partialorder %v7717_v0, 0.0  ;;  %v3452_v13 = vmul.f32 1.442695, %v3414_v5  ;;  %v3519_v14 = vmul.f32 %v9002_v24, %v3359_v30  ;;  %v2329_v54 = vadd.f32 %v2328_v38, %v7436_v60  ;;  %v9009_v24 = vld [vmem:[#allocation109_spill] sm:$0xff] }
 0x562   : > { %v3328_v25 = vadd.f32 0.2548296, %v3296_v45  ;;  %v3233_v36 = vmul.f32 %v3201_v61, %v7846_v1  ;;  %v2901_v41 = vsel %vm7895_vm8, %v7275_v39, %v2897_v31  ;;  %v7904_v23 = vpop.eup %4590  ;;  %vm2913_vm9 = vweird.f32 %v9005_v22 }
 0x563   : > { %v3570_v50 = vmul.f32 %v3538_v18, %v2482_v35  ;;  %v2699_v15 = vmul.f32 %v7875_v11, %v7797_v34  ;;  %v3551_v37 = vsub.f32 1.0, %v3519_v14  ;;  %v9006_v59 = vand.u32 2147483648, %v8999_v12  ;;  %v9008_v12 = vld [vmem:[#allocation96_spill] sm:$0xff] }
 0x564   : > { %v3162_v27 = vmul.f32 %v3130_v40, %v7857_v47  ;;  %v3360_v8 = vmul.f32 %v3328_v25, %v7826_v20  ;;  %v3265_v19 = vadd.f32 -0.28449672, %v3233_v36  ;;  %vm2903_vm10 = vcmp.eq.f32.partialorder %v2902_v55, 8.507059e+37  ;;  %v9010_v36 = vld [vmem:[#allocation86_spill] sm:$0xff] }
 0x565   : > { %v2905_v3 = vor.u32 1.1754944e-38, %v9006_v59  ;;  %v7916_v39 = vsel %vm2454_vm7, -1.0, %v8875_v4  ;;  %v3583_v62 = vmul.f32 %v3551_v37, %v9007_v28  ;;  %v7922_v51 = vmul.f32 0.70710677, %v2329_v54 }
 0x566   : > { %v3520_v31 = vmul.f32 %v9008_v12, %v3360_v8  ;;  %v3297_v18 = vmul.f32 %v3265_v19, %v7846_v1  ;;  %v2700_v30 = vsub.f32 1.0, %v2699_v15  ;;  %4592 = vpow2.f32 %v3452_v13  ;;  %v9011_v19 = vld [vmem:[#allocation104_spill] sm:$0xff] }
 0x567   : > { %v7920_v35 = vsel %vm2903_vm10, %v2905_v3, %v2901_v41  ;;  %v3386_v0 = vsub.f32 0.0, %v7748_v49  ;;  %v3615_v38 = vadd.f32 1.0, %v3583_v62  ;;  %v3602_v61 = vadd.f32 1.0, %v3570_v50  ;;  %v2331_v62 = vpop.f32.mrf.mxu1  ;;  %v9014_v12 = vld [vmem:[#allocation88_spill] sm:$0xff] }
 0x568   : > { %v3107_v20 = vmul.f32 1.0614054, %v7920_v35  ;;  %v3194_v40 = vadd.f32 1.4214138, %v3162_v27  ;;  %v3552_v45 = vsub.f32 1.0, %v3520_v31  ;;  %vm2928_vm11 = vweird.f32 %v7248_v7 }
 0x569   : > { %v3329_v55 = vadd.f32 0.2548296, %v3297_v18  ;;  %v3647_v14 = vmul.f32 %v3615_v38, %v9009_v24  ;;  %v2912_v25 = vadd.f32 %v7292_v42, %v7366_v48  ;;  %vm2914_vm12 = vweird.f32 %v7292_v42 }
 0x56a   : > { %v3139_v46 = vadd.f32 -1.4531521, %v3107_v20  ;;  %vm2458_vm13 = vcmp.lt.f32.partialorder %v7738_v63, 0.0  ;;  %v7935_v13 = vand.u32 2147483647, %v7922_v51  ;;  %v3584_v41 = vmul.f32 %v3552_v45, %v9010_v36  ;;  %vm7954_vm14 = vmor %vm2913_vm9, %vm2914_vm12 }
 0x56b   : > { %v3361_v50 = vmul.f32 %v3329_v55, %v7846_v1  ;;  %v7940_v15 = vmul.f32 %v7875_v11, %v2700_v30  ;;  %v3418_v37 = vmul.f32 %v3386_v0, %v7748_v49  ;;  %3880 = vmatmul.f32.gmra.mxu2 %v3647_v14  ;;  %v2917_v48 = vand.u32 2147483647, %v9005_v22  ;;  %v9015_v0 = vld [vmem:[#allocation93_spill] sm:$0xff] }
 0x56c   : > { %v3171_v59 = vmul.f32 %v3139_v46, %v7920_v35  ;;  %v7946_v3 = vmul.f32 0.5, %v7728_v52  ;;  %v3226_v27 = vmul.f32 %v3194_v40, %v7857_v47  ;;  %v3616_v8 = vadd.f32 1.0, %v3584_v41  ;;  %v7958_v1 = vpop.eup %4592  ;;  %v9017_v46 = vld [vmem:[#allocation55_spill] sm:$0xff] }
 0x56d   : > { %v3521_v28 = vmul.f32 %v9011_v19, %v3361_v50  ;;  %vm2958_vm15 = vweird.f32 %v9014_v12  ;;  %v7962_v52 = vmul.f32 %v3602_v61, %v7667_v2  ;;  %v7967_v31 = vsel %vm2458_vm13, -1.0, %v8875_v4  ;;  %v9018_v41 = vld [vmem:[#allocation47_spill] sm:$0xff]  ;;  %v9019_v50 = vld [vmem:[#allocation44_spill] sm:$0xff]  ;;  %v3705_v19 = vld [vmem:[#allocation16 + $0x148] sm:$0xff] }
 0x56e   : > { %v3203_v18 = vadd.f32 1.4214138, %v3171_v59  ;;  %v2916_v20 = vsel %vm7954_vm14, %v7292_v42, %v2912_v25  ;;  %v2558_v30 = vmul.f32 0.3275911, %v7935_v13  ;;  %v3648_v38 = vmul.f32 %v3616_v8, %v9015_v0  ;;  %4147 = vmatpush.msra.mxu1 %v3705_v19  ;;  %3820 = vmatpush.msrb.mxu0 %v3705_v19 }
 0x56f   : > { %v3553_v40 = vsub.f32 1.0, %v3521_v28  ;;  %v9016_v45 = vand.u32 2147483648, %v9005_v22  ;;  %v3460_v2 = vmul.f32 1.442695, %v3418_v37  ;;  %v7976_v61 = vmul.f32 0.5, %v2329_v54  ;;  %v3704_v28 = vld [vmem:[#allocation16 + $0x140] sm:$0xff] }
 0x570   : > { %v3235_v63 = vmul.f32 %v3203_v18, %v7920_v35  ;;  %vm2918_vm0 = vcmp.eq.f32.partialorder %v2917_v48, 8.507059e+37  ;;  %v3258_v24 = vadd.f32 -0.28449672, %v3226_v27  ;;  %v3390_v14 = vsub.f32 0.0, %v7935_v13  ;;  %3760 = vmatmul.f32.gmra.mxu3 %v3648_v38  ;;  %v9023_v38 = vld [vmem:[#allocation42_spill] sm:$0xff]  ;;  %4148 = vmatpush.msra.mxu1 %v3704_v28 }
 0x571   : > { %v2920_v55 = vor.u32 1.1754944e-38, %v9016_v45  ;;  %v3585_v42 = vmul.f32 %v3553_v40, %v9017_v46  ;;  %vm2462_vm1 = vcmp.lt.f32.partialorder %v7922_v51, 0.0  ;;  %v2927_v54 = vadd.f32 %v9019_v50, %v9018_v41  ;;  %v9024_v45 = vld [vmem:[#allocation90_spill] sm:$0xff]  ;;  %v9026_v46 = vld [vmem:[#allocation89_spill] sm:$0xff]  ;;  %3821 = vmatpush.msrb.mxu0 %v3704_v28 }
 0x572   : > { %v3267_v36 = vadd.f32 -0.28449672, %v3235_v63  ;;  %vm2929_vm2 = vweird.f32 %v9019_v50  ;;  %v7988_v37 = vadd.f32 1.0, %v2558_v30  ;;  %v7991_v48 = vadd.f32 %v2331_v62, %v7436_v60 }
 0x573   : > { %v7981_v25 = vsel %vm2918_vm0, %v2920_v55, %v2916_v20  ;;  %v3617_v59 = vadd.f32 1.0, %v3585_v42  ;;  %vm7995_vm3 = vmor %vm2928_vm11, %vm2929_vm2  ;;  %v2932_v8 = vand.u32 2147483647, %v7248_v7  ;;  %v9022_v62 = vand.u32 2147483648, %v7248_v7  ;;  %v9025_v55 = vld [vmem:[#allocation60_spill] sm:$0xff] }
 0x574   : > { %v3108_v22 = vmul.f32 1.0614054, %v7981_v25  ;;  %v3299_v49 = vmul.f32 %v3267_v36, %v7920_v35  ;;  %v2931_v20 = vsel %vm7995_vm3, %v9019_v50, %v2927_v54  ;;  %v3290_v0 = vmul.f32 %v3258_v24, %v7857_v47  ;;  %v2334_v50 = vpop.f32.mrf.mxu1 }
 0x575   : > { %v2935_v30 = vor.u32 1.1754944e-38, %v9022_v62  ;;  %v3649_v40 = vmul.f32 %v3617_v59, %v9023_v38  ;;  %vm2933_vm4 = vcmp.eq.f32.partialorder %v2932_v8, 8.507059e+37  ;;  %v2957_v63 = vadd.f32 %v9025_v55, %v9024_v45  ;;  %v9029_v38 = vld [vmem:[#allocation97_spill] sm:$0xff]  ;;  %v9030_v45 = vld [vmem:[#allocation91_spill] sm:$0xff] }
 0x576   : > { %v3140_v18 = vadd.f32 -1.4531521, %v3108_v22  ;;  %vm2973_vm5 = vweird.f32 %v9026_v46  ;;  %v3331_v42 = vadd.f32 0.2548296, %v3299_v49  ;;  %vm2959_vm6 = vweird.f32 %v9025_v55 }
 0x577   : > { %v8012_v22 = vsel %vm2933_vm4, %v2935_v30, %v2931_v20  ;;  %4594 = vpow2.f32 %v3460_v2  ;;  %3801 = vmatmul.f32.gmra.mxu0 %v3649_v40  ;;  %v8016_v7 = vmul.f32 0.70710677, %v7991_v48  ;;  %vm2960_vm7 = vmor %vm2958_vm15, %vm2959_vm6  ;;  %v2962_v41 = vand.u32 2147483647, %v9014_v12 }
 0x578   : > { %v3172_v36 = vmul.f32 %v3140_v18, %v7981_v25  ;;  %v3109_v24 = vmul.f32 1.0614054, %v8012_v22  ;;  %v3363_v54 = vmul.f32 %v3331_v42, %v7920_v35  ;;  %v2961_v27 = vsel %vm2960_vm7, %v9025_v55, %v2957_v63  ;;  %v9028_v18 = vld [vmem:[#allocation58_spill] sm:$0xff] }
 0x579   : > { %v9027_v8 = vand.u32 2147483648, %v9014_v12  ;;  %v3322_v19 = vadd.f32 0.2548296, %v3290_v0  ;;  %vm2963_vm8 = vcmp.eq.f32.partialorder %v2962_v41, 8.507059e+37  ;;  %v8027_v49 = vadd.f32 %v2334_v50, %v7436_v60 }
 0x57a   : > { %v3204_v59 = vadd.f32 1.4214138, %v3172_v36  ;;  %v3141_v28 = vadd.f32 -1.4531521, %v3109_v24  ;;  %4596 = vrcp.f32 %v7988_v37  ;;  %v3523_v20 = vmul.f32 %v9028_v18, %v3363_v54 }
 0x57b   : > { %v2965_v2 = vor.u32 1.1754944e-38, %v9027_v8  ;;  %v8035_v35 = vand.u32 2147483647, %v8016_v7  ;;  %v2972_v40 = vadd.f32 %v9029_v38, %v7467_v26  ;;  %vm2988_vm9 = vweird.f32 %v9030_v45 }
 0x57c   : > { %v3236_v62 = vmul.f32 %v3204_v59, %v7981_v25  ;;  %v3173_v12 = vmul.f32 %v3141_v28, %v8012_v22  ;;  %v3555_v55 = vsub.f32 1.0, %v3523_v20  ;;  %v8043_v42 = vmul.f32 0.70710677, %v8027_v49  ;;  %v9031_v59 = vld [vmem:[#allocation64_spill] sm:$0xff] }
 0x57d   : > { %v8032_v30 = vsel %vm2963_vm8, %v2965_v2, %v2961_v27  ;;  %vm2974_vm10 = vweird.f32 %v9029_v38  ;;  %v4595_v36 = vpop.eup %4594  ;;  %v3354_v24 = vmul.f32 %v3322_v19, %v7857_v47  ;;  %v8050_v41 = vsel %vm2462_vm1, -1.0, %v8875_v4 }
 0x57e   : > { %v3111_v0 = vmul.f32 1.0614054, %v8032_v30  ;;  %v3268_v63 = vadd.f32 -0.28449672, %v3236_v62  ;;  %v3205_v50 = vadd.f32 1.4214138, %v3173_v12  ;;  %v3422_v26 = vmul.f32 %v3390_v14, %v7935_v13  ;;  %vm8064_vm11 = vmor %vm2973_vm5, %vm2974_vm10 }
 0x57f   : > { %v3587_v27 = vmul.f32 %v3555_v55, %v9031_v59  ;;  %v2977_v2 = vand.u32 2147483647, %v9026_v46  ;;  %v2562_v47 = vmul.f32 0.3275911, %v8035_v35  ;;  %v8071_v62 = vand.u32 2147483647, %v8043_v42 }
 0x580   : > { %v3143_v54 = vadd.f32 -1.4531521, %v3111_v0  ;;  %v3300_v8 = vmul.f32 %v3268_v63, %v7981_v25  ;;  %v3237_v51 = vmul.f32 %v3205_v50, %v8012_v22  ;;  %v8068_v13 = vpop.eup %4596  ;;  %v2976_v12 = vsel %vm8064_vm11, %v9029_v38, %v2972_v40  ;;  %v9035_v59 = vld [vmem:[#allocation43_spill] sm:$0xff] }
 0x581   : > { %v3619_v14 = vadd.f32 1.0, %v3587_v27  ;;  %v3514_v0 = vmul.f32 %v4595_v36, %v3354_v24  ;;  %v9034_v50 = vand.u32 2147483648, %v9026_v46  ;;  %vm2978_vm12 = vcmp.eq.f32.partialorder %v2977_v2, 8.507059e+37 }
 0x582   : > { %v3175_v19 = vmul.f32 %v3143_v54, %v8032_v30  ;;  %v3332_v20 = vadd.f32 0.2548296, %v3300_v8  ;;  %v3269_v55 = vadd.f32 -0.28449672, %v3237_v51  ;;  %v2987_v27 = vadd.f32 %v7448_v32, %v7542_v10 }
 0x583   : > { %v2980_v54 = vor.u32 1.1754944e-38, %v9034_v50  ;;  %v3651_v28 = vmul.f32 %v3619_v14, %v9035_v59  ;;  %vm2989_vm13 = vweird.f32 %v7448_v32  ;;  %v8089_v46 = vmul.f32 %v8068_v13, %v7988_v37  ;;  %v3703_v50 = vld [vmem:[#allocation16 + $0x138] sm:$0xff]  ;;  %v9040_v59 = vld [vmem:[#allocation84_spill] sm:$0xff] }
 0x584   : > { %v3207_v63 = vadd.f32 1.4214138, %v3175_v19  ;;  %v3364_v16 = vmul.f32 %v3332_v20, %v7981_v25  ;;  %v3301_v8 = vmul.f32 %v3269_v55, %v8012_v22  ;;  %v8091_v38 = vmul.f32 1.442695, %v3422_v26  ;;  %v9036_v25 = vld [vmem:[#allocation113_spill] sm:$0xff]  ;;  %vm8100_vm14 = vmor %vm2988_vm9, %vm2989_vm13  ;;  %4149 = vmatpush.msra.mxu1 %v3703_v50  ;;  %3822 = vmatpush.msrb.mxu0 %v3703_v50  ;;  %v9043_v50 = vld [vmem:[#allocation115_spill] sm:$0xff] }
 0x585   : > { %v8084_v18 = vsel %vm2978_vm12, %v2980_v54, %v2976_v12  ;;  %3883 = vmatmul.f32.gmra.mxu2 %v3651_v28  ;;  %v2566_v36 = vmul.f32 0.3275911, %v8071_v62  ;;  %v8095_v10 = vadd.f32 1.0, %v2562_v47  ;;  %v3394_v24 = vsub.f32 0.0, %v8035_v35  ;;  %v2337_v47 = vpop.f32.mrf.mxu1  ;;  %v3702_v54 = vld [vmem:[#allocation16 + $0x130] sm:$0xff] }
 0x586   : > { %v3239_v5 = vmul.f32 %v3207_v63, %v8032_v30  ;;  %v3524_v40 = vmul.f32 %v9036_v25, %v3364_v16  ;;  %v3333_v2 = vadd.f32 0.2548296, %v3301_v8  ;;  %v3112_v26 = vmul.f32 1.0614054, %v8084_v18  ;;  %3823 = vmatpush.msrb.mxu0 %v3702_v54  ;;  %4150 = vmatpush.msra.mxu1 %v3702_v54 }
 0x587   : > { %v2991_v16 = vsel %vm8100_vm14, %v7448_v32, %v2987_v27  ;;  %v2992_v28 = vand.u32 2147483647, %v9030_v45  ;;  %v3546_v20 = vsub.f32 1.0, %v3514_v0  ;;  %v9039_v55 = vand.u32 2147483648, %v9030_v45  ;;  %v9041_v0 = vld [vmem:[#allocation46_spill] sm:$0xff] }
 0x588   : > { %v3271_v51 = vadd.f32 -0.28449672, %v3239_v5  ;;  %v3556_v14 = vsub.f32 1.0, %v3524_v40  ;;  %v3365_v12 = vmul.f32 %v3333_v2, %v8012_v22  ;;  %vm3033_vm15 = vweird.f32 %v7445_v57  ;;  %v3701_v2 = vld [vmem:[#allocation16 + $0x128] sm:$0xff] }
 0x589   : > { %v2995_v63 = vor.u32 1.1754944e-38, %v9039_v55  ;;  %v8115_v25 = vadd.f32 1.0, %v2566_v36  ;;  %v3144_v32 = vadd.f32 -1.4531521, %v3112_v26  ;;  %vm2993_vm0 = vcmp.eq.f32.partialorder %v2992_v28, 8.507059e+37  ;;  %3824 = vmatpush.msrb.mxu0 %v3701_v2  ;;  %4151 = vmatpush.msra.mxu1 %v3701_v2 }
 0x58a   : > { %v3303_v5 = vmul.f32 %v3271_v51, %v8032_v30  ;;  %v3588_v8 = vmul.f32 %v3556_v14, %v9040_v59  ;;  %v3525_v27 = vmul.f32 %v9041_v0, %v3365_v12  ;;  %v8121_v45 = vadd.f32 %v2337_v47, %v7436_v60  ;;  %v3700_v12 = vld [vmem:[#allocation16 + $0x120] sm:$0xff]  ;;  %v9044_v59 = vld [vmem:[#allocation66_spill] sm:$0xff] }
 0x58b   : > { %v8118_v40 = vsel %vm2993_vm0, %v2995_v63, %v2991_v16  ;;  %v2820_v51 = vsub.f32 1.0, %v8089_v46  ;;  %v3176_v14 = vmul.f32 %v3144_v32, %v8084_v18  ;;  %4598 = vrcp.f32 %v8095_v10  ;;  %v9042_v46 = vld [vmem:[#allocation99_spill] sm:$0xff]  ;;  %3825 = vmatpush.msrb.mxu0 %v3700_v12  ;;  %4152 = vmatpush.msra.mxu1 %v3700_v12 }
 0x58c   : > { %v3335_v22 = vadd.f32 0.2548296, %v3303_v5  ;;  %v3620_v19 = vadd.f32 1.0, %v3588_v8  ;;  %v3113_v36 = vmul.f32 1.0614054, %v8118_v40  ;;  %v3426_v26 = vmul.f32 %v3394_v24, %v8035_v35 }
 0x58d   : > { %v3557_v28 = vsub.f32 1.0, %v3525_v27  ;;  %vm3048_vm1 = vweird.f32 %v7510_v53  ;;  %v3578_v47 = vmul.f32 %v3546_v20, %v7967_v31  ;;  %v3208_v55 = vadd.f32 1.4214138, %v3176_v14 }
 0x58e   : > { %v3367_v16 = vmul.f32 %v3335_v22, %v8032_v30  ;;  %v3652_v5 = vmul.f32 %v3620_v19, %v9042_v46  ;;  %v3145_v63 = vadd.f32 -1.4531521, %v3113_v36  ;;  %4600 = vrcp.f32 %v8115_v25 }
 0x58f   : > { %v3589_v54 = vmul.f32 %v3557_v28, %v9043_v50  ;;  %v8136_v35 = vmul.f32 0.70710677, %v8121_v45  ;;  %v3240_v30 = vmul.f32 %v3208_v55, %v8084_v18  ;;  %v3032_v24 = vadd.f32 %v7493_v9, %v7567_v43  ;;  %v9045_v28 = vld [vmem:[#allocation100_spill] sm:$0xff] }
 0x590   : > { %v3527_v8 = vmul.f32 %v9044_v59, %v3367_v16  ;;  %3763 = vmatmul.f32.gmra.mxu3 %v3652_v5  ;;  %v3177_v31 = vmul.f32 %v3145_v63, %v8118_v40  ;;  %vm3034_vm2 = vweird.f32 %v7493_v9  ;;  %v2889_v20 = vand.u32 2147483648, %v8095_v10  ;;  %v9046_v16 = vld [vmem:[#allocation68_spill] sm:$0xff] }
 0x591   : > { %v3621_v32 = vadd.f32 1.0, %v3589_v54  ;;  %v3037_v27 = vand.u32 2147483647, %v7445_v57  ;;  %4602 = vpow2.f32 %v8091_v38  ;;  %v8146_v22 = vmul.f32 1.442695, %v3426_v26  ;;  %v8148_v14 = vpop.eup %4598  ;;  %vm8159_vm3 = vmor %vm3033_vm15, %vm3034_vm2  ;;  %v2340_v38 = vpop.f32.mrf.mxu1 }
 0x592   : > { %v3559_v0 = vsub.f32 1.0, %v3527_v8  ;;  %v3272_v2 = vadd.f32 -0.28449672, %v3240_v30  ;;  %v3209_v19 = vadd.f32 1.4214138, %v3177_v31  ;;  %v3610_v36 = vadd.f32 1.0, %v3578_v47 }
 0x593   : > { %v3653_v43 = vmul.f32 %v3621_v32, %v9045_v28  ;;  %v8153_v5 = vand.u32 2147483647, %v8136_v35  ;;  %v3036_v47 = vsel %vm8159_vm3, %v7493_v9, %v3032_v24  ;;  %v3047_v55 = vadd.f32 %v7584_v56, %v7743_v17  ;;  %v9050_v24 = vld [vmem:[#allocation45_spill] sm:$0xff] }
 0x594   : > { %v3591_v46 = vmul.f32 %v3559_v0, %v9046_v16  ;;  %v3304_v26 = vmul.f32 %v3272_v2, %v8084_v18  ;;  %v3241_v12 = vmul.f32 %v3209_v19, %v8118_v40  ;;  %v8170_v63 = vpop.eup %4600  ;;  %vm3038_vm4 = vcmp.eq.f32.partialorder %v3037_v27, 8.507059e+37  ;;  %v3699_v16 = vld [vmem:[#allocation16 + $0x118] sm:$0xff] }
 0x595   : > { %3804 = vmatmul.f32.gmra.mxu0 %v3653_v43  ;;  %v9049_v54 = vand.u32 2147483648, %v7445_v57  ;;  %vm3049_vm5 = vweird.f32 %v7584_v56  ;;  %v8176_v8 = vmul.f32 %v8068_v13, %v2820_v51  ;;  %v3052_v9 = vand.u32 2147483647, %v7510_v53  ;;  %4153 = vmatpush.msra.mxu1 %v3699_v16 }
 0x596   : > { %v3623_v50 = vadd.f32 1.0, %v3591_v46  ;;  %v3336_v30 = vadd.f32 0.2548296, %v3304_v26  ;;  %v3273_v31 = vadd.f32 -0.28449672, %v3241_v12  ;;  %v2879_v17 = vmul.f32 %v8148_v14, %v8095_v10  ;;  %vm8187_vm6 = vmor %vm3048_vm1, %vm3049_vm5  ;;  %v3698_v46 = vld [vmem:[#allocation16 + $0x110] sm:$0xff]  ;;  %3826 = vmatpush.msrb.mxu0 %v3699_v16 }
 0x597   : > { %v3040_v59 = vor.u32 1.1754944e-38, %v9049_v54  ;;  %v2570_v0 = vmul.f32 0.3275911, %v8153_v5  ;;  %v8191_v51 = vpop.eup %4602  ;;  %v3051_v43 = vsel %vm8187_vm6, %v7584_v56, %v3047_v55  ;;  %vm2703_vm7 = vweird.f32 %v7797_v34  ;;  %v9054_v54 = vld [vmem:[#allocation63_spill] sm:$0xff]  ;;  %4154 = vmatpush.msra.mxu1 %v3698_v46 }
 0x598   : > { %v3655_v32 = vmul.f32 %v3623_v50, %v9050_v24  ;;  %v3368_v2 = vmul.f32 %v3336_v30, %v8084_v18  ;;  %v3305_v19 = vmul.f32 %v3273_v31, %v8118_v40  ;;  %v2939_v26 = vmul.f32 %v8170_v63, %v8115_v25  ;;  %v3697_v30 = vld [vmem:[#allocation16 + $0x108] sm:$0xff]  ;;  %3827 = vmatpush.msrb.mxu0 %v3698_v46 }
 0x599   : > { %v8183_v27 = vsel %vm3038_vm4, %v3040_v59, %v3036_v47  ;;  %v3398_v12 = vsub.f32 0.0, %v8071_v62  ;;  %v9053_v18 = vand.u32 2147483648, %v7510_v53  ;;  %v8206_v50 = vadd.f32 %v2340_v38, %v7436_v60  ;;  %v9056_v38 = vld [vmem:[#allocation94_spill] sm:$0xff]  ;;  %4155 = vmatpush.msra.mxu1 %v3697_v30 }
 0x59a   : > { %v3116_v28 = vmul.f32 1.0614054, %v8183_v27  ;;  %3886 = vmatmul.f32.gmra.mxu2 %v3655_v32  ;;  %v3528_v56 = vmul.f32 %v9054_v54, %v3368_v2  ;;  %v3337_v55 = vadd.f32 0.2548296, %v3305_v19  ;;  %vm3053_vm8 = vcmp.eq.f32.partialorder %v3052_v9, 8.507059e+37  ;;  %v3696_v9 = vld [vmem:[#allocation16 + $0x100] sm:$0xff]  ;;  %3828 = vmatpush.msrb.mxu0 %v3697_v30 }
 0x59b   : > { %v3055_v47 = vor.u32 1.1754944e-38, %v9053_v18  ;;  %v3642_v31 = vmul.f32 %v3610_v36, %v7946_v3  ;;  %v8210_v24 = vadd.f32 1.0, %v2570_v0  ;;  %v8215_v53 = vmul.f32 0.70710677, %v8206_v50  ;;  %4156 = vmatpush.msra.mxu1 %v3696_v9 }
 0x59c   : > { %v3148_v59 = vadd.f32 -1.4531521, %v3116_v28  ;;  %v3560_v57 = vsub.f32 1.0, %v3528_v56  ;;  %v3369_v60 = vmul.f32 %v3337_v55, %v8118_v40  ;;  %vm3078_vm9 = vweird.f32 %v7645_v33  ;;  %3829 = vmatpush.msrb.mxu0 %v3696_v9  ;;  %v9064_v9 = vld [vmem:[#allocation107_spill] sm:$0xff] }
 0x59d   : > { %v8212_v32 = vsel %vm3053_vm8, %v3055_v47, %v3051_v43  ;;  %v2880_v3 = vsub.f32 1.0, %v2879_v17  ;;  %v2940_v36 = vsub.f32 1.0, %v2939_v26  ;;  %v3430_v0 = vmul.f32 %v3398_v12, %v8071_v62  ;;  %v9055_v43 = vld [vmem:[#allocation112_spill] sm:$0xff]  ;;  %3836 = vmatmul.f32.vlgmr.msra.gmra.mxu1 %v3642_v31 }
 0x59e   : > { %v3180_v2 = vmul.f32 %v3148_v59, %v8183_v27  ;;  %v3117_v19 = vmul.f32 1.0614054, %v8212_v32  ;;  %v8223_v28 = vand.u32 2147483647, %v8215_v53  ;;  %v3592_v16 = vmul.f32 %v3560_v57, %v9055_v43  ;;  %v9058_v57 = vld [vmem:[#allocation37_spill] sm:$0xff] }
 0x59f   : > { %v3529_v40 = vmul.f32 %v9056_v38, %v3369_v60  ;;  %4604 = vrcp.f32 %v8210_v24  ;;  %v2702_v17 = vadd.f32 %v7875_v11, %v7940_v15  ;;  %vm2704_vm10 = vweird.f32 %v7875_v11  ;;  %v9057_v15 = vld [vmem:[#allocation38_spill] sm:$0xff] }
 0x5a0   : > { %v3212_v18 = vadd.f32 1.4214138, %v3180_v2  ;;  %v3149_v47 = vadd.f32 -1.4531521, %v3117_v19  ;;  %v2574_v46 = vmul.f32 0.3275911, %v8223_v28  ;;  %vm2823_vm11 = vweird.f32 %v7988_v37  ;;  %vm8245_vm12 = vmor %vm2703_vm7, %vm2704_vm10 }
 0x5a1   : > { %v3624_v62 = vadd.f32 1.0, %v3592_v16  ;;  %v3561_v26 = vsub.f32 1.0, %v3529_v40  ;;  %v2881_v56 = vmul.f32 %v8148_v14, %v2880_v3  ;;  %4606 = vpow2.f32 %v8146_v22 }
 0x5a2   : > { %v3244_v12 = vmul.f32 %v3212_v18, %v8183_v27  ;;  %v3181_v54 = vmul.f32 %v3149_v47, %v8212_v32  ;;  %v2949_v55 = vand.u32 2147483648, %v8115_v25  ;;  %v2707_v59 = vand.u32 2147483647, %v7797_v34 }
 0x5a3   : > { %v3656_v30 = vmul.f32 %v3624_v62, %v9057_v15  ;;  %v3593_v60 = vmul.f32 %v3561_v26, %v9058_v57  ;;  %v8250_v22 = vmul.f32 %v8170_v63, %v2940_v36  ;;  %v8252_v3 = vmul.f32 1.442695, %v3430_v0 }
 0x5a4   : > { %v3276_v2 = vadd.f32 -0.28449672, %v3244_v12  ;;  %v3213_v19 = vadd.f32 1.4214138, %v3181_v54  ;;  %v3402_v31 = vsub.f32 0.0, %v8153_v5  ;;  %v2706_v43 = vsel %vm8245_vm12, %v7875_v11, %v2702_v17  ;;  %v9062_v11 = vld [vmem:[#allocation87_spill] sm:$0xff] }
 0x5a5   : > { %3766 = vmatmul.f32.gmra.mxu3 %v3656_v30  ;;  %v3625_v16 = vadd.f32 1.0, %v3593_v60  ;;  %v8260_v18 = vadd.f32 1.0, %v2574_v46  ;;  %v8262_v47 = vpop.eup %4604  ;;  %vm2883_vm13 = vweird.f32 %v8095_v10  ;;  %vm2708_vm14 = vcmp.eq.f32.partialorder %v2707_v59, 8.507059e+37 }
 0x5a6   : > { %v3308_v38 = vmul.f32 %v3276_v2, %v8183_v27  ;;  %v3245_v40 = vmul.f32 %v3213_v19, %v8212_v32  ;;  %v9061_v36 = vand.u32 2147483648, %v7797_v34  ;;  %v3077_v62 = vadd.f32 %v7698_v21, %v7878_v58 }
 0x5a7   : > { %vm3079_vm15 = vweird.f32 %v7698_v21  ;;  %v3657_v17 = vmul.f32 %v3625_v16, %v9062_v11  ;;  %v3082_v46 = vand.u32 2147483647, %v7645_v33  ;;  %v8274_v54 = vpop.eup %4606  ;;  %v9063_v15 = vand.u32 2147483648, %v7645_v33 }
 0x5a8   : > { %v2710_v0 = vor.u32 1.1754944e-38, %v9061_v36  ;;  %v3340_v26 = vadd.f32 0.2548296, %v3308_v38  ;;  %v3277_v12 = vadd.f32 -0.28449672, %v3245_v40  ;;  %vm3080_vm0 = vmor %vm3078_vm9, %vm3079_vm15  ;;  %vm2824_vm1 = vweird.f32 %v8068_v13 }
 0x5a9   : > { %v3081_v34 = vsel %vm3080_vm0, %v7698_v21, %v3077_v62  ;;  %v3085_v58 = vor.u32 1.1754944e-38, %v9063_v15  ;;  %3807 = vmatmul.f32.gmra.mxu0 %v3657_v17  ;;  %vm3083_vm2 = vcmp.eq.f32.partialorder %v3082_v46, 8.507059e+37  ;;  %v2999_v2 = vmul.f32 %v8262_v47, %v8210_v24  ;;  %vm2825_vm3 = vmor %vm2823_vm11, %vm2824_vm1  ;;  %v9067_v15 = vld [vmem:[#allocation69_spill] sm:$0xff] }
 0x5aa   : > { %v8276_v59 = vsel %vm2708_vm14, %v2710_v0, %v2706_v43  ;;  %v3372_v30 = vmul.f32 %v3340_v26, %v8183_v27  ;;  %v3309_v57 = vmul.f32 %v3277_v12, %v8212_v32  ;;  %v2822_v21 = vadd.f32 %v8068_v13, %v8176_v8 }
 0x5ab   : > { %v3094_v60 = vmul.f32 1.0614054, %v8276_v59  ;;  %v8287_v19 = vsel %vm3083_vm2, %v3085_v58, %v3081_v34  ;;  %v2827_v33 = vand.u32 2147483647, %v7988_v37  ;;  %4608 = vrcp.f32 %v8260_v18 }
 0x5ac   : > { %v3532_v43 = vmul.f32 %v9064_v9, %v3372_v30  ;;  %v3341_v16 = vadd.f32 0.2548296, %v3309_v57  ;;  %v3119_v38 = vmul.f32 1.0614054, %v8287_v19  ;;  %v2826_v40 = vsel %vm2825_vm3, %v8068_v13, %v2822_v21 }
 0x5ad   : > { %v3126_v27 = vadd.f32 -1.4531521, %v3094_v60  ;;  %v9065_v36 = vand.u32 2147483648, %v7988_v37  ;;  %v2882_v8 = vadd.f32 %v8148_v14, %v2881_v56  ;;  %vm2943_vm4 = vweird.f32 %v8115_v25  ;;  %v9066_v37 = vld [vmem:[#allocation102_spill] sm:$0xff] }
 0x5ae   : > { %v3564_v62 = vsub.f32 1.0, %v3532_v43  ;;  %v3373_v11 = vmul.f32 %v3341_v16, %v8212_v32  ;;  %vm2828_vm5 = vcmp.eq.f32.partialorder %v2827_v33, 8.507059e+37  ;;  %v3151_v26 = vadd.f32 -1.4531521, %v3119_v38 }
 0x5af   : > { %v2830_v0 = vor.u32 1.1754944e-38, %v9065_v36  ;;  %v3158_v17 = vmul.f32 %v3126_v27, %v8276_v59  ;;  %vm2884_vm6 = vweird.f32 %v8148_v14  ;;  %v2887_v13 = vand.u32 2147483647, %v8095_v10  ;;  %v9070_v36 = vld [vmem:[#allocation106_spill] sm:$0xff] }
 0x5b0   : > { %v3000_v46 = vsub.f32 1.0, %v2999_v2  ;;  %v3596_v34 = vmul.f32 %v3564_v62, %v9066_v37  ;;  %v3533_v56 = vmul.f32 %v9067_v15, %v3373_v11  ;;  %vm8312_vm7 = vmor %vm2883_vm13, %vm2884_vm6  ;;  %v3183_v30 = vmul.f32 %v3151_v26, %v8287_v19 }
 0x5b1   : > { %v8304_v12 = vsel %vm2828_vm5, %v2830_v0, %v2826_v40  ;;  %v3190_v58 = vadd.f32 1.4214138, %v3158_v17  ;;  %v2886_v60 = vsel %vm8312_vm7, %v8148_v14, %v2882_v8  ;;  %vm2888_vm8 = vcmp.eq.f32.partialorder %v2887_v13, 8.507059e+37  ;;  %v8321_v2 = vpop.eup %4608  ;;  %v9071_v0 = vld [vmem:[#allocation51_spill] sm:$0xff] }
 0x5b2   : > { %v3102_v57 = vmul.f32 1.0614054, %v8304_v12  ;;  %v3628_v21 = vadd.f32 1.0, %v3596_v34  ;;  %v3565_v33 = vsub.f32 1.0, %v3533_v56  ;;  %v2890_v43 = vor.u32 1.1754944e-38, %v2889_v20 }
 0x5b3   : > { %v3222_v9 = vmul.f32 %v3190_v58, %v8276_v59  ;;  %v3434_v16 = vmul.f32 %v3402_v31, %v8153_v5  ;;  %v3215_v27 = vadd.f32 1.4214138, %v3183_v30  ;;  %v2947_v40 = vand.u32 2147483647, %v8115_v25  ;;  %v9072_v58 = vld [vmem:[#allocation105_spill] sm:$0xff] }
 0x5b4   : > { %v3134_v38 = vadd.f32 -1.4531521, %v3102_v57  ;;  %v3660_v14 = vmul.f32 %v3628_v21, %v9070_v36  ;;  %v3597_v8 = vmul.f32 %v3565_v33, %v9071_v0  ;;  %v8332_v11 = vsel %vm2888_vm8, %v2890_v43, %v2886_v60 }
 0x5b5   : > { %v3254_v62 = vadd.f32 -0.28449672, %v3222_v9  ;;  %v3247_v17 = vmul.f32 %v3215_v27, %v8287_v19  ;;  %v3106_v20 = vmul.f32 1.0614054, %v8332_v11  ;;  %v2942_v5 = vadd.f32 %v8170_v63, %v8250_v22 }
 0x5b6   : > { %v3166_v10 = vmul.f32 %v3134_v38, %v8304_v12  ;;  %3769 = vmatmul.f32.gmra.mxu3 %v3660_v14  ;;  %v3629_v31 = vadd.f32 1.0, %v3597_v8  ;;  %v3059_v26 = vmul.f32 %v8321_v2, %v8260_v18  ;;  %vm2944_vm9 = vweird.f32 %v8170_v63 }
 0x5b7   : > { %v3286_v13 = vmul.f32 %v3254_v62, %v8276_v59  ;;  %v3001_v37 = vmul.f32 %v8262_v47, %v3000_v46  ;;  %v3279_v34 = vadd.f32 -0.28449672, %v3247_v17  ;;  %v3138_v56 = vadd.f32 -1.4531521, %v3106_v20  ;;  %vm2945_vm10 = vmor %vm2943_vm4, %vm2944_vm9 }
 0x5b8   : > { %v3198_v15 = vadd.f32 1.4214138, %v3166_v10  ;;  %v3661_v32 = vmul.f32 %v3629_v31, %v9072_v58  ;;  %v2946_v30 = vsel %vm2945_vm10, %v8170_v63, %v2942_v5  ;;  %v2950_v57 = vor.u32 1.1754944e-38, %v2949_v55 }
 0x5b9   : > { %v3318_v22 = vadd.f32 0.2548296, %v3286_v13  ;;  %v3311_v60 = vmul.f32 %v3279_v34, %v8287_v19  ;;  %v3170_v46 = vmul.f32 %v3138_v56, %v8332_v11  ;;  %vm2948_vm11 = vcmp.eq.f32.partialorder %v2947_v40, 8.507059e+37 }
 0x5ba   : > { %v3230_v21 = vmul.f32 %v3198_v15, %v8304_v12  ;;  %v3009_v33 = vand.u32 2147483648, %v8210_v24  ;;  %3810 = vmatmul.f32.gmra.mxu0 %v3661_v32  ;;  %v3060_v9 = vsub.f32 1.0, %v3059_v26  ;;  %v8355_v27 = vsel %vm2948_vm11, %v2950_v57, %v2946_v30 }
 0x5bb   : > { %v3350_v43 = vmul.f32 %v3318_v22, %v8276_v59  ;;  %vm3003_vm12 = vweird.f32 %v8210_v24  ;;  %v3343_v63 = vadd.f32 0.2548296, %v3311_v60  ;;  %v3202_v55 = vadd.f32 1.4214138, %v3170_v46 }
 0x5bc   : > { %v3262_v25 = vadd.f32 -0.28449672, %v3230_v21  ;;  %v8358_v38 = vmul.f32 1.442695, %v3434_v16  ;;  %v3110_v14 = vmul.f32 1.0614054, %v8355_v27  ;;  %v3002_v62 = vadd.f32 %v8262_v47, %v3001_v37 }
 0x5bd   : > { %v3510_v36 = vmul.f32 %v7958_v1, %v3350_v43  ;;  %v3007_v40 = vand.u32 2147483647, %v8210_v24  ;;  %v3375_v0 = vmul.f32 %v3343_v63, %v8287_v19  ;;  %v3234_v59 = vmul.f32 %v3202_v55, %v8332_v11 }
 0x5be   : > { %v3294_v8 = vmul.f32 %v3262_v25, %v8304_v12  ;;  %v3061_v17 = vmul.f32 %v8321_v2, %v3060_v9  ;;  %3889 = vmatmul.f32.vlgmr.msrb.gmra.mxu3 %v7882_v29  ;;  %v3142_v10 = vadd.f32 -1.4531521, %v3110_v14  ;;  %vm3004_vm13 = vweird.f32 %v8262_v47 }
 0x5bf   : > { %v3542_v16 = vsub.f32 1.0, %v3510_v36  ;;  %vm2466_vm14 = vcmp.lt.f32.partialorder %v8016_v7, 0.0  ;;  %v3535_v1 = vmul.f32 %v7904_v23, %v3375_v0  ;;  %v3266_v19 = vadd.f32 -0.28449672, %v3234_v59  ;;  %vm3005_vm15 = vmor %vm3003_vm12, %vm3004_vm13 }
 0x5c0   : > { %v3326_v20 = vadd.f32 0.2548296, %v3294_v8  ;;  %v3010_v5 = vor.u32 1.1754944e-38, %v3009_v33  ;;  %v3174_v26 = vmul.f32 %v3142_v10, %v8355_v27  ;;  %v3006_v29 = vsel %vm3005_vm15, %v8262_v47, %v3002_v62 }
 0x5c1   : > { %v3574_v31 = vmul.f32 %v3542_v16, %v7916_v39  ;;  %vm3008_vm0 = vcmp.eq.f32.partialorder %v3007_v40, 8.507059e+37  ;;  %v3567_v13 = vsub.f32 1.0, %v3535_v1  ;;  %v3298_v34 = vmul.f32 %v3266_v19, %v8332_v11 }
 0x5c2   : > { %v3358_v37 = vmul.f32 %v3326_v20, %v8304_v12  ;;  %v8379_v15 = vsel %vm3008_vm0, %v3010_v5, %v3006_v29  ;;  %4610 = vpow2.f32 %v8252_v3  ;;  %3830 = vmatmul.f32.vlgmr.msrb.gmra.mxu0 %v7962_v52  ;;  %v3206_v24 = vadd.f32 1.4214138, %v3174_v26 }
 0x5c3   : > { %v3606_v23 = vadd.f32 1.0, %v3574_v31  ;;  %v3114_v39 = vmul.f32 1.0614054, %v8379_v15  ;;  %v3069_v56 = vand.u32 2147483648, %v8260_v18  ;;  %v3599_v47 = vmul.f32 %v3567_v13, %v7654_v6 }
 0x5c4   : > { %v3518_v58 = vmul.f32 %v8191_v51, %v3358_v37  ;;  %v3330_v32 = vadd.f32 0.2548296, %v3298_v34  ;;  %vm3063_vm1 = vweird.f32 %v8260_v18  ;;  %v3238_v12 = vmul.f32 %v3206_v24, %v8355_v27  ;;  %v9073_v51 = vld [vmem:[#allocation76_spill] sm:$0xff] }
 0x5c5   : > { %v3146_v22 = vadd.f32 -1.4531521, %v3114_v39  ;;  %v3067_v3 = vand.u32 2147483647, %v8260_v18  ;;  %v3631_v30 = vadd.f32 1.0, %v3599_v47  ;;  %v3062_v60 = vadd.f32 %v8321_v2, %v3061_v17 }
 0x5c6   : > { %v3550_v52 = vsub.f32 1.0, %v3518_v58  ;;  %v3362_v57 = vmul.f32 %v3330_v32, %v8332_v11  ;;  %v3638_v21 = vmul.f32 %v3606_v23, %v7887_v44  ;;  %v3270_v46 = vadd.f32 -0.28449672, %v3238_v12 }
 0x5c7   : > { %v3178_v6 = vmul.f32 %v3146_v22, %v8379_v15  ;;  %vm3064_vm2 = vweird.f32 %v8321_v2  ;;  %v3663_v33 = vmul.f32 %v3631_v30, %v9073_v51  ;;  %v3070_v63 = vor.u32 1.1754944e-38, %v3069_v56  ;;  %v3790_v51 = vpop.f32.mrf.mxu0 }
 0x5c8   : > { %v3582_v9 = vmul.f32 %v3550_v52, %v8050_v41  ;;  %v3522_v43 = vmul.f32 %v8274_v54, %v3362_v57  ;;  %vm3065_vm3 = vmor %vm3063_vm1, %vm3064_vm2  ;;  %v4611_v11 = vpop.eup %4610  ;;  %v3302_v25 = vmul.f32 %v3270_v46, %v8355_v27  ;;  %vm3068_vm4 = vcmp.eq.f32.partialorder %v3067_v3, 8.507059e+37 }
 0x5c9   : > { %v3210_v55 = vadd.f32 1.4214138, %v3178_v6  ;;  %v3066_v44 = vsel %vm3065_vm3, %v8321_v2, %v3062_v60  ;;  %v3406_v36 = vsub.f32 0.0, %v8223_v28  ;;  %3892 = vmatmul.f32.gmra.mxu3 %v3663_v33  ;;  %v2498_v41 = vsel %vm2466_vm14, -1.0, %v8875_v4 }
 0x5ca   : > { %v3614_v14 = vadd.f32 1.0, %v3582_v9  ;;  %v3554_v40 = vsub.f32 1.0, %v3522_v43  ;;  %v3071_v0 = vsel %vm3068_vm4, %v3070_v63, %v3066_v44  ;;  %3833 = vmatmul.f32.gmra.mxu0 %v3638_v21  ;;  %v3334_v18 = vadd.f32 0.2548296, %v3302_v25  ;;  %v3749_v43 = vpop.f32.mrf.mxu3  ;;  %v4327_v44 = vld [vmem:[%s9074_s16] ss:$0 sm:$0xff] }
 0x5cb   : > { %v3242_v54 = vmul.f32 %v3210_v55, %v8379_v15  ;;  %v3118_v8 = vmul.f32 1.0614054, %v3071_v0  ;;  %4612 = vpow2.f32 %v8358_v38  ;;  %v3438_v10 = vmul.f32 %v3406_v36, %v8223_v28 }
 0x5cc   : > { %v3646_v59 = vmul.f32 %v3614_v14, %v7976_v61  ;;  %v3586_v62 = vmul.f32 %v3554_v40, %v2498_v41  ;;  %v3366_v2 = vmul.f32 %v3334_v18, %v8355_v27  ;;  %vm2470_vm5 = vcmp.lt.f32.partialorder %v8043_v42, 0.0 }
 0x5cd   : > { %v3274_v17 = vadd.f32 -0.28449672, %v3242_v54  ;;  %v3150_v16 = vadd.f32 -1.4531521, %v3118_v8  ;;  %v2402_v5 = vmul.f32 0.5, %v7991_v48  ;;  %v2502_v27 = vsel %vm2470_vm5, -1.0, %v8875_v4 }
 0x5ce   : > { %3839 = vmatmul.f32.gmra.mxu1 %v3646_v59  ;;  %v3618_v1 = vadd.f32 1.0, %v3586_v62  ;;  %v3526_v7 = vmul.f32 %v4611_v11, %v3366_v2  ;;  %v3500_v29 = vmul.f32 1.442695, %v3438_v10  ;;  %vm2474_vm6 = vcmp.lt.f32.partialorder %v8136_v35, 0.0  ;;  %v3872_v11 = vpop.f32.mrf.mxu2  ;;  %v9075_v8 = vld [vmem:[#allocation77_spill] sm:$0xff] }
 0x5cf   : > { %v3306_v20 = vmul.f32 %v3274_v17, %v8379_v15  ;;  %v3182_v19 = vmul.f32 %v3150_v16, %v3071_v0  ;;  %v2406_v56 = vmul.f32 0.5, %v8027_v49  ;;  %v2506_v47 = vsel %vm2474_vm6, -1.0, %v8875_v4  ;;  %v3793_v33 = vpop.f32.mrf.mxu0 }
 0x5d0   : > { %v3558_v61 = vsub.f32 1.0, %v3526_v7  ;;  %v3650_v13 = vmul.f32 %v3618_v1, %v2402_v5  ;;  %4614 = vpow2.f32 %v3500_v29  ;;  %vm2478_vm7 = vcmp.lt.f32.partialorder %v8215_v53, 0.0  ;;  %v9076_v5 = vld [vmem:[#allocation73_spill] sm:$0xff] }
 0x5d1   : > { %v3338_v31 = vadd.f32 0.2548296, %v3306_v20  ;;  %v3214_v26 = vadd.f32 1.4214138, %v3182_v19  ;;  %v4613_v34 = vpop.eup %4612  ;;  %v2410_v52 = vmul.f32 0.5, %v8121_v45  ;;  %v2510_v57 = vsel %vm2478_vm7, -1.0, %v8875_v4 }
 0x5d2   : > { %v3590_v38 = vmul.f32 %v3558_v61, %v2502_v27  ;;  %v2414_v46 = vmul.f32 0.5, %v8206_v50  ;;  %v3752_v25 = vpop.f32.mrf.mxu3  ;;  %v3750_v2 = vadd.f32 %v4327_v44, %v3749_v43 }
 0x5d3   : > { %v3370_v28 = vmul.f32 %v3338_v31, %v8379_v15  ;;  %v3246_v37 = vmul.f32 %v3214_v26, %v3071_v0  ;;  %v3753_v7 = vadd.f32 %v4327_v44, %v3752_v25 }
 0x5d4   : > { %v3622_v24 = vadd.f32 1.0, %v3590_v38  ;;  %v3791_v16 = vadd.f32 %v3790_v51, %v3750_v2  ;;  %v9080_v51 = vld [vmem:[#allocation95_spill] sm:$0xff] }
 0x5d5   : > { %v3530_v23 = vmul.f32 %v4613_v34, %v3370_v28  ;;  %v3278_v42 = vadd.f32 -0.28449672, %v3246_v37  ;;  %v3794_v26 = vadd.f32 %v3793_v33, %v3753_v7 }
 0x5d6   : > { %3842 = vmatmul.f32.gmra.mxu1 %v3650_v13  ;;  %v3654_v32 = vmul.f32 %v3622_v24, %v2406_v56  ;;  %v4615_v15 = vpop.eup %4614  ;;  %v3875_v55 = vpop.f32.mrf.mxu2  ;;  %v9078_v56 = vld [vmem:[#allocation74_spill] sm:$0xff] }
 0x5d7   : > { %v3562_v48 = vsub.f32 1.0, %v3530_v23  ;;  %v3310_v39 = vmul.f32 %v3278_v42, %v3071_v0  ;;  %v3796_v9 = vpop.f32.mrf.mxu0  ;;  %v9077_v23 = vld [vmem:[#allocation71_spill] sm:$0xff] }
 0x5d9   : > { %v3342_v58 = vadd.f32 0.2548296, %v3310_v39  ;;  %v3594_v12 = vmul.f32 %v3562_v48, %v2506_v47 }
 0x5da   : > { %v3755_v4 = vpop.f32.mrf.mxu3 }
 0x5db   : > { %v3374_v22 = vmul.f32 %v3342_v58, %v3071_v0  ;;  %v3626_v30 = vadd.f32 1.0, %v3594_v12  ;;  %v3756_v36 = vadd.f32 %v4327_v44, %v3755_v4 }
 0x5dd   : > { %v3534_v3 = vmul.f32 %v4615_v15, %v3374_v22  ;;  %v3658_v60 = vmul.f32 %v3626_v30, %v2410_v52  ;;  %v3797_v14 = vadd.f32 %v3796_v9, %v3756_v36  ;;  %v9079_v30 = vld [vmem:[#allocation78_spill] sm:$0xff] }
 0x5de   : > { %3845 = vmatmul.f32.gmra.mxu1 %v3654_v32  ;;  %v3878_v41 = vpop.f32.mrf.mxu2 }
 0x5df   : > { %v3566_v35 = vsub.f32 1.0, %v3534_v3  ;;  %v3799_v53 = vpop.f32.mrf.mxu0 }
 0x5e1   : > { %v3598_v21 = vmul.f32 %v3566_v35, %v2510_v57 }
 0x5e2   : > { %v3758_v54 = vpop.f32.mrf.mxu3 }
 0x5e3   : > { %v3630_v49 = vadd.f32 1.0, %v3598_v21  ;;  %v3759_v31 = vadd.f32 %v4327_v44, %v3758_v54 }
 0x5e5   : > { %v3662_v6 = vmul.f32 %v3630_v49, %v2414_v46  ;;  %v3800_v13 = vadd.f32 %v3799_v53, %v3759_v31 }
 0x5e6   : > { %3848 = vmatmul.f32.gmra.mxu1 %v3658_v60 }
 0x5ee   : > { %3851 = vmatmul.f32.gmra.mxu1 %v3662_v6  ;;  %v3881_v38 = vpop.f32.mrf.mxu2 }
 0x5f3   : > { %v3761_v17 = vpop.f32.mrf.mxu3 }
 0x5f4   : > { %v3802_v63 = vpop.f32.mrf.mxu0  ;;  %v3762_v24 = vadd.f32 %v4327_v44, %v3761_v17 }
 0x5f6   : > { %v3803_v58 = vadd.f32 %v3802_v63, %v3762_v24 }
 0x608   : > { %v3884_v32 = vpop.f32.mrf.mxu2 }
 0x612   : > { %v3805_v45 = vpop.f32.mrf.mxu0 }
 0x613   : > { %v3764_v19 = vpop.f32.mrf.mxu3 }
 0x614   : > { %v3765_v15 = vadd.f32 %v4327_v44, %v3764_v19 }
 0x616   : > { %v3806_v57 = vadd.f32 %v3805_v45, %v3765_v15  ;;  %v9081_v45 = vld [vmem:[#allocation79_spill] sm:$0xff] }
 0x61a   : > { %v3837_v40 = vpop.f32.mrf.mxu1 }
 0x61b   : > { %v3838_v0 = vadd.f32 %v3837_v40, %v3797_v14 }
 0x61d   : > { %v3879_v18 = vadd.f32 %v3878_v41, %v3838_v0  ;;  %v3887_v49 = vpop.f32.mrf.mxu2 }
 0x61f   : > { %v3898_v59 = vadd.f32 %v3879_v18, %v9075_v8 }
 0x621   : > { %3906 = vst [vmem:[%s8428_s23 + $0x10] sm:$0xff] %v3898_v59 }
 0x626   : > { %v3808_v50 = vpop.f32.mrf.mxu0 }
 0x628   : > { %v3767_v39 = vpop.f32.mrf.mxu3 }
 0x629   : > { %v3768_v46 = vadd.f32 %v4327_v44, %v3767_v39 }
 0x62b   : > { %v3809_v9 = vadd.f32 %v3808_v50, %v3768_v46 }
 0x637   : > { %v3811_v62 = vpop.f32.mrf.mxu0 }
 0x639   : > { %v3770_v52 = vpop.f32.mrf.mxu3 }
 0x63f   : > { %v3831_v10 = vpop.f32.mrf.mxu0 }
 0x640   : > { %v3832_v1 = vadd.f32 %v3831_v10, %v3791_v16 }
 0x641   : > { %v3890_v53 = vpop.f32.mrf.mxu3 }
 0x642   : > { %v3873_v20 = vadd.f32 %v3872_v11, %v3832_v1  ;;  %v3771_v11 = vadd.f32 %v4327_v44, %v3770_v52  ;;  %v9084_v44 = vld [vmem:[#allocation85_spill] sm:$0xff] }
 0x644   : > { %v3896_v61 = vadd.f32 %v3873_v20, %v9076_v5  ;;  %v3812_v4 = vadd.f32 %v3811_v62, %v3771_v11 }
 0x646   : > { %3904 = vst [vmem:[%s8428_s23] sm:$0xff] %v3896_v61 }
 0x647   : > { %v3834_v27 = vpop.f32.mrf.mxu0 }
 0x648   : > { %v3835_v29 = vadd.f32 %v3834_v27, %v3794_v26 }
 0x64a   : > { %v3876_v28 = vadd.f32 %v3875_v55, %v3835_v29 }
 0x64b   : > { %v3840_v37 = vpop.f32.mrf.mxu1 }
 0x64c   : > { %v3841_v34 = vadd.f32 %v3840_v37, %v3800_v13  ;;  %v3897_v42 = vadd.f32 %v3876_v28, %v9077_v23  ;;  %v3893_v50 = vpop.f32.mrf.mxu3 }
 0x64e   : > { %v3882_v48 = vadd.f32 %v3881_v38, %v3841_v34  ;;  %3905 = vst [vmem:[%s8428_s23 + $0x8] sm:$0xff] %v3897_v42 }
 0x650   : > { %v3899_v47 = vadd.f32 %v3882_v48, %v9078_v56 }
 0x652   : > { %3907 = vst [vmem:[%s8428_s23 + $0x18] sm:$0xff] %v3899_v47 }
 0x653   : > { %v3843_v12 = vpop.f32.mrf.mxu1 }
 0x654   : > { %v3844_v22 = vadd.f32 %v3843_v12, %v3803_v58 }
 0x656   : > { %v3885_v3 = vadd.f32 %v3884_v32, %v3844_v22 }
 0x658   : > { %v3900_v35 = vadd.f32 %v3885_v3, %v9079_v30 }
 0x65a   : > { %3908 = vst [vmem:[%s8428_s23 + $0x20] sm:$0xff] %v3900_v35 }
 0x65b   : > { %v3846_v60 = vpop.f32.mrf.mxu1 }
 0x65c   : > { %v3847_v21 = vadd.f32 %v3846_v60, %v3806_v57 }
 0x65e   : > { %v3888_v6 = vadd.f32 %v3887_v49, %v3847_v21 }
 0x660   : > { %v3901_v33 = vadd.f32 %v3888_v6, %v9080_v51 }
 0x662   : > { %3909 = vst [vmem:[%s8428_s23 + $0x28] sm:$0xff] %v3901_v33 }
 0x663   : > { %v3849_v43 = vpop.f32.mrf.mxu1 }
 0x664   : > { %v3850_v63 = vadd.f32 %v3849_v43, %v3809_v9 }
 0x666   : > { %v3891_v25 = vadd.f32 %v3890_v53, %v3850_v63 }
 0x668   : > { %v3902_v55 = vadd.f32 %v3891_v25, %v9081_v45 }
 0x66a   : > { %3910 = vst [vmem:[%s8428_s23 + $0x30] sm:$0xff] %v3902_v55 }
 0x66b   : > { %v3852_v36 = vpop.f32.mrf.mxu1 }
 0x66c   : > { %v3853_v14 = vadd.f32 %v3852_v36, %v3812_v4 }
 0x66e   : > { %v3894_v40 = vadd.f32 %v3893_v50, %v3853_v14 }
 0x670   : > { %v3903_v0 = vadd.f32 %v3894_v40, %v9084_v44 }
 0x672   : > { %3911 = vst [vmem:[%s8428_s23 + $0x38] sm:$0xff] %v3903_v0 }
 0x673   : > { %4854 = shalt.err (!%p4851_p9)
}
 0x674   : > { %s4939_s4 = smov 128   ;;  %s4940_s15 = smov 8  }
 0x675   : > { %4223 = dma.vmem_to_hbm [thread:$0]  (%p5073_p11), %s3926_s12, 1024, %s3928_s11, %s3913_s22, %s4939_s4, %s4939_s4, %s4940_s15  }
 0x676 PF: > { %s9085_s16 = sld [smem:[#allocation31_spill]]  ;;  %p4248_p10 = pnand %p4099_p2, %p5077_p12 }
 0x678   : > { %p4249_p13 = pneg %p4248_p10 }
 0x67c   : > { %s3942_s23 = sand.u32 1, %s9085_s16  }
 0x67d   : > { %s3943_s18 = scalar_lea.sflag [#allocation4], %s3942_s23 }
 0x67e   : > { %4896 = dma.done.wait (%p4249_p13), %s3943_s18, 1024  }
 0x67f   : > { %4898 = vsyncadd (%p4249_p13), %s3943_s18, 4294966272  ;;  %s9087_s21 = sld [smem:[#allocation32_spill]]  ;;  %s9089_s18 = smov %s4905_s19 }
 0x680   : > { %s9088_s6 = sld [smem:[#allocation33_spill]]  ;;  %s9090_s19 = smov %s4909_s20 }
 0x685   : > { %p34_p1 = scmp.ge.s32.totalorder %s9087_s21, 4  }
 0x686   : > { %s9091_s20 = smov %s9088_s6 }
 0x687   :  { %36 = sbr.rel (!%p34_p1) target bundleno = 21 (0x15), region = 176 }
 0x68c   :  { %3949 = vsyncpa [#allocation3], 1 }
 0x68d   :  { %3951 = vsyncpa [#allocation3 + $0x1], 1 }
 0x68e   :  { %3952 = vsyncpa [#allocation6], 1 }
 0x68f   :  { %3954 = vsyncpa [#allocation6 + $0x1], 1 }
 0x690   :  { %3955 = vsyncpa [#allocation9], 1 }
 0x691   :  { %3956 = vsyncpa [#allocation12], 1 }
 0x692   :  { %3957 = vsyncpa [#allocation15], 1 }
 0x693   :  { %3958 = vsyncpa [#allocation4], 1 }
 0x694   :  { %3960 = vsyncpa [#allocation4 + $0x1], 1 }

</bundles_post_ra>
